<compile_context>
chip_gen: v6e
topology: v6e:2x2x1
jax: 0.10.0
libtpu: 0.0.40
codegen_flags: <defaults>
</compile_context>

<pallas_src>
import jax
import jax.numpy as jnp
from jax.experimental import pallas as pl
from jax.experimental.pallas import tpu as pltpu


_PARAM_ORDER = ("g1", "b1", "pool1", "g2", "b2", "pool2",
                "w3", "b3", "wf1", "bf1", "wf2", "bf2")


# ------------------------------ Pallas kernel -------------------------------

def _lenet_kernel(x_ref,                      # (32, T, 32) f32  image rows
                  g1_ref, b1_ref, pool1_ref,  # (160,168) bf16, (1,168) f32, (168,84) bf16
                  g2_ref, b2_ref, pool2_ref,  # (420,160) bf16, (1,160) f32, (160,80) bf16
                  w3_ref, b3_ref,             # (400,128) bf16, (1,128) f32
                  wf1_ref, bf1_ref,           # (128,128) bf16, (1,128) f32
                  wf2_ref, bf2_ref,           # (128,128) bf16, (1,128) f32
                  o_ref):                     # (T, 128) f32   padded logits
    t = o_ref.shape[0]
    bf16, f32 = jnp.bfloat16, jnp.float32

    # ---- conv1 (1->6, 5x5) + bias + ReLU: all 28 output rows in one matmul --
    xrows = [x_ref[h] for h in range(32)]                       # each (t, 32)
    feat1 = jnp.concatenate(
        [jnp.concatenate([xrows[m + kh] for kh in range(5)], axis=1)
         for m in range(28)], axis=0)                           # (28t, 160)
    o1 = jnp.dot(feat1.astype(bf16), g1_ref[...], preferred_element_type=f32)
    o1 = jnp.maximum(o1 + b1_ref[...], 0.0)                     # (28t, 6*28)

    # ---- avg-pool 2x2: sum row pairs, average column pairs via matmul ------
    rows1 = jnp.concatenate(
        [o1[(2 * r) * t:(2 * r + 1) * t, :]
         + o1[(2 * r + 1) * t:(2 * r + 2) * t, :] for r in range(14)], axis=0)
    p1 = jnp.dot(rows1.astype(bf16), pool1_ref[...],
                 preferred_element_type=f32)                    # (14t, 6*14)
    p1rows = [p1[r * t:(r + 1) * t, :] for r in range(14)]      # each (t, 84)

    # ---- conv2 (6->16, 5x5) + bias + ReLU ----------------------------------
    feat2 = jnp.concatenate(
        [jnp.concatenate([p1rows[i + kh] for kh in range(5)], axis=1)
         for i in range(10)], axis=0)                           # (10t, 420)
    o2 = jnp.dot(feat2.astype(bf16), g2_ref[...], preferred_element_type=f32)
    o2 = jnp.maximum(o2 + b2_ref[...], 0.0)                     # (10t, 16*10)

    # ---- avg-pool 2x2 ------------------------------------------------------
    rows2 = jnp.concatenate(
        [o2[(2 * v) * t:(2 * v + 1) * t, :]
         + o2[(2 * v + 1) * t:(2 * v + 2) * t, :] for v in range(5)], axis=0)
    p2 = jnp.dot(rows2.astype(bf16), pool2_ref[...],
                 preferred_element_type=f32)                    # (5t, 16*5)

    # flatten to (t, 400); lane order = (pooled_row, channel, col), matching
    # the precomputed w3 matrix
    x3 = jnp.concatenate([p2[v * t:(v + 1) * t, :] for v in range(5)], axis=1)

    # ---- conv3 (16->120, 5x5 == dense on the 400-flatten) + ReLU -----------
    h3 = jnp.dot(x3.astype(bf16), w3_ref[...], preferred_element_type=f32)
    h3 = jnp.maximum(h3 + b3_ref[...], 0.0)                     # (t, 128), lanes>=120 are 0

    # ---- fc1 + ReLU, fc2 ---------------------------------------------------
    h4 = jnp.dot(h3.astype(bf16), wf1_ref[...], preferred_element_type=f32)
    h4 = jnp.maximum(h4 + bf1_ref[...], 0.0)                    # (t, 128), lanes>=84 are 0

    logits = jnp.dot(h4.astype(bf16), wf2_ref[...], preferred_element_type=f32)
    o_ref[...] = (logits + bf2_ref[...]).astype(o_ref.dtype)    # lane-dense store


# ---------------------------- wrapper / forward ------------------------------

def lenet_forward(packed, x):
    """x: (N, 1, 32, 32) f32 NCHW (classic LeNet-5 input)."""
    n = x.shape[0]
    assert x.shape[1:] == (1, 32, 32), "LeNet's view(-1, 120) needs 1x32x32 input"
    # Batch tile: second-minor block dim must be a multiple of 8 or the full dim.
    tile = 8 if n % 8 == 0 else n
    assert n % tile == 0

    # Layout plumbing on the tiny raw input only: rows-outer so the kernel can
    # read image row h of the whole tile with a single leading-dim ref index.
    xr = jnp.transpose(x.reshape(n, 32, 32), (1, 0, 2))          # (32, N, 32) f32

    weight_specs = [pl.BlockSpec(packed[k].shape, lambda i: (0, 0))
                    for k in _PARAM_ORDER]                       # VMEM-resident, fetched once

    out = pl.pallas_call(
        _lenet_kernel,
        out_shape=jax.ShapeDtypeStruct((n, 128), jnp.float32),
        grid=(n // tile,),
        in_specs=[pl.BlockSpec((32, tile, 32), lambda i: (0, i, 0))] + weight_specs,
        out_specs=pl.BlockSpec((tile, 128), lambda i: (i, 0)),
        compiler_params=pltpu.CompilerParams(
            dimension_semantics=("parallel",)),
    )(xr, *[packed[k] for k in _PARAM_ORDER])
    return out[:, :10]


# ------------------------- parameters & preprocessing ------------------------

def _uniform(key, shape, fan_in):
    bound = 1.0 / jnp.sqrt(jnp.float32(fan_in))
    return jax.random.uniform(key, shape, minval=-bound, maxval=bound,
                              dtype=jnp.float32)


def init_lenet_params(key):
    ks = jax.random.split(key, 10)
    p = {}
    p["w1"] = _uniform(ks[0], (6, 1, 5, 5), 1 * 5 * 5)
    p["b1"] = _uniform(ks[1], (6,), 1 * 5 * 5)
    p["w2"] = _uniform(ks[2], (16, 6, 5, 5), 6 * 5 * 5)
    p["b2"] = _uniform(ks[3], (16,), 6 * 5 * 5)
    p["w3"] = _uniform(ks[4], (120, 16, 5, 5), 16 * 5 * 5)
    p["b3"] = _uniform(ks[5], (120,), 16 * 5 * 5)
    p["wf1"] = _uniform(ks[6], (84, 120), 120)
    p["bf1"] = _uniform(ks[7], (84,), 120)
    p["wf2"] = _uniform(ks[8], (10, 84), 84)
    p["bf2"] = _uniform(ks[9], (10,), 84)
    return p


def pack_lenet_params(raw):
    """One-time weight preprocessing (banded conv matrices, pooling matrices,
    pre-transposed / zero-padded FC weights, replicated biases)."""
    f32, bf16 = jnp.float32, jnp.bfloat16
    w1, b1 = raw["w1"], raw["b1"]
    w2, b2 = raw["w2"], raw["b2"]
    w3, b3 = raw["w3"], raw["b3"]
    wf1, bf1 = raw["wf1"], raw["bf1"]
    wf2, bf2 = raw["wf2"], raw["bf2"]

    # conv1 banded matrix: row kh*32 + w, col co*28 + j, value w1[co,0,kh,w-j]
    g1 = jnp.zeros((5, 32, 6, 28), f32)
    for kh in range(5):
        acc = jnp.zeros((32, 6, 28), f32)
        for kw in range(5):
            shift = jnp.eye(32, 28, k=-kw, dtype=f32)          # [w, j] = 1 iff w == j + kw
            acc = acc + shift[:, None, :] * w1[:, 0, kh, kw][None, :, None]
        g1 = g1.at[kh].set(acc)
    g1 = g1.reshape(160, 168)

    # conv2 banded matrix: row kh*84 + ci*14 + w, col co*10 + j
    g2 = jnp.zeros((5, 6, 14, 16, 10), f32)
    for kh in range(5):
        acc = jnp.zeros((6, 14, 16, 10), f32)
        for kw in range(5):
            shift = jnp.eye(14, 10, k=-kw, dtype=f32)
            wt = w2[:, :, kh, kw].T                            # (6, 16)
            acc = acc + shift[None, :, None, :] * wt[:, None, :, None]
        g2 = g2.at[kh].set(acc)
    g2 = g2.reshape(420, 160)

    # 2x column-averaging matrices (block diagonal over channels), 0.25 = 1/4 window
    cp28 = jnp.zeros((28, 14), f32).at[jnp.arange(28), jnp.arange(28) // 2].set(0.25)
    cp10 = jnp.zeros((10, 5), f32).at[jnp.arange(10), jnp.arange(10) // 2].set(0.25)
    pool1 = jnp.kron(jnp.eye(6, dtype=f32), cp28)              # (168, 84)
    pool2 = jnp.kron(jnp.eye(16, dtype=f32), cp10)             # (160, 80)

    # conv3 as dense on the 400-flatten; lane order (pooled_row, channel, col)
    w3m = jnp.zeros((400, 128), f32).at[:, :120].set(
        w3.transpose(2, 1, 3, 0).reshape(400, 120))
    # fc1 / fc2, pre-transposed and zero-padded to lane-dense 128x128
    wf1m = jnp.zeros((128, 128), f32).at[:120, :84].set(wf1.T)
    wf2m = jnp.zeros((128, 128), f32).at[:84, :10].set(wf2.T)

    return {
        "g1": g1.astype(bf16),
        "b1": jnp.repeat(b1, 28)[None, :].astype(f32),          # (1, 168)
        "pool1": pool1.astype(bf16),
        "g2": g2.astype(bf16),
        "b2": jnp.repeat(b2, 10)[None, :].astype(f32),          # (1, 160)
        "pool2": pool2.astype(bf16),
        "w3": w3m.astype(bf16),
        "b3": jnp.zeros((1, 128), f32).at[0, :120].set(b3),
        "wf1": wf1m.astype(bf16),
        "bf1": jnp.zeros((1, 128), f32).at[0, :84].set(bf1),
        "wf2": wf2m.astype(bf16),
        "bf2": jnp.zeros((1, 128), f32).at[0, :10].set(bf2),
    }


# ------------------------- pure-JAX reference (f32) --------------------------

def lenet_reference(raw, x):
    def conv(t, w, b):
        y = jax.lax.conv_general_dilated(
            t, w, window_strides=(1, 1), padding="VALID",
            dimension_numbers=("NCHW", "OIHW", "NCHW"))
        return y + b[None, :, None, None]

    def pool(t):
        nn, cc, hh, ww = t.shape
        return t.reshape(nn, cc, hh // 2, 2, ww // 2, 2).mean(axis=(3, 5))

    relu = lambda t: jnp.maximum(t, 0.0)
    out = pool(relu(conv(x, raw["w1"], raw["b1"])))
    out = pool(relu(conv(out, raw["w2"], raw["b2"])))
    out = relu(conv(out, raw["w3"], raw["b3"]))
    out = out.reshape(-1, 120)
    out = relu(out @ raw["wf1"].T + raw["bf1"])
    out = out @ raw["wf2"].T + raw["bf2"]
    return out


# ----------------------------------- main ------------------------------------

if __name__ == "__main__":
    key = jax.random.PRNGKey(0)
    pkey, xkey = jax.random.split(key)
    raw = init_lenet_params(pkey)
    packed = pack_lenet_params(raw)

    # Small batch; 16 samples -> 2 grid steps of 8 to exercise batch tiling.
    x = jax.random.normal(xkey, (16, 1, 32, 32), dtype=jnp.float32)

    out = jax.jit(lenet_forward)(packed, x)
    out = jax.block_until_ready(out)
    assert out.shape == (16, 10) and out.dtype == jnp.float32

    # Loose tolerance: kernel uses bf16 matmul operands (f32 accumulation).
    ref = lenet_reference(raw, x)
    max_err = float(jnp.max(jnp.abs(out - ref)))
    assert jnp.allclose(out, ref, rtol=1e-1, atol=1e-1), f"max abs err {max_err}"

    print("KERNEL_OK")
</pallas_src>

<mosaic_0001>
module attributes {stable_mosaic.version = 11 : i64} {
  func.func @_lenet_kernel(%arg0: i32, %arg1: memref<32x8x32xf32, #tpu.memory_space<vmem>>, %arg2: memref<160x168xbf16, #tpu.memory_space<vmem>>, %arg3: memref<1x168xf32, #tpu.memory_space<vmem>>, %arg4: memref<168x84xbf16, #tpu.memory_space<vmem>>, %arg5: memref<420x160xbf16, #tpu.memory_space<vmem>>, %arg6: memref<1x160xf32, #tpu.memory_space<vmem>>, %arg7: memref<160x80xbf16, #tpu.memory_space<vmem>>, %arg8: memref<400x128xbf16, #tpu.memory_space<vmem>>, %arg9: memref<1x128xf32, #tpu.memory_space<vmem>>, %arg10: memref<128x128xbf16, #tpu.memory_space<vmem>>, %arg11: memref<1x128xf32, #tpu.memory_space<vmem>>, %arg12: memref<128x128xbf16, #tpu.memory_space<vmem>>, %arg13: memref<1x128xf32, #tpu.memory_space<vmem>>, %arg14: memref<8x128xf32, #tpu.memory_space<vmem>>) attributes {dimension_semantics = [#tpu.dimension_semantics<parallel>], iteration_bounds = array<i64: 2>, scalar_prefetch = 0 : i64, scratch_operands = 0 : i64, tpu.core_type = #tpu.core_type<tc>, window_params = [{transform_indices = @transform_0, window_bounds = array<i64: 32, 8, 32>}, {pipeline_mode = #tpu.pipeline_mode<synchronous>, transform_indices = @transform_1, window_bounds = array<i64: 160, 168>}, {pipeline_mode = #tpu.pipeline_mode<synchronous>, transform_indices = @transform_2, window_bounds = array<i64: 1, 168>}, {pipeline_mode = #tpu.pipeline_mode<synchronous>, transform_indices = @transform_3, window_bounds = array<i64: 168, 84>}, {pipeline_mode = #tpu.pipeline_mode<synchronous>, transform_indices = @transform_4, window_bounds = array<i64: 420, 160>}, {pipeline_mode = #tpu.pipeline_mode<synchronous>, transform_indices = @transform_5, window_bounds = array<i64: 1, 160>}, {pipeline_mode = #tpu.pipeline_mode<synchronous>, transform_indices = @transform_6, window_bounds = array<i64: 160, 80>}, {pipeline_mode = #tpu.pipeline_mode<synchronous>, transform_indices = @transform_7, window_bounds = array<i64: 400, 128>}, {pipeline_mode = #tpu.pipeline_mode<synchronous>, transform_indices = @transform_8, window_bounds = array<i64: 1, 128>}, {pipeline_mode = #tpu.pipeline_mode<synchronous>, transform_indices = @transform_9, window_bounds = array<i64: 128, 128>}, {pipeline_mode = #tpu.pipeline_mode<synchronous>, transform_indices = @transform_10, window_bounds = array<i64: 1, 128>}, {pipeline_mode = #tpu.pipeline_mode<synchronous>, transform_indices = @transform_11, window_bounds = array<i64: 128, 128>}, {pipeline_mode = #tpu.pipeline_mode<synchronous>, transform_indices = @transform_12, window_bounds = array<i64: 1, 128>}, {transform_indices = @transform_13, window_bounds = array<i64: 8, 128>}]} {
    %c0 = arith.constant 0 : index
    %c0_0 = arith.constant 0 : index
    %c0_1 = arith.constant 0 : index
    %0 = vector.load %arg1[%c0, %c0_0, %c0_1] : memref<32x8x32xf32, #tpu.memory_space<vmem>>, vector<1x8x32xf32>
    %1 = vector.shape_cast %0 : vector<1x8x32xf32> to vector<8x32xf32>
    %c1 = arith.constant 1 : index
    %c0_2 = arith.constant 0 : index
    %c0_3 = arith.constant 0 : index
    %2 = vector.load %arg1[%c1, %c0_2, %c0_3] : memref<32x8x32xf32, #tpu.memory_space<vmem>>, vector<1x8x32xf32>
    %3 = vector.shape_cast %2 : vector<1x8x32xf32> to vector<8x32xf32>
    %c2 = arith.constant 2 : index
    %c0_4 = arith.constant 0 : index
    %c0_5 = arith.constant 0 : index
    %4 = vector.load %arg1[%c2, %c0_4, %c0_5] : memref<32x8x32xf32, #tpu.memory_space<vmem>>, vector<1x8x32xf32>
    %5 = vector.shape_cast %4 : vector<1x8x32xf32> to vector<8x32xf32>
    %c3 = arith.constant 3 : index
    %c0_6 = arith.constant 0 : index
    %c0_7 = arith.constant 0 : index
    %6 = vector.load %arg1[%c3, %c0_6, %c0_7] : memref<32x8x32xf32, #tpu.memory_space<vmem>>, vector<1x8x32xf32>
    %7 = vector.shape_cast %6 : vector<1x8x32xf32> to vector<8x32xf32>
    %c4 = arith.constant 4 : index
    %c0_8 = arith.constant 0 : index
    %c0_9 = arith.constant 0 : index
    %8 = vector.load %arg1[%c4, %c0_8, %c0_9] : memref<32x8x32xf32, #tpu.memory_space<vmem>>, vector<1x8x32xf32>
    %9 = vector.shape_cast %8 : vector<1x8x32xf32> to vector<8x32xf32>
    %c5 = arith.constant 5 : index
    %c0_10 = arith.constant 0 : index
    %c0_11 = arith.constant 0 : index
    %10 = vector.load %arg1[%c5, %c0_10, %c0_11] : memref<32x8x32xf32, #tpu.memory_space<vmem>>, vector<1x8x32xf32>
    %11 = vector.shape_cast %10 : vector<1x8x32xf32> to vector<8x32xf32>
    %c6 = arith.constant 6 : index
    %c0_12 = arith.constant 0 : index
    %c0_13 = arith.constant 0 : index
    %12 = vector.load %arg1[%c6, %c0_12, %c0_13] : memref<32x8x32xf32, #tpu.memory_space<vmem>>, vector<1x8x32xf32>
    %13 = vector.shape_cast %12 : vector<1x8x32xf32> to vector<8x32xf32>
    %c7 = arith.constant 7 : index
    %c0_14 = arith.constant 0 : index
    %c0_15 = arith.constant 0 : index
    %14 = vector.load %arg1[%c7, %c0_14, %c0_15] : memref<32x8x32xf32, #tpu.memory_space<vmem>>, vector<1x8x32xf32>
    %15 = vector.shape_cast %14 : vector<1x8x32xf32> to vector<8x32xf32>
    %c8 = arith.constant 8 : index
    %c0_16 = arith.constant 0 : index
    %c0_17 = arith.constant 0 : index
    %16 = vector.load %arg1[%c8, %c0_16, %c0_17] : memref<32x8x32xf32, #tpu.memory_space<vmem>>, vector<1x8x32xf32>
    %17 = vector.shape_cast %16 : vector<1x8x32xf32> to vector<8x32xf32>
    %c9 = arith.constant 9 : index
    %c0_18 = arith.constant 0 : index
    %c0_19 = arith.constant 0 : index
    %18 = vector.load %arg1[%c9, %c0_18, %c0_19] : memref<32x8x32xf32, #tpu.memory_space<vmem>>, vector<1x8x32xf32>
    %19 = vector.shape_cast %18 : vector<1x8x32xf32> to vector<8x32xf32>
    %c10 = arith.constant 10 : index
    %c0_20 = arith.constant 0 : index
    %c0_21 = arith.constant 0 : index
    %20 = vector.load %arg1[%c10, %c0_20, %c0_21] : memref<32x8x32xf32, #tpu.memory_space<vmem>>, vector<1x8x32xf32>
    %21 = vector.shape_cast %20 : vector<1x8x32xf32> to vector<8x32xf32>
    %c11 = arith.constant 11 : index
    %c0_22 = arith.constant 0 : index
    %c0_23 = arith.constant 0 : index
    %22 = vector.load %arg1[%c11, %c0_22, %c0_23] : memref<32x8x32xf32, #tpu.memory_space<vmem>>, vector<1x8x32xf32>
    %23 = vector.shape_cast %22 : vector<1x8x32xf32> to vector<8x32xf32>
    %c12 = arith.constant 12 : index
    %c0_24 = arith.constant 0 : index
    %c0_25 = arith.constant 0 : index
    %24 = vector.load %arg1[%c12, %c0_24, %c0_25] : memref<32x8x32xf32, #tpu.memory_space<vmem>>, vector<1x8x32xf32>
    %25 = vector.shape_cast %24 : vector<1x8x32xf32> to vector<8x32xf32>
    %c13 = arith.constant 13 : index
    %c0_26 = arith.constant 0 : index
    %c0_27 = arith.constant 0 : index
    %26 = vector.load %arg1[%c13, %c0_26, %c0_27] : memref<32x8x32xf32, #tpu.memory_space<vmem>>, vector<1x8x32xf32>
    %27 = vector.shape_cast %26 : vector<1x8x32xf32> to vector<8x32xf32>
    %c14 = arith.constant 14 : index
    %c0_28 = arith.constant 0 : index
    %c0_29 = arith.constant 0 : index
    %28 = vector.load %arg1[%c14, %c0_28, %c0_29] : memref<32x8x32xf32, #tpu.memory_space<vmem>>, vector<1x8x32xf32>
    %29 = vector.shape_cast %28 : vector<1x8x32xf32> to vector<8x32xf32>
    %c15 = arith.constant 15 : index
    %c0_30 = arith.constant 0 : index
    %c0_31 = arith.constant 0 : index
    %30 = vector.load %arg1[%c15, %c0_30, %c0_31] : memref<32x8x32xf32, #tpu.memory_space<vmem>>, vector<1x8x32xf32>
    %31 = vector.shape_cast %30 : vector<1x8x32xf32> to vector<8x32xf32>
    %c16 = arith.constant 16 : index
    %c0_32 = arith.constant 0 : index
    %c0_33 = arith.constant 0 : index
    %32 = vector.load %arg1[%c16, %c0_32, %c0_33] : memref<32x8x32xf32, #tpu.memory_space<vmem>>, vector<1x8x32xf32>
    %33 = vector.shape_cast %32 : vector<1x8x32xf32> to vector<8x32xf32>
    %c17 = arith.constant 17 : index
    %c0_34 = arith.constant 0 : index
    %c0_35 = arith.constant 0 : index
    %34 = vector.load %arg1[%c17, %c0_34, %c0_35] : memref<32x8x32xf32, #tpu.memory_space<vmem>>, vector<1x8x32xf32>
    %35 = vector.shape_cast %34 : vector<1x8x32xf32> to vector<8x32xf32>
    %c18 = arith.constant 18 : index
    %c0_36 = arith.constant 0 : index
    %c0_37 = arith.constant 0 : index
    %36 = vector.load %arg1[%c18, %c0_36, %c0_37] : memref<32x8x32xf32, #tpu.memory_space<vmem>>, vector<1x8x32xf32>
    %37 = vector.shape_cast %36 : vector<1x8x32xf32> to vector<8x32xf32>
    %c19 = arith.constant 19 : index
    %c0_38 = arith.constant 0 : index
    %c0_39 = arith.constant 0 : index
    %38 = vector.load %arg1[%c19, %c0_38, %c0_39] : memref<32x8x32xf32, #tpu.memory_space<vmem>>, vector<1x8x32xf32>
    %39 = vector.shape_cast %38 : vector<1x8x32xf32> to vector<8x32xf32>
    %c20 = arith.constant 20 : index
    %c0_40 = arith.constant 0 : index
    %c0_41 = arith.constant 0 : index
    %40 = vector.load %arg1[%c20, %c0_40, %c0_41] : memref<32x8x32xf32, #tpu.memory_space<vmem>>, vector<1x8x32xf32>
    %41 = vector.shape_cast %40 : vector<1x8x32xf32> to vector<8x32xf32>
    %c21 = arith.constant 21 : index
    %c0_42 = arith.constant 0 : index
    %c0_43 = arith.constant 0 : index
    %42 = vector.load %arg1[%c21, %c0_42, %c0_43] : memref<32x8x32xf32, #tpu.memory_space<vmem>>, vector<1x8x32xf32>
    %43 = vector.shape_cast %42 : vector<1x8x32xf32> to vector<8x32xf32>
    %c22 = arith.constant 22 : index
    %c0_44 = arith.constant 0 : index
    %c0_45 = arith.constant 0 : index
    %44 = vector.load %arg1[%c22, %c0_44, %c0_45] : memref<32x8x32xf32, #tpu.memory_space<vmem>>, vector<1x8x32xf32>
    %45 = vector.shape_cast %44 : vector<1x8x32xf32> to vector<8x32xf32>
    %c23 = arith.constant 23 : index
    %c0_46 = arith.constant 0 : index
    %c0_47 = arith.constant 0 : index
    %46 = vector.load %arg1[%c23, %c0_46, %c0_47] : memref<32x8x32xf32, #tpu.memory_space<vmem>>, vector<1x8x32xf32>
    %47 = vector.shape_cast %46 : vector<1x8x32xf32> to vector<8x32xf32>
    %c24 = arith.constant 24 : index
    %c0_48 = arith.constant 0 : index
    %c0_49 = arith.constant 0 : index
    %48 = vector.load %arg1[%c24, %c0_48, %c0_49] : memref<32x8x32xf32, #tpu.memory_space<vmem>>, vector<1x8x32xf32>
    %49 = vector.shape_cast %48 : vector<1x8x32xf32> to vector<8x32xf32>
    %c25 = arith.constant 25 : index
    %c0_50 = arith.constant 0 : index
    %c0_51 = arith.constant 0 : index
    %50 = vector.load %arg1[%c25, %c0_50, %c0_51] : memref<32x8x32xf32, #tpu.memory_space<vmem>>, vector<1x8x32xf32>
    %51 = vector.shape_cast %50 : vector<1x8x32xf32> to vector<8x32xf32>
    %c26 = arith.constant 26 : index
    %c0_52 = arith.constant 0 : index
    %c0_53 = arith.constant 0 : index
    %52 = vector.load %arg1[%c26, %c0_52, %c0_53] : memref<32x8x32xf32, #tpu.memory_space<vmem>>, vector<1x8x32xf32>
    %53 = vector.shape_cast %52 : vector<1x8x32xf32> to vector<8x32xf32>
    %c27 = arith.constant 27 : index
    %c0_54 = arith.constant 0 : index
    %c0_55 = arith.constant 0 : index
    %54 = vector.load %arg1[%c27, %c0_54, %c0_55] : memref<32x8x32xf32, #tpu.memory_space<vmem>>, vector<1x8x32xf32>
    %55 = vector.shape_cast %54 : vector<1x8x32xf32> to vector<8x32xf32>
    %c28 = arith.constant 28 : index
    %c0_56 = arith.constant 0 : index
    %c0_57 = arith.constant 0 : index
    %56 = vector.load %arg1[%c28, %c0_56, %c0_57] : memref<32x8x32xf32, #tpu.memory_space<vmem>>, vector<1x8x32xf32>
    %57 = vector.shape_cast %56 : vector<1x8x32xf32> to vector<8x32xf32>
    %c29 = arith.constant 29 : index
    %c0_58 = arith.constant 0 : index
    %c0_59 = arith.constant 0 : index
    %58 = vector.load %arg1[%c29, %c0_58, %c0_59] : memref<32x8x32xf32, #tpu.memory_space<vmem>>, vector<1x8x32xf32>
    %59 = vector.shape_cast %58 : vector<1x8x32xf32> to vector<8x32xf32>
    %c30 = arith.constant 30 : index
    %c0_60 = arith.constant 0 : index
    %c0_61 = arith.constant 0 : index
    %60 = vector.load %arg1[%c30, %c0_60, %c0_61] : memref<32x8x32xf32, #tpu.memory_space<vmem>>, vector<1x8x32xf32>
    %61 = vector.shape_cast %60 : vector<1x8x32xf32> to vector<8x32xf32>
    %c31 = arith.constant 31 : index
    %c0_62 = arith.constant 0 : index
    %c0_63 = arith.constant 0 : index
    %62 = vector.load %arg1[%c31, %c0_62, %c0_63] : memref<32x8x32xf32, #tpu.memory_space<vmem>>, vector<1x8x32xf32>
    %63 = vector.shape_cast %62 : vector<1x8x32xf32> to vector<8x32xf32>
    %64 = tpu.concatenate %1, %3, %5, %7, %9 in 1 : vector<8x32xf32>, vector<8x32xf32>, vector<8x32xf32>, vector<8x32xf32>, vector<8x32xf32> -> vector<8x160xf32>
    %65 = tpu.concatenate %3, %5, %7, %9, %11 in 1 : vector<8x32xf32>, vector<8x32xf32>, vector<8x32xf32>, vector<8x32xf32>, vector<8x32xf32> -> vector<8x160xf32>
    %66 = tpu.concatenate %5, %7, %9, %11, %13 in 1 : vector<8x32xf32>, vector<8x32xf32>, vector<8x32xf32>, vector<8x32xf32>, vector<8x32xf32> -> vector<8x160xf32>
    %67 = tpu.concatenate %7, %9, %11, %13, %15 in 1 : vector<8x32xf32>, vector<8x32xf32>, vector<8x32xf32>, vector<8x32xf32>, vector<8x32xf32> -> vector<8x160xf32>
    %68 = tpu.concatenate %9, %11, %13, %15, %17 in 1 : vector<8x32xf32>, vector<8x32xf32>, vector<8x32xf32>, vector<8x32xf32>, vector<8x32xf32> -> vector<8x160xf32>
    %69 = tpu.concatenate %11, %13, %15, %17, %19 in 1 : vector<8x32xf32>, vector<8x32xf32>, vector<8x32xf32>, vector<8x32xf32>, vector<8x32xf32> -> vector<8x160xf32>
    %70 = tpu.concatenate %13, %15, %17, %19, %21 in 1 : vector<8x32xf32>, vector<8x32xf32>, vector<8x32xf32>, vector<8x32xf32>, vector<8x32xf32> -> vector<8x160xf32>
    %71 = tpu.concatenate %15, %17, %19, %21, %23 in 1 : vector<8x32xf32>, vector<8x32xf32>, vector<8x32xf32>, vector<8x32xf32>, vector<8x32xf32> -> vector<8x160xf32>
    %72 = tpu.concatenate %17, %19, %21, %23, %25 in 1 : vector<8x32xf32>, vector<8x32xf32>, vector<8x32xf32>, vector<8x32xf32>, vector<8x32xf32> -> vector<8x160xf32>
    %73 = tpu.concatenate %19, %21, %23, %25, %27 in 1 : vector<8x32xf32>, vector<8x32xf32>, vector<8x32xf32>, vector<8x32xf32>, vector<8x32xf32> -> vector<8x160xf32>
    %74 = tpu.concatenate %21, %23, %25, %27, %29 in 1 : vector<8x32xf32>, vector<8x32xf32>, vector<8x32xf32>, vector<8x32xf32>, vector<8x32xf32> -> vector<8x160xf32>
    %75 = tpu.concatenate %23, %25, %27, %29, %31 in 1 : vector<8x32xf32>, vector<8x32xf32>, vector<8x32xf32>, vector<8x32xf32>, vector<8x32xf32> -> vector<8x160xf32>
    %76 = tpu.concatenate %25, %27, %29, %31, %33 in 1 : vector<8x32xf32>, vector<8x32xf32>, vector<8x32xf32>, vector<8x32xf32>, vector<8x32xf32> -> vector<8x160xf32>
    %77 = tpu.concatenate %27, %29, %31, %33, %35 in 1 : vector<8x32xf32>, vector<8x32xf32>, vector<8x32xf32>, vector<8x32xf32>, vector<8x32xf32> -> vector<8x160xf32>
    %78 = tpu.concatenate %29, %31, %33, %35, %37 in 1 : vector<8x32xf32>, vector<8x32xf32>, vector<8x32xf32>, vector<8x32xf32>, vector<8x32xf32> -> vector<8x160xf32>
    %79 = tpu.concatenate %31, %33, %35, %37, %39 in 1 : vector<8x32xf32>, vector<8x32xf32>, vector<8x32xf32>, vector<8x32xf32>, vector<8x32xf32> -> vector<8x160xf32>
    %80 = tpu.concatenate %33, %35, %37, %39, %41 in 1 : vector<8x32xf32>, vector<8x32xf32>, vector<8x32xf32>, vector<8x32xf32>, vector<8x32xf32> -> vector<8x160xf32>
    %81 = tpu.concatenate %35, %37, %39, %41, %43 in 1 : vector<8x32xf32>, vector<8x32xf32>, vector<8x32xf32>, vector<8x32xf32>, vector<8x32xf32> -> vector<8x160xf32>
    %82 = tpu.concatenate %37, %39, %41, %43, %45 in 1 : vector<8x32xf32>, vector<8x32xf32>, vector<8x32xf32>, vector<8x32xf32>, vector<8x32xf32> -> vector<8x160xf32>
    %83 = tpu.concatenate %39, %41, %43, %45, %47 in 1 : vector<8x32xf32>, vector<8x32xf32>, vector<8x32xf32>, vector<8x32xf32>, vector<8x32xf32> -> vector<8x160xf32>
    %84 = tpu.concatenate %41, %43, %45, %47, %49 in 1 : vector<8x32xf32>, vector<8x32xf32>, vector<8x32xf32>, vector<8x32xf32>, vector<8x32xf32> -> vector<8x160xf32>
    %85 = tpu.concatenate %43, %45, %47, %49, %51 in 1 : vector<8x32xf32>, vector<8x32xf32>, vector<8x32xf32>, vector<8x32xf32>, vector<8x32xf32> -> vector<8x160xf32>
    %86 = tpu.concatenate %45, %47, %49, %51, %53 in 1 : vector<8x32xf32>, vector<8x32xf32>, vector<8x32xf32>, vector<8x32xf32>, vector<8x32xf32> -> vector<8x160xf32>
    %87 = tpu.concatenate %47, %49, %51, %53, %55 in 1 : vector<8x32xf32>, vector<8x32xf32>, vector<8x32xf32>, vector<8x32xf32>, vector<8x32xf32> -> vector<8x160xf32>
    %88 = tpu.concatenate %49, %51, %53, %55, %57 in 1 : vector<8x32xf32>, vector<8x32xf32>, vector<8x32xf32>, vector<8x32xf32>, vector<8x32xf32> -> vector<8x160xf32>
    %89 = tpu.concatenate %51, %53, %55, %57, %59 in 1 : vector<8x32xf32>, vector<8x32xf32>, vector<8x32xf32>, vector<8x32xf32>, vector<8x32xf32> -> vector<8x160xf32>
    %90 = tpu.concatenate %53, %55, %57, %59, %61 in 1 : vector<8x32xf32>, vector<8x32xf32>, vector<8x32xf32>, vector<8x32xf32>, vector<8x32xf32> -> vector<8x160xf32>
    %91 = tpu.concatenate %55, %57, %59, %61, %63 in 1 : vector<8x32xf32>, vector<8x32xf32>, vector<8x32xf32>, vector<8x32xf32>, vector<8x32xf32> -> vector<8x160xf32>
    %92 = tpu.concatenate %64, %65, %66, %67, %68, %69, %70, %71, %72, %73, %74, %75, %76, %77, %78, %79 in 0 : vector<8x160xf32>, vector<8x160xf32>, vector<8x160xf32>, vector<8x160xf32>, vector<8x160xf32>, vector<8x160xf32>, vector<8x160xf32>, vector<8x160xf32>, vector<8x160xf32>, vector<8x160xf32>, vector<8x160xf32>, vector<8x160xf32>, vector<8x160xf32>, vector<8x160xf32>, vector<8x160xf32>, vector<8x160xf32> -> vector<128x160xf32>
    %93 = tpu.concatenate %80, %81, %82, %83, %84, %85, %86, %87, %88, %89, %90, %91 in 0 : vector<8x160xf32>, vector<8x160xf32>, vector<8x160xf32>, vector<8x160xf32>, vector<8x160xf32>, vector<8x160xf32>, vector<8x160xf32>, vector<8x160xf32>, vector<8x160xf32>, vector<8x160xf32>, vector<8x160xf32>, vector<8x160xf32> -> vector<96x160xf32>
    %94 = tpu.concatenate %92, %93 in 0 : vector<128x160xf32>, vector<96x160xf32> -> vector<224x160xf32>
    %95 = arith.truncf %94 : vector<224x160xf32> to vector<224x160xbf16>
    %c0_64 = arith.constant 0 : index
    %c0_65 = arith.constant 0 : index
    %96 = vector.load %arg2[%c0_64, %c0_65] : memref<160x168xbf16, #tpu.memory_space<vmem>>, vector<160x168xbf16>
    %cst = arith.constant dense<0.000000e+00> : vector<224x168xf32>
    %97 = tpu.matmul %95, %96, %cst {dimension_numbers = #tpu.dot_dimension_numbers<[1], [0], [0], [1], [0, 0, 1, 1], [], []>} : vector<224x160xbf16>, vector<160x168xbf16>, vector<224x168xf32> -> vector<224x168xf32>
    %c0_66 = arith.constant 0 : index
    %c0_67 = arith.constant 0 : index
    %98 = vector.load %arg3[%c0_66, %c0_67] : memref<1x168xf32, #tpu.memory_space<vmem>>, vector<1x168xf32>
    %99 = vector.broadcast %98 : vector<1x168xf32> to vector<224x168xf32>
    %100 = arith.addf %97, %99 : vector<224x168xf32>
    %cst_68 = arith.constant 0.000000e+00 : f32
    %101 = vector.broadcast %cst_68 : f32 to vector<224x168xf32>
    %102 = arith.maximumf %100, %101 : vector<224x168xf32>
    %103 = vector.extract_strided_slice %102 {offsets = [0, 0], sizes = [8, 168], strides = [1, 1]} : vector<224x168xf32> to vector<8x168xf32>
    %104 = vector.extract_strided_slice %102 {offsets = [8, 0], sizes = [8, 168], strides = [1, 1]} : vector<224x168xf32> to vector<8x168xf32>
    %105 = arith.addf %103, %104 : vector<8x168xf32>
    %106 = vector.extract_strided_slice %102 {offsets = [16, 0], sizes = [8, 168], strides = [1, 1]} : vector<224x168xf32> to vector<8x168xf32>
    %107 = vector.extract_strided_slice %102 {offsets = [24, 0], sizes = [8, 168], strides = [1, 1]} : vector<224x168xf32> to vector<8x168xf32>
    %108 = arith.addf %106, %107 : vector<8x168xf32>
    %109 = vector.extract_strided_slice %102 {offsets = [32, 0], sizes = [8, 168], strides = [1, 1]} : vector<224x168xf32> to vector<8x168xf32>
    %110 = vector.extract_strided_slice %102 {offsets = [40, 0], sizes = [8, 168], strides = [1, 1]} : vector<224x168xf32> to vector<8x168xf32>
    %111 = arith.addf %109, %110 : vector<8x168xf32>
    %112 = vector.extract_strided_slice %102 {offsets = [48, 0], sizes = [8, 168], strides = [1, 1]} : vector<224x168xf32> to vector<8x168xf32>
    %113 = vector.extract_strided_slice %102 {offsets = [56, 0], sizes = [8, 168], strides = [1, 1]} : vector<224x168xf32> to vector<8x168xf32>
    %114 = arith.addf %112, %113 : vector<8x168xf32>
    %115 = vector.extract_strided_slice %102 {offsets = [64, 0], sizes = [8, 168], strides = [1, 1]} : vector<224x168xf32> to vector<8x168xf32>
    %116 = vector.extract_strided_slice %102 {offsets = [72, 0], sizes = [8, 168], strides = [1, 1]} : vector<224x168xf32> to vector<8x168xf32>
    %117 = arith.addf %115, %116 : vector<8x168xf32>
    %118 = vector.extract_strided_slice %102 {offsets = [80, 0], sizes = [8, 168], strides = [1, 1]} : vector<224x168xf32> to vector<8x168xf32>
    %119 = vector.extract_strided_slice %102 {offsets = [88, 0], sizes = [8, 168], strides = [1, 1]} : vector<224x168xf32> to vector<8x168xf32>
    %120 = arith.addf %118, %119 : vector<8x168xf32>
    %121 = vector.extract_strided_slice %102 {offsets = [96, 0], sizes = [8, 168], strides = [1, 1]} : vector<224x168xf32> to vector<8x168xf32>
    %122 = vector.extract_strided_slice %102 {offsets = [104, 0], sizes = [8, 168], strides = [1, 1]} : vector<224x168xf32> to vector<8x168xf32>
    %123 = arith.addf %121, %122 : vector<8x168xf32>
    %124 = vector.extract_strided_slice %102 {offsets = [112, 0], sizes = [8, 168], strides = [1, 1]} : vector<224x168xf32> to vector<8x168xf32>
    %125 = vector.extract_strided_slice %102 {offsets = [120, 0], sizes = [8, 168], strides = [1, 1]} : vector<224x168xf32> to vector<8x168xf32>
    %126 = arith.addf %124, %125 : vector<8x168xf32>
    %127 = vector.extract_strided_slice %102 {offsets = [128, 0], sizes = [8, 168], strides = [1, 1]} : vector<224x168xf32> to vector<8x168xf32>
    %128 = vector.extract_strided_slice %102 {offsets = [136, 0], sizes = [8, 168], strides = [1, 1]} : vector<224x168xf32> to vector<8x168xf32>
    %129 = arith.addf %127, %128 : vector<8x168xf32>
    %130 = vector.extract_strided_slice %102 {offsets = [144, 0], sizes = [8, 168], strides = [1, 1]} : vector<224x168xf32> to vector<8x168xf32>
    %131 = vector.extract_strided_slice %102 {offsets = [152, 0], sizes = [8, 168], strides = [1, 1]} : vector<224x168xf32> to vector<8x168xf32>
    %132 = arith.addf %130, %131 : vector<8x168xf32>
    %133 = vector.extract_strided_slice %102 {offsets = [160, 0], sizes = [8, 168], strides = [1, 1]} : vector<224x168xf32> to vector<8x168xf32>
    %134 = vector.extract_strided_slice %102 {offsets = [168, 0], sizes = [8, 168], strides = [1, 1]} : vector<224x168xf32> to vector<8x168xf32>
    %135 = arith.addf %133, %134 : vector<8x168xf32>
    %136 = vector.extract_strided_slice %102 {offsets = [176, 0], sizes = [8, 168], strides = [1, 1]} : vector<224x168xf32> to vector<8x168xf32>
    %137 = vector.extract_strided_slice %102 {offsets = [184, 0], sizes = [8, 168], strides = [1, 1]} : vector<224x168xf32> to vector<8x168xf32>
    %138 = arith.addf %136, %137 : vector<8x168xf32>
    %139 = vector.extract_strided_slice %102 {offsets = [192, 0], sizes = [8, 168], strides = [1, 1]} : vector<224x168xf32> to vector<8x168xf32>
    %140 = vector.extract_strided_slice %102 {offsets = [200, 0], sizes = [8, 168], strides = [1, 1]} : vector<224x168xf32> to vector<8x168xf32>
    %141 = arith.addf %139, %140 : vector<8x168xf32>
    %142 = vector.extract_strided_slice %102 {offsets = [208, 0], sizes = [8, 168], strides = [1, 1]} : vector<224x168xf32> to vector<8x168xf32>
    %143 = vector.extract_strided_slice %102 {offsets = [216, 0], sizes = [8, 168], strides = [1, 1]} : vector<224x168xf32> to vector<8x168xf32>
    %144 = arith.addf %142, %143 : vector<8x168xf32>
    %145 = tpu.concatenate %105, %108, %111, %114, %117, %120, %123, %126, %129, %132, %135, %138, %141, %144 in 0 : vector<8x168xf32>, vector<8x168xf32>, vector<8x168xf32>, vector<8x168xf32>, vector<8x168xf32>, vector<8x168xf32>, vector<8x168xf32>, vector<8x168xf32>, vector<8x168xf32>, vector<8x168xf32>, vector<8x168xf32>, vector<8x168xf32>, vector<8x168xf32>, vector<8x168xf32> -> vector<112x168xf32>
    %146 = arith.truncf %145 : vector<112x168xf32> to vector<112x168xbf16>
    %c0_69 = arith.constant 0 : index
    %c0_70 = arith.constant 0 : index
    %147 = vector.load %arg4[%c0_69, %c0_70] : memref<168x84xbf16, #tpu.memory_space<vmem>>, vector<168x84xbf16>
    %cst_71 = arith.constant dense<0.000000e+00> : vector<112x84xf32>
    %148 = tpu.matmul %146, %147, %cst_71 {dimension_numbers = #tpu.dot_dimension_numbers<[1], [0], [0], [1], [0, 0, 1, 1], [], []>} : vector<112x168xbf16>, vector<168x84xbf16>, vector<112x84xf32> -> vector<112x84xf32>
    %149 = vector.extract_strided_slice %148 {offsets = [0, 0], sizes = [8, 84], strides = [1, 1]} : vector<112x84xf32> to vector<8x84xf32>
    %150 = vector.extract_strided_slice %148 {offsets = [8, 0], sizes = [8, 84], strides = [1, 1]} : vector<112x84xf32> to vector<8x84xf32>
    %151 = vector.extract_strided_slice %148 {offsets = [16, 0], sizes = [8, 84], strides = [1, 1]} : vector<112x84xf32> to vector<8x84xf32>
    %152 = vector.extract_strided_slice %148 {offsets = [24, 0], sizes = [8, 84], strides = [1, 1]} : vector<112x84xf32> to vector<8x84xf32>
    %153 = vector.extract_strided_slice %148 {offsets = [32, 0], sizes = [8, 84], strides = [1, 1]} : vector<112x84xf32> to vector<8x84xf32>
    %154 = vector.extract_strided_slice %148 {offsets = [40, 0], sizes = [8, 84], strides = [1, 1]} : vector<112x84xf32> to vector<8x84xf32>
    %155 = vector.extract_strided_slice %148 {offsets = [48, 0], sizes = [8, 84], strides = [1, 1]} : vector<112x84xf32> to vector<8x84xf32>
    %156 = vector.extract_strided_slice %148 {offsets = [56, 0], sizes = [8, 84], strides = [1, 1]} : vector<112x84xf32> to vector<8x84xf32>
    %157 = vector.extract_strided_slice %148 {offsets = [64, 0], sizes = [8, 84], strides = [1, 1]} : vector<112x84xf32> to vector<8x84xf32>
    %158 = vector.extract_strided_slice %148 {offsets = [72, 0], sizes = [8, 84], strides = [1, 1]} : vector<112x84xf32> to vector<8x84xf32>
    %159 = vector.extract_strided_slice %148 {offsets = [80, 0], sizes = [8, 84], strides = [1, 1]} : vector<112x84xf32> to vector<8x84xf32>
    %160 = vector.extract_strided_slice %148 {offsets = [88, 0], sizes = [8, 84], strides = [1, 1]} : vector<112x84xf32> to vector<8x84xf32>
    %161 = vector.extract_strided_slice %148 {offsets = [96, 0], sizes = [8, 84], strides = [1, 1]} : vector<112x84xf32> to vector<8x84xf32>
    %162 = vector.extract_strided_slice %148 {offsets = [104, 0], sizes = [8, 84], strides = [1, 1]} : vector<112x84xf32> to vector<8x84xf32>
    %163 = tpu.concatenate %149, %150, %151, %152, %153 in 1 : vector<8x84xf32>, vector<8x84xf32>, vector<8x84xf32>, vector<8x84xf32>, vector<8x84xf32> -> vector<8x420xf32>
    %164 = tpu.concatenate %150, %151, %152, %153, %154 in 1 : vector<8x84xf32>, vector<8x84xf32>, vector<8x84xf32>, vector<8x84xf32>, vector<8x84xf32> -> vector<8x420xf32>
    %165 = tpu.concatenate %151, %152, %153, %154, %155 in 1 : vector<8x84xf32>, vector<8x84xf32>, vector<8x84xf32>, vector<8x84xf32>, vector<8x84xf32> -> vector<8x420xf32>
    %166 = tpu.concatenate %152, %153, %154, %155, %156 in 1 : vector<8x84xf32>, vector<8x84xf32>, vector<8x84xf32>, vector<8x84xf32>, vector<8x84xf32> -> vector<8x420xf32>
    %167 = tpu.concatenate %153, %154, %155, %156, %157 in 1 : vector<8x84xf32>, vector<8x84xf32>, vector<8x84xf32>, vector<8x84xf32>, vector<8x84xf32> -> vector<8x420xf32>
    %168 = tpu.concatenate %154, %155, %156, %157, %158 in 1 : vector<8x84xf32>, vector<8x84xf32>, vector<8x84xf32>, vector<8x84xf32>, vector<8x84xf32> -> vector<8x420xf32>
    %169 = tpu.concatenate %155, %156, %157, %158, %159 in 1 : vector<8x84xf32>, vector<8x84xf32>, vector<8x84xf32>, vector<8x84xf32>, vector<8x84xf32> -> vector<8x420xf32>
    %170 = tpu.concatenate %156, %157, %158, %159, %160 in 1 : vector<8x84xf32>, vector<8x84xf32>, vector<8x84xf32>, vector<8x84xf32>, vector<8x84xf32> -> vector<8x420xf32>
    %171 = tpu.concatenate %157, %158, %159, %160, %161 in 1 : vector<8x84xf32>, vector<8x84xf32>, vector<8x84xf32>, vector<8x84xf32>, vector<8x84xf32> -> vector<8x420xf32>
    %172 = tpu.concatenate %158, %159, %160, %161, %162 in 1 : vector<8x84xf32>, vector<8x84xf32>, vector<8x84xf32>, vector<8x84xf32>, vector<8x84xf32> -> vector<8x420xf32>
    %173 = tpu.concatenate %163, %164, %165, %166, %167, %168, %169, %170, %171, %172 in 0 : vector<8x420xf32>, vector<8x420xf32>, vector<8x420xf32>, vector<8x420xf32>, vector<8x420xf32>, vector<8x420xf32>, vector<8x420xf32>, vector<8x420xf32>, vector<8x420xf32>, vector<8x420xf32> -> vector<80x420xf32>
    %174 = arith.truncf %173 : vector<80x420xf32> to vector<80x420xbf16>
    %c0_72 = arith.constant 0 : index
    %c0_73 = arith.constant 0 : index
    %175 = vector.load %arg5[%c0_72, %c0_73] : memref<420x160xbf16, #tpu.memory_space<vmem>>, vector<420x160xbf16>
    %cst_74 = arith.constant dense<0.000000e+00> : vector<80x160xf32>
    %176 = tpu.matmul %174, %175, %cst_74 {dimension_numbers = #tpu.dot_dimension_numbers<[1], [0], [0], [1], [0, 0, 1, 1], [], []>} : vector<80x420xbf16>, vector<420x160xbf16>, vector<80x160xf32> -> vector<80x160xf32>
    %c0_75 = arith.constant 0 : index
    %c0_76 = arith.constant 0 : index
    %177 = vector.load %arg6[%c0_75, %c0_76] : memref<1x160xf32, #tpu.memory_space<vmem>>, vector<1x160xf32>
    %178 = vector.broadcast %177 : vector<1x160xf32> to vector<80x160xf32>
    %179 = arith.addf %176, %178 : vector<80x160xf32>
    %cst_77 = arith.constant 0.000000e+00 : f32
    %180 = vector.broadcast %cst_77 : f32 to vector<80x160xf32>
    %181 = arith.maximumf %179, %180 : vector<80x160xf32>
    %182 = vector.extract_strided_slice %181 {offsets = [0, 0], sizes = [8, 160], strides = [1, 1]} : vector<80x160xf32> to vector<8x160xf32>
    %183 = vector.extract_strided_slice %181 {offsets = [8, 0], sizes = [8, 160], strides = [1, 1]} : vector<80x160xf32> to vector<8x160xf32>
    %184 = arith.addf %182, %183 : vector<8x160xf32>
    %185 = vector.extract_strided_slice %181 {offsets = [16, 0], sizes = [8, 160], strides = [1, 1]} : vector<80x160xf32> to vector<8x160xf32>
    %186 = vector.extract_strided_slice %181 {offsets = [24, 0], sizes = [8, 160], strides = [1, 1]} : vector<80x160xf32> to vector<8x160xf32>
    %187 = arith.addf %185, %186 : vector<8x160xf32>
    %188 = vector.extract_strided_slice %181 {offsets = [32, 0], sizes = [8, 160], strides = [1, 1]} : vector<80x160xf32> to vector<8x160xf32>
    %189 = vector.extract_strided_slice %181 {offsets = [40, 0], sizes = [8, 160], strides = [1, 1]} : vector<80x160xf32> to vector<8x160xf32>
    %190 = arith.addf %188, %189 : vector<8x160xf32>
    %191 = vector.extract_strided_slice %181 {offsets = [48, 0], sizes = [8, 160], strides = [1, 1]} : vector<80x160xf32> to vector<8x160xf32>
    %192 = vector.extract_strided_slice %181 {offsets = [56, 0], sizes = [8, 160], strides = [1, 1]} : vector<80x160xf32> to vector<8x160xf32>
    %193 = arith.addf %191, %192 : vector<8x160xf32>
    %194 = vector.extract_strided_slice %181 {offsets = [64, 0], sizes = [8, 160], strides = [1, 1]} : vector<80x160xf32> to vector<8x160xf32>
    %195 = vector.extract_strided_slice %181 {offsets = [72, 0], sizes = [8, 160], strides = [1, 1]} : vector<80x160xf32> to vector<8x160xf32>
    %196 = arith.addf %194, %195 : vector<8x160xf32>
    %197 = tpu.concatenate %184, %187, %190, %193, %196 in 0 : vector<8x160xf32>, vector<8x160xf32>, vector<8x160xf32>, vector<8x160xf32>, vector<8x160xf32> -> vector<40x160xf32>
    %198 = arith.truncf %197 : vector<40x160xf32> to vector<40x160xbf16>
    %c0_78 = arith.constant 0 : index
    %c0_79 = arith.constant 0 : index
    %199 = vector.load %arg7[%c0_78, %c0_79] : memref<160x80xbf16, #tpu.memory_space<vmem>>, vector<160x80xbf16>
    %cst_80 = arith.constant dense<0.000000e+00> : vector<40x80xf32>
    %200 = tpu.matmul %198, %199, %cst_80 {dimension_numbers = #tpu.dot_dimension_numbers<[1], [0], [0], [1], [0, 0, 1, 1], [], []>} : vector<40x160xbf16>, vector<160x80xbf16>, vector<40x80xf32> -> vector<40x80xf32>
    %201 = vector.extract_strided_slice %200 {offsets = [0, 0], sizes = [8, 80], strides = [1, 1]} : vector<40x80xf32> to vector<8x80xf32>
    %202 = vector.extract_strided_slice %200 {offsets = [8, 0], sizes = [8, 80], strides = [1, 1]} : vector<40x80xf32> to vector<8x80xf32>
    %203 = vector.extract_strided_slice %200 {offsets = [16, 0], sizes = [8, 80], strides = [1, 1]} : vector<40x80xf32> to vector<8x80xf32>
    %204 = vector.extract_strided_slice %200 {offsets = [24, 0], sizes = [8, 80], strides = [1, 1]} : vector<40x80xf32> to vector<8x80xf32>
    %205 = vector.extract_strided_slice %200 {offsets = [32, 0], sizes = [8, 80], strides = [1, 1]} : vector<40x80xf32> to vector<8x80xf32>
    %206 = tpu.concatenate %201, %202, %203, %204, %205 in 1 : vector<8x80xf32>, vector<8x80xf32>, vector<8x80xf32>, vector<8x80xf32>, vector<8x80xf32> -> vector<8x400xf32>
    %207 = arith.truncf %206 : vector<8x400xf32> to vector<8x400xbf16>
    %c0_81 = arith.constant 0 : index
    %c0_82 = arith.constant 0 : index
    %208 = vector.load %arg8[%c0_81, %c0_82] : memref<400x128xbf16, #tpu.memory_space<vmem>>, vector<400x128xbf16>
    %cst_83 = arith.constant dense<0.000000e+00> : vector<8x128xf32>
    %209 = tpu.matmul %207, %208, %cst_83 {dimension_numbers = #tpu.dot_dimension_numbers<[1], [0], [0], [1], [0, 0, 1, 1], [], []>} : vector<8x400xbf16>, vector<400x128xbf16>, vector<8x128xf32> -> vector<8x128xf32>
    %c0_84 = arith.constant 0 : index
    %c0_85 = arith.constant 0 : index
    %210 = vector.load %arg9[%c0_84, %c0_85] : memref<1x128xf32, #tpu.memory_space<vmem>>, vector<1x128xf32>
    %211 = vector.broadcast %210 : vector<1x128xf32> to vector<8x128xf32>
    %212 = arith.addf %209, %211 : vector<8x128xf32>
    %cst_86 = arith.constant 0.000000e+00 : f32
    %213 = vector.broadcast %cst_86 : f32 to vector<8x128xf32>
    %214 = arith.maximumf %212, %213 : vector<8x128xf32>
    %215 = arith.truncf %214 : vector<8x128xf32> to vector<8x128xbf16>
    %c0_87 = arith.constant 0 : index
    %c0_88 = arith.constant 0 : index
    %216 = vector.load %arg10[%c0_87, %c0_88] : memref<128x128xbf16, #tpu.memory_space<vmem>>, vector<128x128xbf16>
    %cst_89 = arith.constant dense<0.000000e+00> : vector<8x128xf32>
    %217 = tpu.matmul %215, %216, %cst_89 {dimension_numbers = #tpu.dot_dimension_numbers<[1], [0], [0], [1], [0, 0, 1, 1], [], []>} : vector<8x128xbf16>, vector<128x128xbf16>, vector<8x128xf32> -> vector<8x128xf32>
    %c0_90 = arith.constant 0 : index
    %c0_91 = arith.constant 0 : index
    %218 = vector.load %arg11[%c0_90, %c0_91] : memref<1x128xf32, #tpu.memory_space<vmem>>, vector<1x128xf32>
    %219 = vector.broadcast %218 : vector<1x128xf32> to vector<8x128xf32>
    %220 = arith.addf %217, %219 : vector<8x128xf32>
    %cst_92 = arith.constant 0.000000e+00 : f32
    %221 = vector.broadcast %cst_92 : f32 to vector<8x128xf32>
    %222 = arith.maximumf %220, %221 : vector<8x128xf32>
    %223 = arith.truncf %222 : vector<8x128xf32> to vector<8x128xbf16>
    %c0_93 = arith.constant 0 : index
    %c0_94 = arith.constant 0 : index
    %224 = vector.load %arg12[%c0_93, %c0_94] : memref<128x128xbf16, #tpu.memory_space<vmem>>, vector<128x128xbf16>
    %cst_95 = arith.constant dense<0.000000e+00> : vector<8x128xf32>
    %225 = tpu.matmul %223, %224, %cst_95 {dimension_numbers = #tpu.dot_dimension_numbers<[1], [0], [0], [1], [0, 0, 1, 1], [], []>} : vector<8x128xbf16>, vector<128x128xbf16>, vector<8x128xf32> -> vector<8x128xf32>
    %c0_96 = arith.constant 0 : index
    %c0_97 = arith.constant 0 : index
    %226 = vector.load %arg13[%c0_96, %c0_97] : memref<1x128xf32, #tpu.memory_space<vmem>>, vector<1x128xf32>
    %227 = vector.broadcast %226 : vector<1x128xf32> to vector<8x128xf32>
    %228 = arith.addf %225, %227 : vector<8x128xf32>
    %c0_98 = arith.constant 0 : index
    %c0_99 = arith.constant 0 : index
    %229 = vector.load %arg14[%c0_98, %c0_99] : memref<8x128xf32, #tpu.memory_space<vmem>>, vector<8x128xf32>
    tpu.vector_store %arg14[%c0_98, %c0_99], %228 {strides = array<i32>} : memref<8x128xf32, #tpu.memory_space<vmem>>, vector<8x128xf32>,
    return
  }
  func.func @transform_0(%arg0: i32) -> (i32, i32, i32) {
    %c0_i32 = arith.constant 0 : i32
    %c0_i32_0 = arith.constant 0 : i32
    %c0_i32_1 = arith.constant 0 : i32
    return %c0_i32, %arg0, %c0_i32_0 : i32, i32, i32
  }
  func.func @transform_1(%arg0: i32) -> (i32, i32) {
    %c0_i32 = arith.constant 0 : i32
    %c0_i32_0 = arith.constant 0 : i32
    %c0_i32_1 = arith.constant 0 : i32
    return %c0_i32, %c0_i32_0 : i32, i32
  }
  func.func @transform_2(%arg0: i32) -> (i32, i32) {
    %c0_i32 = arith.constant 0 : i32
    %c0_i32_0 = arith.constant 0 : i32
    %c0_i32_1 = arith.constant 0 : i32
    return %c0_i32, %c0_i32_0 : i32, i32
  }
  func.func @transform_3(%arg0: i32) -> (i32, i32) {
    %c0_i32 = arith.constant 0 : i32
    %c0_i32_0 = arith.constant 0 : i32
    %c0_i32_1 = arith.constant 0 : i32
    return %c0_i32, %c0_i32_0 : i32, i32
  }
  func.func @transform_4(%arg0: i32) -> (i32, i32) {
    %c0_i32 = arith.constant 0 : i32
    %c0_i32_0 = arith.constant 0 : i32
    %c0_i32_1 = arith.constant 0 : i32
    return %c0_i32, %c0_i32_0 : i32, i32
  }
  func.func @transform_5(%arg0: i32) -> (i32, i32) {
    %c0_i32 = arith.constant 0 : i32
    %c0_i32_0 = arith.constant 0 : i32
    %c0_i32_1 = arith.constant 0 : i32
    return %c0_i32, %c0_i32_0 : i32, i32
  }
  func.func @transform_6(%arg0: i32) -> (i32, i32) {
    %c0_i32 = arith.constant 0 : i32
    %c0_i32_0 = arith.constant 0 : i32
    %c0_i32_1 = arith.constant 0 : i32
    return %c0_i32, %c0_i32_0 : i32, i32
  }
  func.func @transform_7(%arg0: i32) -> (i32, i32) {
    %c0_i32 = arith.constant 0 : i32
    %c0_i32_0 = arith.constant 0 : i32
    %c0_i32_1 = arith.constant 0 : i32
    return %c0_i32, %c0_i32_0 : i32, i32
  }
  func.func @transform_8(%arg0: i32) -> (i32, i32) {
    %c0_i32 = arith.constant 0 : i32
    %c0_i32_0 = arith.constant 0 : i32
    %c0_i32_1 = arith.constant 0 : i32
    return %c0_i32, %c0_i32_0 : i32, i32
  }
  func.func @transform_9(%arg0: i32) -> (i32, i32) {
    %c0_i32 = arith.constant 0 : i32
    %c0_i32_0 = arith.constant 0 : i32
    %c0_i32_1 = arith.constant 0 : i32
    return %c0_i32, %c0_i32_0 : i32, i32
  }
  func.func @transform_10(%arg0: i32) -> (i32, i32) {
    %c0_i32 = arith.constant 0 : i32
    %c0_i32_0 = arith.constant 0 : i32
    %c0_i32_1 = arith.constant 0 : i32
    return %c0_i32, %c0_i32_0 : i32, i32
  }
  func.func @transform_11(%arg0: i32) -> (i32, i32) {
    %c0_i32 = arith.constant 0 : i32
    %c0_i32_0 = arith.constant 0 : i32
    %c0_i32_1 = arith.constant 0 : i32
    return %c0_i32, %c0_i32_0 : i32, i32
  }
  func.func @transform_12(%arg0: i32) -> (i32, i32) {
    %c0_i32 = arith.constant 0 : i32
    %c0_i32_0 = arith.constant 0 : i32
    %c0_i32_1 = arith.constant 0 : i32
    return %c0_i32, %c0_i32_0 : i32, i32
  }
  func.func @transform_13(%arg0: i32) -> (i32, i32) {
    %c0_i32 = arith.constant 0 : i32
    %c0_i32_0 = arith.constant 0 : i32
    return %arg0, %c0_i32 : i32, i32
  }
}

</mosaic_0001>

<bundles_post_ra>
// kernel: lenet_forward.1
= control target key start
LH: loop header
LB: loop body
LE: loop exit
PB: predicated region body
PF: predicated region fallthrough
CT: control target
= control target key end

     0   :  { %s5414_s0 = inlined_call_operand.vmem [shape: f32[32,16,32], index: 0, kind: input, shape index: {}]   ;;  %s5415_s1 = inlined_call_operand.vmem [shape: bf16[160,168], index: 1, kind: input, shape index: {}]   ;;  %s5416_s2 = inlined_call_operand.vmem [shape: f32[1,168], index: 2, kind: input, shape index: {}]   ;;  %s5417_s3 = inlined_call_operand.vmem [shape: bf16[168,84], index: 3, kind: input, shape index: {}]   ;;  %s5418_s4 = inlined_call_operand.vmem [shape: bf16[420,160], index: 4, kind: input, shape index: {}]   ;;  %s5419_s5 = inlined_call_operand.vmem [shape: f32[1,160], index: 5, kind: input, shape index: {}]   ;;  %s5420_s6 = inlined_call_operand.vmem [shape: bf16[160,80], index: 6, kind: input, shape index: {}]   ;;  %s5421_s7 = inlined_call_operand.vmem [shape: bf16[400,128], index: 7, kind: input, shape index: {}]   ;;  %s5422_s8 = inlined_call_operand.vmem [shape: f32[1,128], index: 8, kind: input, shape index: {}]   ;;  %s5423_s9 = inlined_call_operand.vmem [shape: bf16[128,128], index: 9, kind: input, shape index: {}]   ;;  %s5424_s10 = inlined_call_operand.vmem [shape: f32[1,128], index: 10, kind: input, shape index: {}]   ;;  %s5425_s11 = inlined_call_operand.vmem [shape: bf16[128,128], index: 11, kind: input, shape index: {}]   ;;  %s5426_s12 = inlined_call_operand.vmem [shape: f32[1,128], index: 12, kind: input, shape index: {}]   ;;  %s5427_s13 = inlined_call_operand.hbm [shape: f32[16,128], index: 13, kind: output, shape index: {}]  }
   0x1   :  { %5438 = sst [smem:[#allocation9_spill]] %s5414_s0 }
   0x2   :  { %18 = vsyncpa [#allocation4], 0 }
   0x3   :  { %20 = vsyncpa [#allocation4 + $0x1], 0  ;;  %s4190_s25 = smov 0   ;;  %s4192_s26 = smov 0  }
   0x4   :  { %s4194_s27 = smov 0   ;;  %s4196_s28 = smov 0  }
   0x5 LB: > { %5439 = sst [smem:[#allocation6_spill]] %s4098_s26  ;;  %s5428_s29 = sadd.s32 4294967295, %s4106_s28   ;;  %s4106_s28 = sphi %s4196_s28, %s5453_s28   ;;  %s4102_s27 = sphi %s4194_s27, %s5452_s27   ;;  %s4098_s26 = sphi %s4192_s26, %s5451_s26   ;;  %s4094_s25 = sphi %s4190_s25, %s5450_s25  }
   0x6   : > { %5440 = sst [smem:[#allocation7_spill]] %s4102_s27  ;;  %s3221_s30 = sadd.s32 4294967294, %s4106_s28  }
   0x7   : > { %s4213_s14 = sadd.s32 1, %s4106_s28   ;;  %s33_s15 = sadd.s32 1, %s4102_s27 }
   0x8   : > { %s30_s16 = ssub.s32 %s4106_s28, %s4213_s14  ;;  %p40_p0 = scmp.ne.s32.totalorder %s4102_s27, %s4098_s26 }
   0x9   : > { %p31_p1 = scmp.eq.s32.totalorder %s30_s16, 0  ;;  %p41_p2 = scmp.eq.s32.totalorder %s4106_s28, 0 }
   0xa   : > { %p322_p3 = scmp.eq.s32.totalorder %s5428_s29, 1  ;;  %p327_p4 = scmp.ne.s32.totalorder %s4098_s26, %s4094_s25 }
   0xb   : > { %s4226_s17 = scalar_select %p31_p1, %s4102_s27, %s33_s15  }
   0xc   : > { %p42_p5 = por %p41_p2, %p40_p0  ;;  %p4228_p6 = por %p322_p3, %p40_p0 }
   0xd   : > { %5441 = sst [smem:[#allocation8_spill]] %s4226_s17  ;;  %p328_p7 = scmp.eq.s32.totalorder %s3221_s30, 1 }
   0xe   : > { %p3223_p9 = scmp.ge.s32.totalorder %s4106_s28, 2 }
   0xf   : > { %p4232_p8 = por %p328_p7, %p327_p4 }
  0x10   : > { %380 = sbr.rel (%p3223_p9) target bundleno = 47 (0x2f), region = 64 }
  0x15   : > { %383 = sbr.rel (!%p42_p5) target bundleno = 47 (0x2f), region = 68  ;;  %s385_s20 = sand.u32 (%p42_p5), 1, %s4102_s27  }
  0x16   : > { %s3225_s21 = sshll.u32 (%p42_p5), %s4106_s28, 3  ;;  %s3224_s22 = sshll.u32 (%p42_p5), %s385_s20, 8 }
  0x17   : > { %s5444_s0 = sld [smem:[#allocation9_spill]] (%p42_p5)  ;;  %s4249_s30 = scalar_lea.vmem (%p42_p5), [#allocation2], %s3224_s22 }
  0x1d   : > { %s4244_s15 = scalar_lea.vmem %s5444_s0, %s3225_s21 }
  0x1e   : > { %v480_v0 = vld [vmem:[%s4244_s15] sm:$0xff]  ;;  %v482_v1 = vld [vmem:[%s4244_s15 + $0x10] sm:$0xff] }
  0x1f   : > { %v484_v2 = vld [vmem:[%s4244_s15 + $0x20] sm:$0xff]  ;;  %481 = vst [vmem:[%s4249_s30] sm:$0xff] %v480_v0  ;;  %483 = vst [vmem:[%s4249_s30 + $0x8] sm:$0xff] %v482_v1  ;;  %v486_v3 = vld [vmem:[%s4244_s15 + $0x30] sm:$0xff] }
  0x20   : > { %485 = vst [vmem:[%s4249_s30 + $0x10] sm:$0xff] %v484_v2  ;;  %v488_v4 = vld [vmem:[%s4244_s15 + $0x40] sm:$0xff]  ;;  %v490_v5 = vld [vmem:[%s4244_s15 + $0x50] sm:$0xff]  ;;  %487 = vst [vmem:[%s4249_s30 + $0x18] sm:$0xff] %v486_v3 }
  0x21   : > { %489 = vst [vmem:[%s4249_s30 + $0x20] sm:$0xff] %v488_v4  ;;  %491 = vst [vmem:[%s4249_s30 + $0x28] sm:$0xff] %v490_v5  ;;  %v492_v6 = vld [vmem:[%s4244_s15 + $0x60] sm:$0xff]  ;;  %v494_v7 = vld [vmem:[%s4244_s15 + $0x70] sm:$0xff] }
  0x22   : > { %v496_v8 = vld [vmem:[%s4244_s15 + $0x80] sm:$0xff]  ;;  %493 = vst [vmem:[%s4249_s30 + $0x30] sm:$0xff] %v492_v6  ;;  %495 = vst [vmem:[%s4249_s30 + $0x38] sm:$0xff] %v494_v7  ;;  %v498_v9 = vld [vmem:[%s4244_s15 + $0x90] sm:$0xff] }
  0x23   : > { %497 = vst [vmem:[%s4249_s30 + $0x40] sm:$0xff] %v496_v8  ;;  %v500_v10 = vld [vmem:[%s4244_s15 + $0xa0] sm:$0xff]  ;;  %v502_v11 = vld [vmem:[%s4244_s15 + $0xb0] sm:$0xff]  ;;  %499 = vst [vmem:[%s4249_s30 + $0x48] sm:$0xff] %v498_v9 }
  0x24   : > { %501 = vst [vmem:[%s4249_s30 + $0x50] sm:$0xff] %v500_v10  ;;  %503 = vst [vmem:[%s4249_s30 + $0x58] sm:$0xff] %v502_v11  ;;  %v504_v12 = vld [vmem:[%s4244_s15 + $0xc0] sm:$0xff]  ;;  %v506_v13 = vld [vmem:[%s4244_s15 + $0xd0] sm:$0xff] }
  0x25   : > { %v508_v14 = vld [vmem:[%s4244_s15 + $0xe0] sm:$0xff]  ;;  %505 = vst [vmem:[%s4249_s30 + $0x60] sm:$0xff] %v504_v12  ;;  %507 = vst [vmem:[%s4249_s30 + $0x68] sm:$0xff] %v506_v13  ;;  %v510_v15 = vld [vmem:[%s4244_s15 + $0xf0] sm:$0xff] }
  0x26   : > { %509 = vst [vmem:[%s4249_s30 + $0x70] sm:$0xff] %v508_v14  ;;  %v512_v16 = vld [vmem:[%s4244_s15 + $0x100] sm:$0xff]  ;;  %v514_v17 = vld [vmem:[%s4244_s15 + $0x110] sm:$0xff]  ;;  %511 = vst [vmem:[%s4249_s30 + $0x78] sm:$0xff] %v510_v15 }
  0x27   : > { %513 = vst [vmem:[%s4249_s30 + $0x80] sm:$0xff] %v512_v16  ;;  %515 = vst [vmem:[%s4249_s30 + $0x88] sm:$0xff] %v514_v17  ;;  %v516_v18 = vld [vmem:[%s4244_s15 + $0x120] sm:$0xff]  ;;  %v518_v19 = vld [vmem:[%s4244_s15 + $0x130] sm:$0xff] }
  0x28   : > { %v520_v20 = vld [vmem:[%s4244_s15 + $0x140] sm:$0xff]  ;;  %517 = vst [vmem:[%s4249_s30 + $0x90] sm:$0xff] %v516_v18  ;;  %519 = vst [vmem:[%s4249_s30 + $0x98] sm:$0xff] %v518_v19  ;;  %v522_v21 = vld [vmem:[%s4244_s15 + $0x150] sm:$0xff] }
  0x29   : > { %521 = vst [vmem:[%s4249_s30 + $0xa0] sm:$0xff] %v520_v20  ;;  %v524_v22 = vld [vmem:[%s4244_s15 + $0x160] sm:$0xff]  ;;  %v526_v23 = vld [vmem:[%s4244_s15 + $0x170] sm:$0xff]  ;;  %523 = vst [vmem:[%s4249_s30 + $0xa8] sm:$0xff] %v522_v21 }
  0x2a   : > { %525 = vst [vmem:[%s4249_s30 + $0xb0] sm:$0xff] %v524_v22  ;;  %527 = vst [vmem:[%s4249_s30 + $0xb8] sm:$0xff] %v526_v23  ;;  %v528_v24 = vld [vmem:[%s4244_s15 + $0x180] sm:$0xff]  ;;  %v530_v25 = vld [vmem:[%s4244_s15 + $0x190] sm:$0xff] }
  0x2b   : > { %v532_v26 = vld [vmem:[%s4244_s15 + $0x1a0] sm:$0xff]  ;;  %529 = vst [vmem:[%s4249_s30 + $0xc0] sm:$0xff] %v528_v24  ;;  %531 = vst [vmem:[%s4249_s30 + $0xc8] sm:$0xff] %v530_v25  ;;  %v534_v27 = vld [vmem:[%s4244_s15 + $0x1b0] sm:$0xff] }
  0x2c   : > { %533 = vst [vmem:[%s4249_s30 + $0xd0] sm:$0xff] %v532_v26  ;;  %v536_v28 = vld [vmem:[%s4244_s15 + $0x1c0] sm:$0xff]  ;;  %v538_v29 = vld [vmem:[%s4244_s15 + $0x1d0] sm:$0xff]  ;;  %535 = vst [vmem:[%s4249_s30 + $0xd8] sm:$0xff] %v534_v27 }
  0x2d   : > { %537 = vst [vmem:[%s4249_s30 + $0xe0] sm:$0xff] %v536_v28  ;;  %539 = vst [vmem:[%s4249_s30 + $0xe8] sm:$0xff] %v538_v29  ;;  %v540_v30 = vld [vmem:[%s4244_s15 + $0x1e0] sm:$0xff]  ;;  %v542_v31 = vld [vmem:[%s4244_s15 + $0x1f0] sm:$0xff] }
  0x2e   : > { %541 = vst [vmem:[%s4249_s30 + $0xf0] sm:$0xff] %v540_v30  ;;  %543 = vst [vmem:[%s4249_s30 + $0xf8] sm:$0xff] %v542_v31 }
  0x2f PF: > { %p3226_p10 = scmp.ge.s32.totalorder %s4106_s28, 1  ;;  %p548_p11 = scmp.lt.s32.totalorder %s4106_s28, 3 }
  0x31   : > { %p549_p12 = pnand %p3226_p10, %p548_p11 }
  0x32   : > { %s4315_s16 = sand.u32 (!%p549_p12), 1, %s4098_s26   ;;  %s5429_s23 = smov (!%p549_p12), 96  }
  0x33   : > { %552 = sbr.rel (%p549_p12) target bundleno = 1942 (0x796), region = 106  ;;  %s3227_s22 = sshll.u32 (!%p549_p12), %s4315_s16, 8 }
  0x34   : > { %s4327_s29 = scalar_lea.vmem (!%p549_p12), [#allocation2], %s3227_s22  ;;  %s5433_s22 = smov (!%p549_p12), 32  }
  0x35   : > { %s5431_s24 = smov (!%p549_p12), 64   ;;  %s5446_s15 = smov (!%p549_p12), 96  }
  0x36   : > { %s5447_s21 = smov (!%p549_p12), 32   ;;  %s4113_s30 = smov (!%p549_p12), 40  }
  0x37   : > { %s4114_s17 = smov (!%p549_p12), 124   ;;  %s5449_s27 = sadd.s32 (!%p549_p12), 4294967295, %s4106_s28  }
  0x38   : > { %v3874_v32 = vld [vmem:[%s5415_s1 + $0x74] ss:$8 sps:$4 sm:$0xff]   ;;  %v3876_v33 = vld [vmem:[%s5415_s1 + $0x70] ss:$8 sps:$4 sm:$0xff]   ;;  %v3877_v34 = vld [vmem:[%s5415_s1 + $0x64] ss:$8 sps:$4 sm:$0xff]  }
  0x39   : > { %1233 = vmatprep.subr.bf16.mxu0 %v3874_v32  ;;  %v4330_v35 = vld [vmem:[%s4327_s29 + $0x8] sm:$0xff]  ;;  %v4333_v36 = vld [vmem:[%s4327_s29 + $0x10] sm:$0xff]  ;;  %v4336_v37 = vld [vmem:[%s4327_s29 + $0x18] sm:$0xff]  ;;  %vm674_vm0 = vcmask 261120   ;;  %vm676_vm1 = vcmask 523264   ;;  %vm678_vm2 = vcmask 785408  }
  0x3a   : > { %1234 = vmatpush1.bf16.msra.mxu0 %v3876_v33  ;;  %v3564_v38 = vpack.i.bf16 %v4333_v36, %v4330_v35  ;;  %v4341_v39 = vld [vmem:[%s4327_s29 + $0x20] sm:$0xff]  ;;  %v3569_v42 = vpack.i.bf16 %v4336_v37, %v4333_v36  ;;  %v4353_v43 = vld [vmem:[%s4327_s29 + $0x28] sm:$0xff]  ;;  %v4356_v44 = vld [vmem:[%s4327_s29 + $0x30] sm:$0xff]  ;;  %vm1610_vm3 = vcmask 1043456   ;;  %vm1588_vm4 = vcmask 326656   ;;  %s3143_s0 = scalar_lea.sflag [#allocation4], %s4315_s16 }
  0x3b   : > { %1235 = vmatprep.subr.bf16.mxu0 %v3877_v34  ;;  %v3879_v40 = vld [vmem:[%s5415_s1 + $0x60] ss:$8 sps:$4 sm:$0xff]   ;;  %v3574_v41 = vpack.i.bf16 %v4341_v39, %v4336_v37  ;;  %v3584_v45 = vpack.i.bf16 %v4353_v43, %v4341_v39  ;;  %v3589_v46 = vpack.i.bf16 %v4356_v44, %v4353_v43  ;;  %v4365_v47 = vld [vmem:[%s4327_s29 + $0x38] sm:$0xff]  ;;  %v3883_v50 = vld [vmem:[%s5415_s1 + $0x44] ss:$8 sps:$4 sm:$0xff]   ;;  %v1032_v51 = vpack.c.bf16 %v4353_v43, %v4341_v39 }
  0x3c   : > { %3565 = vrot.lane.b32.xlu0 %v3564_v38, %s5433_s22  ;;  %v3880_v48 = vld [vmem:[%s5415_s1 + $0x54] ss:$8 sps:$4 sm:$0xff]   ;;  %v3882_v49 = vld [vmem:[%s5415_s1 + $0x50] ss:$8 sps:$4 sm:$0xff]   ;;  %v4380_v52 = vld [vmem:[%s4327_s29 + $0x40] sm:$0xff]  ;;  %v3599_v53 = vpack.i.bf16 %v4365_v47, %v4356_v44  ;;  %vm2245_vm5 = vcmask 1041408  }
  0x3d   : > { %3575 = vrot.lane.b32.xlu1 %v3574_v41, %s5429_s23  ;;  %v3885_v54 = vld [vmem:[%s5415_s1 + $0x40] ss:$8 sps:$4 sm:$0xff]   ;;  %v3886_v55 = vld [vmem:[%s5415_s1 + $0x34] ss:$8 sps:$4 sm:$0xff]   ;;  %3280 = vmatprep.mubr.msk.bf16.mxu0 %vm674_vm0, %v1032_v51  ;;  %v3604_v57 = vpack.i.bf16 %v4380_v52, %v4365_v47  ;;  %v3888_v61 = vld [vmem:[%s5415_s1 + $0x30] ss:$8 sps:$4 sm:$0xff]  }
  0x3e   : > { %1236 = vmatpush1.bf16.msra.mxu0 %v3879_v40  ;;  %v4393_v56 = vld [vmem:[%s4327_s29 + $0x48] sm:$0xff]  ;;  %v4399_v58 = vld [vmem:[%s4327_s29 + $0xf0] sm:$0xff]  ;;  %v4402_v59 = vld [vmem:[%s4327_s29 + $0xf8] sm:$0xff]  ;;  %s4112_s23 = smov 84   ;;  %vm1719_vm6 = vcmask 687104   ;;  %vm1722_vm7 = vcmask 1014784  }
  0x3f   : > { %1237 = vmatprep.subr.bf16.mxu0 %v3880_v48  ;;  %v4406_v60 = vld [vmem:[%s4327_s29 + $0x50] sm:$0xff]  ;;  %v1058_v62 = vpack.c.bf16 %v4402_v59, %v4399_v58  ;;  %v3889_v63 = vld [vmem:[%s5415_s1 + $0x24] ss:$8 sps:$4 sm:$0xff]   ;;  %v3614_v0 = vpack.i.bf16 %v4393_v56, %v4380_v52  ;;  %v4420_v1 = vld [vmem:[%s4327_s29 + $0x58] sm:$0xff]  ;;  %vm1724_vm8 = vcmask 654336   ;;  %vm2229_vm9 = vcmask 293888  }
  0x40   : > { %3570 = vrot.lane.b32.xlu0 %v3569_v42, %s5431_s24  ;;  %v3619_v2 = vpack.i.bf16 %v4406_v60, %v4393_v56  ;;  %v3891_v3 = vld [vmem:[%s5415_s1 + $0x20] ss:$8 sps:$4 sm:$0xff]   ;;  %v3892_v4 = vld [vmem:[%s5415_s1 + $0x14] ss:$8 sps:$4 sm:$0xff]   ;;  %v3894_v6 = vld [vmem:[%s5415_s1 + $0x10] ss:$8 sps:$4 sm:$0xff]   ;;  %v3629_v8 = vpack.i.bf16 %v4420_v1, %v4406_v60 }
  0x41   : > { %3580 = vrot.lane.b32.xlu1 %v3574_v41, %s5433_s22  ;;  %s5445_s22 = smov 64   ;;  %v4432_v5 = vld [vmem:[%s4327_s29 + $0x60] sm:$0xff]  ;;  %v4445_v9 = vld [vmem:[%s4327_s29 + $0x68] sm:$0xff]  ;;  %v4454_v12 = vld [vmem:[%s4327_s29 + $0x70] sm:$0xff]  ;;  %s5437_s24 = smov 80   ;;  %vm2617_vm10 = vcmask 916480  }
  0x42   : > { %1238 = vmatpush1.bf16.msra.mxu0 %v3882_v49  ;;  %v3895_v7 = vld [vmem:[%s5415_s1 + $0x4] ss:$8 sps:$4 sm:$0xff]   ;;  %v3897_v10 = vld [vmem:[%s5415_s1] ss:$8 sps:$4 sm:$0xff]   ;;  %v3634_v11 = vpack.i.bf16 %v4432_v5, %v4420_v1  ;;  %v3898_v13 = vld [vmem:[%s5415_s1 + $0x94] ss:$8 sps:$4 sm:$0xff]   ;;  %v3644_v15 = vpack.i.bf16 %v4445_v9, %v4432_v5  ;;  %v3649_v18 = vpack.i.bf16 %v4454_v12, %v4445_v9 }
  0x43   : > { %1239 = vmatprep.subr.bf16.mxu0 %v3883_v50  ;;  %v3900_v14 = vld [vmem:[%s5415_s1 + $0x90] ss:$8 sps:$4 sm:$0xff]   ;;  %v3901_v17 = vld [vmem:[%s5415_s1 + $0x84] ss:$8 sps:$4 sm:$0xff]   ;;  %v3903_v20 = vld [vmem:[%s5415_s1 + $0x80] ss:$8 sps:$4 sm:$0xff]  }
  0x44   : > { %3585 = vrot.lane.b32.xlu0 %v3584_v45, %s5445_s22  ;;  %v4467_v16 = vld [vmem:[%s4327_s29 + $0x78] sm:$0xff]  ;;  %v4476_v19 = vld [vmem:[%s4327_s29 + $0x80] sm:$0xff]  ;;  %v4486_v22 = vld [vmem:[%s4327_s29 + $0x88] sm:$0xff]  ;;  %vm2831_vm11 = vcmask 130048   ;;  %vm4118_vm12 = vmmov 0  }
  0x45   : > { %3590 = vrot.lane.b32.xlu1 %v3589_v46, %s5446_s15  ;;  %v3659_v21 = vpack.i.bf16 %v4467_v16, %v4454_v12  ;;  %v3664_v23 = vpack.i.bf16 %v4476_v19, %v4467_v16  ;;  %v4492_v24 = vld [vmem:[%s4327_s29 + $0x90] sm:$0xff]  ;;  %v3674_v25 = vpack.i.bf16 %v4486_v22, %v4476_v19  ;;  %v4499_v26 = vld [vmem:[%s4327_s29 + $0x98] sm:$0xff]  ;;  %v4505_v28 = vld [vmem:[%s4327_s29 + $0xa0] sm:$0xff] }
  0x46   : > { %1240 = vmatpush1.bf16.msra.mxu0 %v3885_v54  ;;  %v3679_v27 = vpack.i.bf16 %v4492_v24, %v4486_v22  ;;  %v3689_v29 = vpack.i.bf16 %v4499_v26, %v4492_v24  ;;  %v4512_v30 = vld [vmem:[%s4327_s29 + $0xa8] sm:$0xff]  ;;  %v3694_v31 = vpack.i.bf16 %v4505_v28, %v4499_v26  ;;  %v4518_v32 = vld [vmem:[%s4327_s29 + $0xb0] sm:$0xff]  ;;  %v4525_v34 = vld [vmem:[%s4327_s29 + $0xb8] sm:$0xff] }
  0x47   : > { %1241 = vmatprep.subr.bf16.mxu0 %v3886_v55  ;;  %v3704_v33 = vpack.i.bf16 %v4512_v30, %v4505_v28  ;;  %v3709_v38 = vpack.i.bf16 %v4518_v32, %v4512_v30  ;;  %v4531_v40 = vld [vmem:[%s4327_s29 + $0xc0] sm:$0xff]  ;;  %v3719_v41 = vpack.i.bf16 %v4525_v34, %v4518_v32  ;;  %v4538_v42 = vld [vmem:[%s4327_s29 + $0xc8] sm:$0xff]  ;;  %v4551_v49 = vld [vmem:[%s4327_s29 + $0xd8] sm:$0xff] }
  0x48   : > { %3595 = vrot.lane.b32.xlu0 %v3589_v46, %s5447_s21  ;;  %v3724_v45 = vpack.i.bf16 %v4531_v40, %v4525_v34  ;;  %v4544_v46 = vld [vmem:[%s4327_s29 + $0xd0] sm:$0xff]  ;;  %v3734_v48 = vpack.i.bf16 %v4538_v42, %v4531_v40  ;;  %v4557_v51 = vld [vmem:[%s4327_s29 + $0xe0] sm:$0xff]  ;;  %v4564_v54 = vld [vmem:[%s4327_s29 + $0xe8] sm:$0xff] }
  0x49   : > { %3600 = vrot.lane.b32.xlu1 %v3599_v53, %s5445_s22  ;;  %v3739_v50 = vpack.i.bf16 %v4544_v46, %v4538_v42  ;;  %v3749_v53 = vpack.i.bf16 %v4551_v49, %v4544_v46  ;;  %v3754_v55 = vpack.i.bf16 %v4557_v51, %v4551_v49 }
  0x4a   : > { %1242 = vmatpush1.bf16.msra.mxu0 %v3888_v61  ;;  %v3769_v61 = vpack.i.bf16 %v4399_v58, %v4564_v54  ;;  %v1079_v58 = vld [vmem:[%s5416_s2] sm:$0x3] }
  0x4b   : > { %1243 = vmatprep.subr.bf16.mxu0 %v3889_v63  ;;  %v3904_v63 = vld [vmem:[%s5417_s3 + $0x38] sm:$0xff]  }
  0x4c   : > { %3605 = vrot.lane.b32.xlu0 %v3604_v57, %s5446_s15 }
  0x4d   : > { %3610 = vrot.lane.b32.xlu1 %v3604_v57, %s5447_s21  ;;  %v3764_v57 = vpack.i.bf16 %v4564_v54, %v4557_v51 }
  0x4e   : > { %1244 = vmatpush1.bf16.msra.mxu0 %v3891_v3  ;;  %v3906_v3 = vld [vmem:[%s5417_s3 + $0x28] sm:$0xff]  }
  0x4f   : > { %1245 = vmatprep.subr.bf16.mxu0 %v3892_v4  ;;  %v3907_v4 = vld [vmem:[%s5417_s3 + $0x20] sm:$0xff]  }
  0x50   : > { %3615 = vrot.lane.b32.xlu0 %v3614_v0, %s5445_s22  ;;  %v4111_v0 = vmov 0  }
  0x51   : > { %3620 = vrot.lane.b32.xlu1 %v3619_v2, %s5446_s15  ;;  %1614 = vmatprep.subr.bf16.mxu1 %v4111_v0 }
  0x52   : > { %1246 = vmatpush1.bf16.msra.mxu0 %v3894_v6  ;;  %1615 = vmatpush1.bf16.msra.mxu1 %v3904_v63 }
  0x53   : > { %1247 = vmatprep.subr.bf16.mxu0 %v3895_v7  ;;  %1616 = vmatprep.subr.bf16.mxu1 %v4111_v0 }
  0x54   : > { %3625 = vrot.lane.b32.xlu0 %v3619_v2, %s5447_s21  ;;  %v3905_v2 = vld [vmem:[%s5417_s3 + $0x30] sm:$0xff]  }
  0x55   : > { %3630 = vrot.lane.b32.xlu1 %v3629_v8, %s5445_s22  ;;  %v3908_v8 = vld [vmem:[%s5417_s3 + $0x18] sm:$0xff]  }
  0x56   : > { %1248 = vmatpush1.bf16.msra.mxu0 %v3897_v10  ;;  %1617 = vmatpush1.bf16.msra.mxu1 %v3905_v2 }
  0x57   : > { %1261 = vmatprep.subr.bf16.mxu0 %v3898_v13  ;;  %1618 = vmatprep.subr.bf16.mxu1 %v4111_v0  ;;  %v599_v13 = vld [vmem:[%s4327_s29] sm:$0xff]  ;;  %s4116_s29 = smov 112  }
  0x58   : > { %3635 = vrot.lane.b32.xlu0 %v3634_v11, %s5446_s15 }
  0x59   : > { %3640 = vrot.lane.b32.xlu1 %v3634_v11, %s5447_s21 }
  0x5a   : > { %1262 = vmatpush2.bf16.msra.mxu0 %v3900_v14  ;;  %1619 = vmatpush1.bf16.msra.mxu1 %v3906_v3 }
  0x5b   : > { %1263 = vmatprep.subr.bf16.mxu0 %v3901_v17  ;;  %1620 = vmatprep.subr.bf16.mxu1 %v4111_v0 }
  0x5c   : > { %3645 = vrot.lane.b32.xlu0 %v3644_v15, %s5445_s22 }
  0x5d   : > { %3650 = vrot.lane.b32.xlu1 %v3649_v18, %s5446_s15 }
  0x5e   : > { %1264 = vmatpush2.bf16.msra.mxu0 %v3903_v20  ;;  %1621 = vmatpush1.bf16.msra.mxu1 %v3907_v4 }
  0x5f   : > { %1622 = vmatprep.subr.bf16.mxu1 %v4111_v0 }
  0x60   : > { %3655 = vrot.lane.b32.xlu0 %v3649_v18, %s5447_s21 }
  0x61   : > { %3660 = vrot.lane.b32.xlu1 %v3659_v21, %s5445_s22 }
  0x62   : > { %1623 = vmatpush1.bf16.msra.mxu1 %v3908_v8 }
  0x63   : > { %1624 = vmatprep.subr.bf16.mxu1 %v4111_v0 }
  0x64   : > { %3665 = vrot.lane.b32.xlu0 %v3664_v23, %s5446_s15 }
  0x65   : > { %3670 = vrot.lane.b32.xlu1 %v3664_v23, %s5447_s21 }
  0x68   : > { %3675 = vrot.lane.b32.xlu0 %v3674_v25, %s5445_s22 }
  0x69   : > { %3680 = vrot.lane.b32.xlu1 %v3679_v27, %s5446_s15 }
  0x6c   : > { %3685 = vrot.lane.b32.xlu0 %v3679_v27, %s5447_s21 }
  0x6d   : > { %3690 = vrot.lane.b32.xlu1 %v3689_v29, %s5445_s22 }
  0x70   : > { %3695 = vrot.lane.b32.xlu0 %v3694_v31, %s5446_s15 }
  0x71   : > { %3700 = vrot.lane.b32.xlu1 %v3694_v31, %s5447_s21 }
  0x74   : > { %3705 = vrot.lane.b32.xlu0 %v3704_v33, %s5445_s22 }
  0x75   : > { %3710 = vrot.lane.b32.xlu1 %v3709_v38, %s5446_s15 }
  0x78   : > { %3715 = vrot.lane.b32.xlu0 %v3709_v38, %s5447_s21  ;;  %v1034_v38 = vpack.c.bf16 %v4365_v47, %v4356_v44 }
  0x79   : > { %3720 = vrot.lane.b32.xlu1 %v3719_v41, %s5445_s22 }
  0x7c   : > { %3725 = vrot.lane.b32.xlu0 %v3724_v45, %s5446_s15 }
  0x7d   : > { %3730 = vrot.lane.b32.xlu1 %v3724_v45, %s5447_s21 }
  0x80   : > { %3735 = vrot.lane.b32.xlu0 %v3734_v48, %s5445_s22 }
  0x81   : > { %3740 = vrot.lane.b32.xlu1 %v3739_v50, %s5446_s15 }
  0x84   : > { %3745 = vrot.lane.b32.xlu0 %v3739_v50, %s5447_s21 }
  0x85   : > { %3750 = vrot.lane.b32.xlu1 %v3749_v53, %s5445_s22 }
  0x88   : > { %3755 = vrot.lane.b32.xlu0 %v3754_v55, %s5446_s15 }
  0x89   : > { %3760 = vrot.lane.b32.xlu1 %v3754_v55, %s5447_s21 }
  0x8c   : > { %3765 = vrot.lane.b32.xlu0 %v3764_v57, %s5445_s22 }
  0x8d   : > { %3770 = vrot.lane.b32.xlu1 %v3769_v61, %s5446_s15 }
  0xae   : > { %v3566_v6 = vpop.permute.xlu0 %3565 }
  0xaf   : > { %v3576_v7 = vpop.permute.xlu1 %3575  ;;  %v3568_v10 = vunpack.i.h.bf16 %v3566_v6  ;;  %v3567_v11 = vunpack.i.l.bf16 %v3566_v6 }
  0xb0   : > { %v3578_v14 = vunpack.i.h.bf16 %v3576_v7  ;;  %v3577_v15 = vunpack.i.l.bf16 %v3576_v7 }
  0xb1   : > { %v690_v23 = vsel %vm674_vm0, %v4330_v35, %v3568_v10  ;;  %v675_v25 = vsel %vm674_vm0, %v599_v13, %v3567_v11 }
  0xb2   : > { %v3571_v17 = vpop.permute.xlu0 %3570 }
  0xb3   : > { %v3573_v18 = vunpack.i.h.bf16 %v3571_v17  ;;  %v3572_v20 = vunpack.i.l.bf16 %v3571_v17  ;;  %v3581_v21 = vpop.permute.xlu1 %3580 }
  0xb4   : > { %v3583_v27 = vunpack.i.h.bf16 %v3581_v21  ;;  %v3582_v29 = vunpack.i.l.bf16 %v3581_v21 }
  0xb5   : > { %v677_v31 = vsel %vm676_vm1, %v675_v25, %v3572_v20  ;;  %v691_v33 = vsel %vm676_vm1, %v690_v23, %v3573_v18  ;;  %v1036_v18 = vpack.c.bf16 %v4393_v56, %v4380_v52 }
  0xb6   : > { %v716_v41 = vsel %vm674_vm0, %v4336_v37, %v3583_v27  ;;  %v703_v45 = vsel %vm674_vm0, %v4333_v36, %v3582_v29  ;;  %v3586_v35 = vpop.permute.xlu0 %3585  ;;  %v679_v48 = vsel %vm678_vm2, %v677_v31, %v3577_v15  ;;  %v692_v50 = vsel %vm678_vm2, %v691_v33, %v3578_v14 }
  0xb7   : > { %v3588_v53 = vunpack.i.h.bf16 %v3586_v35  ;;  %v3587_v55 = vunpack.i.l.bf16 %v3586_v35  ;;  %v3591_v57 = vpop.permute.xlu1 %3590  ;;  %v1031_v61 = vpack.c.bf16 %v692_v50, %v679_v48 }
  0xb8   : > { %v3593_v63 = vunpack.i.h.bf16 %v3591_v57  ;;  %v3592_v2 = vunpack.i.l.bf16 %v3591_v57 }
  0xb9   : > { %v717_v3 = vsel %vm676_vm1, %v716_v41, %v3588_v53  ;;  %v704_v4 = vsel %vm676_vm1, %v703_v45, %v3587_v55  ;;  %1266 = vmatmul.mubr.bf16.vlgmr.msra.gmra.mxu0 %v1031_v61  ;;  %v1038_v53 = vpack.c.bf16 %v4420_v1, %v4406_v60 }
  0xba   : > { %v3596_v37 = vpop.permute.xlu0 %3595  ;;  %3281 = vmatprep.mubr.msk.bf16.mxu0 %vm674_vm0, %v1034_v38  ;;  %v705_v8 = vsel %vm678_vm2, %v704_v4, %v3592_v2  ;;  %v718_v10 = vsel %vm678_vm2, %v717_v3, %v3593_v63 }
  0xbb   : > { %v3598_v36 = vunpack.i.h.bf16 %v3596_v37  ;;  %v3597_v6 = vunpack.i.l.bf16 %v3596_v37  ;;  %v3601_v7 = vpop.permute.xlu1 %3600  ;;  %v1033_v20 = vpack.c.bf16 %v718_v10, %v705_v8 }
  0xbc   : > { %v3603_v11 = vunpack.i.h.bf16 %v3601_v7  ;;  %v3602_v13 = vunpack.i.l.bf16 %v3601_v7 }
  0xbd   : > { %v742_v14 = vsel %vm674_vm0, %v4353_v43, %v3598_v36  ;;  %v729_v15 = vsel %vm674_vm0, %v4341_v39, %v3597_v6 }
  0xbe   : > { %v3606_v17 = vpop.permute.xlu0 %3605  ;;  %v730_v27 = vsel %vm676_vm1, %v729_v15, %v3602_v13  ;;  %v743_v29 = vsel %vm676_vm1, %v742_v14, %v3603_v11  ;;  %v1040_v13 = vpack.c.bf16 %v4445_v9, %v4432_v5 }
  0xbf   : > { %v3611_v21 = vpop.permute.xlu1 %3610  ;;  %v3608_v23 = vunpack.i.h.bf16 %v3606_v17  ;;  %v3607_v25 = vunpack.i.l.bf16 %v3606_v17 }
  0xc0   : > { %v3613_v31 = vunpack.i.h.bf16 %v3611_v21  ;;  %v3612_v33 = vunpack.i.l.bf16 %v3611_v21 }
  0xc1   : > { %1276 = vmatmul.mubr.bf16.gmra.mxu0 %v1033_v20  ;;  %v731_v39 = vsel %vm678_vm2, %v730_v27, %v3607_v25  ;;  %v744_v43 = vsel %vm678_vm2, %v743_v29, %v3608_v23 }
  0xc2   : > { %v3616_v38 = vpop.permute.xlu0 %3615  ;;  %3282 = vmatprep.mubr.msk.bf16.mxu0 %vm674_vm0, %v1036_v18  ;;  %v768_v48 = vsel %vm674_vm0, %v4365_v47, %v3613_v31  ;;  %v755_v50 = vsel %vm674_vm0, %v4356_v44, %v3612_v33  ;;  %v1035_v55 = vpack.c.bf16 %v744_v43, %v731_v39  ;;  %v1042_v43 = vpack.c.bf16 %v4467_v16, %v4454_v12 }
  0xc3   : > { %v3618_v41 = vunpack.i.h.bf16 %v3616_v38  ;;  %v3617_v45 = vunpack.i.l.bf16 %v3616_v38  ;;  %v3621_v35 = vpop.permute.xlu1 %3620 }
  0xc4   : > { %v3623_v61 = vunpack.i.h.bf16 %v3621_v35  ;;  %v3622_v63 = vunpack.i.l.bf16 %v3621_v35 }
  0xc5   : > { %v769_v2 = vsel %vm676_vm1, %v768_v48, %v3618_v41  ;;  %v756_v3 = vsel %vm676_vm1, %v755_v50, %v3617_v45 }
  0xc6   : > { %v3626_v57 = vpop.permute.xlu0 %3625  ;;  %v757_v47 = vsel %vm678_vm2, %v756_v3, %v3622_v63  ;;  %v770_v44 = vsel %vm678_vm2, %v769_v2, %v3623_v61 }
  0xc7   : > { %v3631_v4 = vpop.permute.xlu1 %3630  ;;  %v3628_v37 = vunpack.i.h.bf16 %v3626_v57  ;;  %v3627_v36 = vunpack.i.l.bf16 %v3626_v57  ;;  %v1037_v14 = vpack.c.bf16 %v770_v44, %v757_v47 }
  0xc8   : > { %v3633_v6 = vunpack.i.h.bf16 %v3631_v4  ;;  %v3632_v7 = vunpack.i.l.bf16 %v3631_v4 }
  0xc9   : > { %1286 = vmatmul.mubr.bf16.gmra.mxu0 %v1035_v55  ;;  %v794_v10 = vsel %vm674_vm0, %v4393_v56, %v3628_v37  ;;  %v781_v11 = vsel %vm674_vm0, %v4380_v52, %v3627_v36  ;;  %v1044_v36 = vpack.c.bf16 %v4486_v22, %v4476_v19 }
  0xca   : > { %3283 = vmatprep.mubr.msk.bf16.mxu0 %vm674_vm0, %v1038_v53  ;;  %v3636_v8 = vpop.permute.xlu0 %3635  ;;  %v782_v20 = vsel %vm676_vm1, %v781_v11, %v3632_v7  ;;  %v795_v21 = vsel %vm676_vm1, %v794_v10, %v3633_v6 }
  0xcb   : > { %v3641_v15 = vpop.permute.xlu1 %3640  ;;  %v3638_v17 = vunpack.i.h.bf16 %v3636_v8  ;;  %v3637_v18 = vunpack.i.l.bf16 %v3636_v8 }
  0xcc   : > { %v3643_v25 = vunpack.i.h.bf16 %v3641_v15  ;;  %v3642_v27 = vunpack.i.l.bf16 %v3641_v15 }
  0xcd   : > { %v783_v56 = vsel %vm678_vm2, %v782_v20, %v3637_v18  ;;  %v796_v52 = vsel %vm678_vm2, %v795_v21, %v3638_v17 }
  0xce   : > { %v3646_v23 = vpop.permute.xlu0 %3645  ;;  %v820_v38 = vsel %vm674_vm0, %v4420_v1, %v3643_v25  ;;  %v807_v39 = vsel %vm674_vm0, %v4406_v60, %v3642_v27  ;;  %v1039_v41 = vpack.c.bf16 %v796_v52, %v783_v56 }
  0xcf   : > { %v3648_v29 = vunpack.i.h.bf16 %v3646_v23  ;;  %v3647_v31 = vunpack.i.l.bf16 %v3646_v23  ;;  %v3651_v33 = vpop.permute.xlu1 %3650  ;;  %v1046_v23 = vpack.c.bf16 %v4499_v26, %v4492_v24 }
  0xd0   : > { %v3653_v35 = vunpack.i.h.bf16 %v3651_v33  ;;  %v3652_v48 = vunpack.i.l.bf16 %v3651_v33 }
  0xd1   : > { %1296 = vmatmul.mubr.bf16.gmra.mxu0 %v1037_v14  ;;  %v821_v50 = vsel %vm676_vm1, %v820_v38, %v3648_v29  ;;  %v808_v53 = vsel %vm676_vm1, %v807_v39, %v3647_v31 }
  0xd2   : > { %3284 = vmatprep.mubr.msk.bf16.mxu0 %vm674_vm0, %v1040_v13  ;;  %v3656_v45 = vpop.permute.xlu0 %3655  ;;  %v809_v1 = vsel %vm678_vm2, %v808_v53, %v3652_v48  ;;  %v822_v60 = vsel %vm678_vm2, %v821_v50, %v3653_v35  ;;  %v1048_v50 = vpack.c.bf16 %v4512_v30, %v4505_v28 }
  0xd3   : > { %v3661_v55 = vpop.permute.xlu1 %3660  ;;  %v3658_v57 = vunpack.i.h.bf16 %v3656_v45  ;;  %v3657_v61 = vunpack.i.l.bf16 %v3656_v45  ;;  %v1041_v47 = vpack.c.bf16 %v822_v60, %v809_v1 }
  0xd4   : > { %v3663_v63 = vunpack.i.h.bf16 %v3661_v55  ;;  %v3662_v2 = vunpack.i.l.bf16 %v3661_v55 }
  0xd5   : > { %v846_v4 = vsel %vm674_vm0, %v4445_v9, %v3658_v57  ;;  %v833_v37 = vsel %vm674_vm0, %v4432_v5, %v3657_v61 }
  0xd6   : > { %v3666_v3 = vpop.permute.xlu0 %3665  ;;  %v834_v8 = vsel %vm676_vm1, %v833_v37, %v3662_v2  ;;  %v847_v10 = vsel %vm676_vm1, %v846_v4, %v3663_v63 }
  0xd7   : > { %v3671_v44 = vpop.permute.xlu1 %3670  ;;  %v3668_v6 = vunpack.i.h.bf16 %v3666_v3  ;;  %v3667_v7 = vunpack.i.l.bf16 %v3666_v3 }
  0xd8   : > { %v3673_v13 = vunpack.i.h.bf16 %v3671_v44  ;;  %v3672_v14 = vunpack.i.l.bf16 %v3671_v44 }
  0xd9   : > { %1306 = vmatmul.mubr.bf16.gmra.mxu0 %v1039_v41  ;;  %v835_v9 = vsel %vm678_vm2, %v834_v8, %v3667_v7  ;;  %v848_v5 = vsel %vm678_vm2, %v847_v10, %v3668_v6  ;;  %v1050_v6 = vpack.c.bf16 %v4525_v34, %v4518_v32 }
  0xda   : > { %3285 = vmatprep.mubr.msk.bf16.mxu0 %vm674_vm0, %v1042_v43  ;;  %v3676_v11 = vpop.permute.xlu0 %3675  ;;  %v872_v20 = vsel %vm674_vm0, %v4467_v16, %v3673_v13  ;;  %v859_v21 = vsel %vm674_vm0, %v4454_v12, %v3672_v14  ;;  %v1043_v25 = vpack.c.bf16 %v848_v5, %v835_v9  ;;  %v3909_v13 = vld [vmem:[%s5417_s3 + $0x10] sm:$0xff]  }
  0xdb   : > { %v3678_v15 = vunpack.i.h.bf16 %v3676_v11  ;;  %v3677_v17 = vunpack.i.l.bf16 %v3676_v11  ;;  %v3681_v18 = vpop.permute.xlu1 %3680  ;;  %1625 = vmatpush1.bf16.msra.mxu1 %v3909_v13 }
  0xdc   : > { %v3683_v56 = vunpack.i.h.bf16 %v3681_v18  ;;  %v3682_v52 = vunpack.i.l.bf16 %v3681_v18  ;;  %1626 = vmatprep.subr.bf16.mxu1 %v4111_v0  ;;  %v3910_v18 = vld [vmem:[%s5417_s3 + $0x8] sm:$0xff]  }
  0xdd   : > { %v873_v29 = vsel %vm676_vm1, %v872_v20, %v3678_v15  ;;  %v860_v31 = vsel %vm676_vm1, %v859_v21, %v3677_v17 }
  0xde   : > { %v3686_v27 = vpop.permute.xlu0 %3685  ;;  %v861_v16 = vsel %vm678_vm2, %v860_v31, %v3682_v52  ;;  %v874_v12 = vsel %vm678_vm2, %v873_v29, %v3683_v56  ;;  %v1052_v56 = vpack.c.bf16 %v4538_v42, %v4531_v40 }
  0xdf   : > { %v3691_v33 = vpop.permute.xlu1 %3690  ;;  %v3688_v38 = vunpack.i.h.bf16 %v3686_v27  ;;  %v3687_v39 = vunpack.i.l.bf16 %v3686_v27  ;;  %v1045_v53 = vpack.c.bf16 %v874_v12, %v861_v16  ;;  %1627 = vmatpush1.bf16.msra.mxu1 %v3910_v18 }
  0xe0   : > { %v3693_v43 = vunpack.i.h.bf16 %v3691_v33  ;;  %v3692_v41 = vunpack.i.l.bf16 %v3691_v33  ;;  %1628 = vmatprep.subr.bf16.mxu1 %v4111_v0 }
  0xe1   : > { %1316 = vmatmul.mubr.bf16.gmra.mxu0 %v1041_v47  ;;  %v898_v35 = vsel %vm674_vm0, %v4486_v22, %v3688_v38  ;;  %v885_v48 = vsel %vm674_vm0, %v4476_v19, %v3687_v39  ;;  %v3911_v38 = vld [vmem:[%s5417_s3] sm:$0xff]  }
  0xe2   : > { %3286 = vmatprep.mubr.msk.bf16.mxu0 %vm674_vm0, %v1044_v36  ;;  %v3696_v45 = vpop.permute.xlu0 %3695  ;;  %v886_v1 = vsel %vm676_vm1, %v885_v48, %v3692_v41  ;;  %v899_v60 = vsel %vm676_vm1, %v898_v35, %v3693_v43  ;;  %v3912_v43 = vld [vmem:[%s5417_s3 + $0x50] ss:$0 sps:$4 sm:$0xff]  }
  0xe3   : > { %v3701_v55 = vpop.permute.xlu1 %3700  ;;  %v3698_v57 = vunpack.i.h.bf16 %v3696_v45  ;;  %v3697_v61 = vunpack.i.l.bf16 %v3696_v45  ;;  %1629 = vmatpush1.bf16.msra.mxu1 %v3911_v38 }
  0xe4   : > { %v3703_v2 = vunpack.i.h.bf16 %v3701_v55  ;;  %v3702_v3 = vunpack.i.l.bf16 %v3701_v55  ;;  %1640 = vmatprep.subr.bf16.mxu1 %v4111_v0 }
  0xe5   : > { %v887_v22 = vsel %vm678_vm2, %v886_v1, %v3697_v61  ;;  %v900_v19 = vsel %vm678_vm2, %v899_v60, %v3698_v57  ;;  %v1054_v61 = vpack.c.bf16 %v4551_v49, %v4544_v46 }
  0xe6   : > { %v3706_v63 = vpop.permute.xlu0 %3705  ;;  %v924_v47 = vsel %vm674_vm0, %v4499_v26, %v3703_v2  ;;  %v911_v44 = vsel %vm674_vm0, %v4492_v24, %v3702_v3  ;;  %v1047_v7 = vpack.c.bf16 %v900_v19, %v887_v22  ;;  %v3913_v3 = vld [vmem:[%s5417_s3 + $0x48] sm:$0xff]  }
  0xe7   : > { %v3708_v4 = vunpack.i.h.bf16 %v3706_v63  ;;  %v3707_v37 = vunpack.i.l.bf16 %v3706_v63  ;;  %v3711_v36 = vpop.permute.xlu1 %3710 }
  0xe8   : > { %v3713_v10 = vunpack.i.h.bf16 %v3711_v36  ;;  %v3712_v11 = vunpack.i.l.bf16 %v3711_v36 }
  0xe9   : > { %1326 = vmatmul.mubr.bf16.gmra.mxu0 %v1043_v25  ;;  %v925_v14 = vsel %vm676_vm1, %v924_v47, %v3708_v4  ;;  %v912_v9 = vsel %vm676_vm1, %v911_v44, %v3707_v37  ;;  %v3914_v47 = vld [vmem:[%s5417_s3 + $0x40] sm:$0xff]  }
  0xea   : > { %3287 = vmatprep.mubr.msk.bf16.mxu0 %vm674_vm0, %v1046_v23  ;;  %v3716_v8 = vpop.permute.xlu0 %3715  ;;  %v913_v24 = vsel %vm678_vm2, %v912_v9, %v3712_v11  ;;  %v926_v17 = vsel %vm678_vm2, %v925_v14, %v3713_v10  ;;  %v1056_v11 = vpack.c.bf16 %v4564_v54, %v4557_v51 }
  0xeb   : > { %v3721_v26 = vpop.permute.xlu1 %3720  ;;  %v3718_v5 = vunpack.i.h.bf16 %v3716_v8  ;;  %v3717_v15 = vunpack.i.l.bf16 %v3716_v8  ;;  %v1049_v52 = vpack.c.bf16 %v926_v17, %v913_v24 }
  0xec   : > { %v3723_v20 = vunpack.i.h.bf16 %v3721_v26  ;;  %v3722_v21 = vunpack.i.l.bf16 %v3721_v26 }
  0xed   : > { %v950_v25 = vsel %vm674_vm0, %v4512_v30, %v3718_v5  ;;  %v937_v27 = vsel %vm674_vm0, %v4505_v28, %v3717_v15 }
  0xee   : > { %v3726_v23 = vpop.permute.xlu0 %3725  ;;  %v938_v39 = vsel %vm676_vm1, %v937_v27, %v3722_v21  ;;  %v951_v30 = vsel %vm676_vm1, %v950_v25, %v3723_v20 }
  0xef   : > { %v3731_v29 = vpop.permute.xlu1 %3730  ;;  %v3728_v31 = vunpack.i.h.bf16 %v3726_v23  ;;  %v3727_v33 = vunpack.i.l.bf16 %v3726_v23 }
  0xf0   : > { %v3733_v16 = vunpack.i.h.bf16 %v3731_v29  ;;  %v3732_v12 = vunpack.i.l.bf16 %v3731_v29 }
  0xf1   : > { %1336 = vmatmul.mubr.bf16.gmra.mxu0 %v1045_v53  ;;  %v939_v41 = vsel %vm678_vm2, %v938_v39, %v3727_v33  ;;  %v952_v45 = vsel %vm678_vm2, %v951_v30, %v3728_v31  ;;  %v1612_v53 = vsel %vm1610_vm3, %v3912_v43, 0 }
  0xf2   : > { %3288 = vmatprep.mubr.msk.bf16.mxu0 %vm674_vm0, %v1048_v50  ;;  %v3736_v28 = vpop.permute.xlu0 %3735  ;;  %v976_v55 = vsel %vm674_vm0, %v4525_v34, %v3733_v16  ;;  %v963_v57 = vsel %vm674_vm0, %v4518_v32, %v3732_v12  ;;  %1641 = vmatpush2.bf16.msra.mxu1 %v1612_v53  ;;  %v1051_v1 = vpack.c.bf16 %v952_v45, %v939_v41 }
  0xf3   : > { %v3738_v35 = vunpack.i.h.bf16 %v3736_v28  ;;  %v3737_v48 = vunpack.i.l.bf16 %v3736_v28  ;;  %v3741_v50 = vpop.permute.xlu1 %3740  ;;  %1642 = vmatprep.subr.bf16.mxu1 %v4111_v0 }
  0xf4   : > { %v3743_v63 = vunpack.i.h.bf16 %v3741_v50  ;;  %v3742_v2 = vunpack.i.l.bf16 %v3741_v50 }
  0xf5   : > { %v977_v22 = vsel %vm676_vm1, %v976_v55, %v3738_v35  ;;  %v964_v34 = vsel %vm676_vm1, %v963_v57, %v3737_v48 }
  0xf6   : > { %v3746_v60 = vpop.permute.xlu0 %3745  ;;  %1643 = vmatpush2.bf16.msra.mxu1 %v3913_v3  ;;  %v965_v37 = vsel %vm678_vm2, %v964_v34, %v3742_v2  ;;  %v978_v36 = vsel %vm678_vm2, %v977_v22, %v3743_v63 }
  0xf7   : > { %v3751_v32 = vpop.permute.xlu1 %3750  ;;  %v3748_v19 = vunpack.i.h.bf16 %v3746_v60  ;;  %v3747_v4 = vunpack.i.l.bf16 %v3746_v60  ;;  %1644 = vmatprep.subr.bf16.mxu1 %v4111_v0  ;;  %v1053_v13 = vpack.c.bf16 %v978_v36, %v965_v37 }
  0xf8   : > { %v3753_v44 = vunpack.i.h.bf16 %v3751_v32 }
  0xf9   : > { %1346 = vmatmul.mubr.bf16.gmra.mxu0 %v1047_v7  ;;  %v1002_v8 = vsel %vm674_vm0, %v4538_v42, %v3748_v19  ;;  %v989_v10 = vsel %vm674_vm0, %v4531_v40, %v3747_v4 }
  0xfa   : > { %3289 = vmatprep.mubr.msk.bf16.mxu0 %vm674_vm0, %v1050_v6  ;;  %v3752_v6 = vunpack.i.l.bf16 %v3751_v32  ;;  %v3756_v7 = vpop.permute.xlu0 %3755  ;;  %1645 = vmatpush2.bf16.msra.mxu1 %v3914_v47  ;;  %v1003_v15 = vsel %vm676_vm1, %v1002_v8, %v3753_v44 }
  0xfb   : > { %v3761_v14 = vpop.permute.xlu1 %3760  ;;  %v3758_v9 = vunpack.i.h.bf16 %v3756_v7  ;;  %v3757_v26 = vunpack.i.l.bf16 %v3756_v7 }
  0xfc   : > { %v990_v5 = vsel %vm676_vm1, %v989_v10, %v3752_v6  ;;  %v3763_v24 = vunpack.i.h.bf16 %v3761_v14  ;;  %v3762_v17 = vunpack.i.l.bf16 %v3761_v14 }
  0xfd   : > { %v991_v40 = vsel %vm678_vm2, %v990_v5, %v3757_v26  ;;  %v1004_v42 = vsel %vm678_vm2, %v1003_v15, %v3758_v9 }
  0xfe   : > { %v3766_v18 = vpop.permute.xlu0 %3765  ;;  %v1028_v21 = vsel %vm674_vm0, %v4551_v49, %v3763_v24  ;;  %v1015_v23 = vsel %vm674_vm0, %v4544_v46, %v3762_v17  ;;  %v1055_v25 = vpack.c.bf16 %v1004_v42, %v991_v40  ;;  %v1081_v46 = vlaneseq }
  0xff   : > { %v3768_v51 = vunpack.i.h.bf16 %v3766_v18  ;;  %v3767_v54 = vunpack.i.l.bf16 %v3766_v18  ;;  %v3771_v20 = vpop.permute.xlu1 %3770 }
 0x100   : > { %v3773_v27 = vunpack.i.h.bf16 %v3771_v20  ;;  %v4774_v39 = vshrl.u32 %v1081_v46, 7 }
 0x101   : > { %1356 = vmatmul.mubr.bf16.gmra.mxu0 %v1049_v52  ;;  %v1029_v52 = vsel %vm676_vm1, %v1028_v21, %v3768_v51  ;;  %v1016_v29 = vsel %vm676_vm1, %v1015_v23, %v3767_v54 }
 0x102   : > { %3290 = vmatprep.mubr.msk.bf16.mxu0 %vm674_vm0, %v1052_v56  ;;  %v3772_v56 = vunpack.i.l.bf16 %v3771_v20  ;;  %v1030_v49 = vsel %vm678_vm2, %v1029_v52, %v3773_v27  ;;  %v1087_v16 = vsub.s32 1, %v4774_v39  ;;  %v1083_v12 = vsub.s32 0, %v4774_v39 }
 0x104   : > { %v1017_v31 = vsel %vm678_vm2, %v1016_v29, %v3772_v56  ;;  %v4787_v41 = vrot.slane %v1079_v58, %v1083_v12 }
 0x105   : > { %v1057_v33 = vpack.c.bf16 %v1030_v49, %v1017_v31 }
 0x109   : > { %1366 = vmatmul.mubr.bf16.gmra.mxu0 %v1051_v1 }
 0x10a   : > { %3291 = vmatprep.mubr.msk.bf16.mxu0 %vm674_vm0, %v1054_v61 }
 0x111   : > { %1376 = vmatmul.mubr.bf16.gmra.mxu0 %v1053_v13 }
 0x112   : > { %3292 = vmatprep.mubr.msk.bf16.mxu0 %vm674_vm0, %v1056_v11 }
 0x119   : > { %1386 = vmatmul.mubr.bf16.gmra.mxu0 %v1055_v25 }
 0x11a   : > { %3293 = vmatprep.mubr.msk.bf16.mxu0 %vm674_vm0, %v1058_v62  ;;  %v4783_v62 = vrot.slane %v1079_v58, %v1087_v16 }
 0x121   : > { %1396 = vmatmul.mubr.bf16.gmra.mxu0 %v1057_v33 }
 0x179   : > { %v1267_v38 = vpop.f32.mrf.mxu0 }
 0x17a   : > { %v1268_v1 = vadd.f32 %v1267_v38, %v4787_v41 }
 0x17b   : > { %v1269_v30 = vpop.f32.mrf.mxu0 }
 0x17c   : > { %v1270_v55 = vadd.f32 %v1269_v30, %v4783_v62  ;;  %v1406_v36 = vmax.f32 %v1268_v1, 0.0 }
 0x17d   : > { %v1271_v28 = vpop.f32.mrf.mxu0 }
 0x17e   : > { %v1272_v48 = vadd.f32 %v1271_v28, %v4787_v41  ;;  %v1407_v19 = vmax.f32 %v1270_v55, 0.0 }
 0x17f   : > { %v1273_v43 = vpop.f32.mrf.mxu0 }
 0x180   : > { %v1274_v35 = vadd.f32 %v1273_v43, %v4783_v62  ;;  %v1408_v22 = vmax.f32 %v1272_v48, 0.0 }
 0x181   : > { %v1277_v59 = vpop.f32.mrf.mxu0 }
 0x182   : > { %v1278_v50 = vadd.f32 %v1277_v59, %v4787_v41  ;;  %v1409_v63 = vmax.f32 %v1274_v35, 0.0  ;;  %v1462_v8 = vadd.f32 %v1408_v22, %v1406_v36 }
 0x183   : > { %v1279_v45 = vpop.f32.mrf.mxu0 }
 0x184   : > { %v1280_v57 = vadd.f32 %v1279_v45, %v4783_v62  ;;  %v1410_v34 = vmax.f32 %v1278_v50, 0.0  ;;  %v1463_v6 = vadd.f32 %v1409_v63, %v1407_v19 }
 0x185   : > { %v1281_v53 = vpop.f32.mrf.mxu0 }
 0x186   : > { %v1282_v61 = vadd.f32 %v1281_v53, %v4787_v41  ;;  %v1411_v4 = vmax.f32 %v1280_v57, 0.0 }
 0x187   : > { %v1283_v60 = vpop.f32.mrf.mxu0 }
 0x188   : > { %v1412_v2 = vmax.f32 %v1282_v61, 0.0  ;;  %v1284_v3 = vadd.f32 %v1283_v60, %v4783_v62 }
 0x189   : > { %v1287_v32 = vpop.f32.mrf.mxu0 }
 0x18a   : > { %v1413_v37 = vmax.f32 %v1284_v3, 0.0  ;;  %v1464_v47 = vadd.f32 %v1412_v2, %v1410_v34  ;;  %v1288_v51 = vadd.f32 %v1287_v32, %v4787_v41 }
 0x18b   : > { %v1289_v44 = vpop.f32.mrf.mxu0 }
 0x18c   : > { %v1465_v7 = vadd.f32 %v1413_v37, %v1411_v4  ;;  %v1490_v14 = vpack.c.bf16 %v1464_v47, %v1462_v8  ;;  %v1290_v18 = vadd.f32 %v1289_v44, %v4783_v62  ;;  %v1414_v49 = vmax.f32 %v1288_v51, 0.0 }
 0x18d   : > { %v1291_v10 = vpop.f32.mrf.mxu0 }
 0x18e   : > { %v1491_v11 = vpack.c.bf16 %v1465_v7, %v1463_v6  ;;  %v1292_v15 = vadd.f32 %v1291_v10, %v4787_v41  ;;  %v1415_v52 = vmax.f32 %v1290_v18, 0.0 }
 0x18f   : > { %v1293_v13 = vpop.f32.mrf.mxu0 }
 0x190   : > { %3305 = vmatprep.mubr.msk.bf16.mxu1 %vm1588_vm4, %v1491_v11  ;;  %v1294_v5 = vadd.f32 %v1293_v13, %v4783_v62  ;;  %v1416_v25 = vmax.f32 %v1292_v15, 0.0 }
 0x191   : > { %v1297_v9 = vpop.f32.mrf.mxu0  ;;  %1647 = vmatmul.mubr.bf16.vlgmr.msra.gmra.mxu1 %v1490_v14 }
 0x192   : > { %v1298_v24 = vadd.f32 %v1297_v9, %v4787_v41  ;;  %v1417_v20 = vmax.f32 %v1294_v5, 0.0  ;;  %v1466_v28 = vadd.f32 %v1416_v25, %v1414_v49 }
 0x193   : > { %v1299_v26 = vpop.f32.mrf.mxu0 }
 0x194   : > { %v1300_v40 = vadd.f32 %v1299_v26, %v4783_v62  ;;  %v1418_v27 = vmax.f32 %v1298_v24, 0.0  ;;  %v1467_v38 = vadd.f32 %v1417_v20, %v1415_v52 }
 0x195   : > { %v1301_v17 = vpop.f32.mrf.mxu0 }
 0x196   : > { %v1302_v42 = vadd.f32 %v1301_v17, %v4787_v41  ;;  %v1419_v29 = vmax.f32 %v1300_v40, 0.0 }
 0x197   : > { %v1303_v54 = vpop.f32.mrf.mxu0 }
 0x198   : > { %v1420_v21 = vmax.f32 %v1302_v42, 0.0  ;;  %v1304_v23 = vadd.f32 %v1303_v54, %v4783_v62 }
 0x199   : > { %v1307_v56 = vpop.f32.mrf.mxu0 }
 0x19a   : > { %v1421_v31 = vmax.f32 %v1304_v23, 0.0  ;;  %v1468_v33 = vadd.f32 %v1420_v21, %v1418_v27  ;;  %v1308_v63 = vadd.f32 %v1307_v56, %v4787_v41 }
 0x19b   : > { %v1309_v46 = vpop.f32.mrf.mxu0 }
 0x19c   : > { %v1469_v30 = vadd.f32 %v1421_v31, %v1419_v29  ;;  %v1492_v45 = vpack.c.bf16 %v1468_v33, %v1466_v28  ;;  %v1310_v61 = vadd.f32 %v1309_v46, %v4783_v62  ;;  %v1422_v44 = vmax.f32 %v1308_v63, 0.0 }
 0x19d   : > { %v1311_v43 = vpop.f32.mrf.mxu0 }
 0x19e   : > { %v1493_v58 = vpack.c.bf16 %v1469_v30, %v1467_v38  ;;  %v1312_v53 = vadd.f32 %v1311_v43, %v4787_v41  ;;  %v1423_v37 = vmax.f32 %v1310_v61, 0.0 }
 0x19f   : > { %v1313_v59 = vpop.f32.mrf.mxu0 }
 0x1a0   : > { %3306 = vmatprep.mubr.msk.bf16.mxu1 %vm1588_vm4, %v1493_v58  ;;  %v1314_v50 = vadd.f32 %v1313_v59, %v4783_v62  ;;  %v1424_v32 = vmax.f32 %v1312_v53, 0.0 }
 0x1a1   : > { %v1317_v35 = vpop.f32.mrf.mxu0  ;;  %1655 = vmatmul.mubr.bf16.gmra.mxu1 %v1492_v45 }
 0x1a2   : > { %v1318_v55 = vadd.f32 %v1317_v35, %v4787_v41  ;;  %v1425_v3 = vmax.f32 %v1314_v50, 0.0  ;;  %v1470_v11 = vadd.f32 %v1424_v32, %v1422_v44 }
 0x1a3   : > { %v1319_v48 = vpop.f32.mrf.mxu0 }
 0x1a4   : > { %v1320_v1 = vadd.f32 %v1319_v48, %v4783_v62  ;;  %v1426_v19 = vmax.f32 %v1318_v55, 0.0  ;;  %v1471_v8 = vadd.f32 %v1425_v3, %v1423_v37 }
 0x1a5   : > { %v1321_v57 = vpop.f32.mrf.mxu0 }
 0x1a6   : > { %v1322_v60 = vadd.f32 %v1321_v57, %v4787_v41  ;;  %v1427_v36 = vmax.f32 %v1320_v1, 0.0 }
 0x1a7   : > { %v1323_v2 = vpop.f32.mrf.mxu0 }
 0x1a8   : > { %v1428_v22 = vmax.f32 %v1322_v60, 0.0  ;;  %v1324_v34 = vadd.f32 %v1323_v2, %v4783_v62 }
 0x1a9   : > { %v1327_v4 = vpop.f32.mrf.mxu0 }
 0x1aa   : > { %v1429_v47 = vmax.f32 %v1324_v34, 0.0  ;;  %v1472_v6 = vadd.f32 %v1428_v22, %v1426_v19  ;;  %v1328_v20 = vadd.f32 %v1327_v4, %v4787_v41 }
 0x1ab   : > { %v1329_v7 = vpop.f32.mrf.mxu0 }
 0x1ac   : > { %v1473_v10 = vadd.f32 %v1429_v47, %v1427_v36  ;;  %v1494_v26 = vpack.c.bf16 %v1472_v6, %v1470_v11  ;;  %v1330_v42 = vadd.f32 %v1329_v7, %v4783_v62  ;;  %v1430_v46 = vmax.f32 %v1328_v20, 0.0 }
 0x1ad   : > { %v1331_v13 = vpop.f32.mrf.mxu0 }
 0x1ae   : > { %v1495_v14 = vpack.c.bf16 %v1473_v10, %v1471_v8  ;;  %v1332_v17 = vadd.f32 %v1331_v13, %v4787_v41  ;;  %v1431_v31 = vmax.f32 %v1330_v42, 0.0 }
 0x1af   : > { %v1333_v9 = vpop.f32.mrf.mxu0 }
 0x1b0   : > { %3307 = vmatprep.mubr.msk.bf16.mxu1 %vm1588_vm4, %v1495_v14  ;;  %v1334_v24 = vadd.f32 %v1333_v9, %v4783_v62  ;;  %v1432_v56 = vmax.f32 %v1332_v17, 0.0 }
 0x1b1   : > { %v1337_v5 = vpop.f32.mrf.mxu0  ;;  %1663 = vmatmul.mubr.bf16.gmra.mxu1 %v1494_v26 }
 0x1b2   : > { %v1338_v18 = vadd.f32 %v1337_v5, %v4787_v41  ;;  %v1433_v23 = vmax.f32 %v1334_v24, 0.0  ;;  %v1474_v58 = vadd.f32 %v1432_v56, %v1430_v46 }
 0x1b3   : > { %v1339_v15 = vpop.f32.mrf.mxu0 }
 0x1b4   : > { %v1340_v51 = vadd.f32 %v1339_v15, %v4783_v62  ;;  %v1434_v52 = vmax.f32 %v1338_v18, 0.0  ;;  %v1475_v28 = vadd.f32 %v1433_v23, %v1431_v31 }
 0x1b5   : > { %v1341_v40 = vpop.f32.mrf.mxu0 }
 0x1b6   : > { %v1342_v54 = vadd.f32 %v1341_v40, %v4787_v41  ;;  %v1435_v49 = vmax.f32 %v1340_v51, 0.0 }
 0x1b7   : > { %v1343_v21 = vpop.f32.mrf.mxu0 }
 0x1b8   : > { %v1436_v25 = vmax.f32 %v1342_v54, 0.0  ;;  %v1344_v27 = vadd.f32 %v1343_v21, %v4783_v62 }
 0x1b9   : > { %v1347_v29 = vpop.f32.mrf.mxu0 }
 0x1ba   : > { %v1437_v33 = vmax.f32 %v1344_v27, 0.0  ;;  %v1476_v38 = vadd.f32 %v1436_v25, %v1434_v52  ;;  %v1348_v3 = vadd.f32 %v1347_v29, %v4787_v41 }
 0x1bb   : > { %v1349_v30 = vpop.f32.mrf.mxu0 }
 0x1bc   : > { %v1477_v43 = vadd.f32 %v1437_v33, %v1435_v49  ;;  %v1496_v48 = vpack.c.bf16 %v1476_v38, %v1474_v58  ;;  %v1350_v60 = vadd.f32 %v1349_v30, %v4783_v62  ;;  %v1438_v7 = vmax.f32 %v1348_v3, 0.0 }
 0x1bd   : > { %v1351_v59 = vpop.f32.mrf.mxu0 }
 0x1be   : > { %v1497_v45 = vpack.c.bf16 %v1477_v43, %v1475_v28  ;;  %v1352_v57 = vadd.f32 %v1351_v59, %v4787_v41  ;;  %v1439_v47 = vmax.f32 %v1350_v60, 0.0 }
 0x1bf   : > { %v1353_v35 = vpop.f32.mrf.mxu0 }
 0x1c0   : > { %3308 = vmatprep.mubr.msk.bf16.mxu1 %vm1588_vm4, %v1497_v45  ;;  %v1354_v55 = vadd.f32 %v1353_v35, %v4783_v62  ;;  %v1440_v4 = vmax.f32 %v1352_v57, 0.0 }
 0x1c1   : > { %v1357_v50 = vpop.f32.mrf.mxu0  ;;  %1671 = vmatmul.mubr.bf16.gmra.mxu1 %v1496_v48 }
 0x1c2   : > { %v1358_v61 = vadd.f32 %v1357_v50, %v4787_v41  ;;  %v1441_v34 = vmax.f32 %v1354_v55, 0.0  ;;  %v1478_v14 = vadd.f32 %v1440_v4, %v1438_v7 }
 0x1c3   : > { %v1359_v53 = vpop.f32.mrf.mxu0 }
 0x1c4   : > { %v1360_v63 = vadd.f32 %v1359_v53, %v4783_v62  ;;  %v1442_v37 = vmax.f32 %v1358_v61, 0.0  ;;  %v1479_v11 = vadd.f32 %v1441_v34, %v1439_v47 }
 0x1c5   : > { %v1361_v1 = vpop.f32.mrf.mxu0 }
 0x1c6   : > { %v1362_v2 = vadd.f32 %v1361_v1, %v4787_v41  ;;  %v1443_v44 = vmax.f32 %v1360_v63, 0.0 }
 0x1c7   : > { %v1363_v22 = vpop.f32.mrf.mxu0 }
 0x1c8   : > { %v1444_v32 = vmax.f32 %v1362_v2, 0.0  ;;  %v1364_v19 = vadd.f32 %v1363_v22, %v4783_v62 }
 0x1c9   : > { %v1367_v36 = vpop.f32.mrf.mxu0 }
 0x1ca   : > { %v1445_v6 = vmax.f32 %v1364_v19, 0.0  ;;  %v1480_v8 = vadd.f32 %v1444_v32, %v1442_v37  ;;  %v1368_v23 = vadd.f32 %v1367_v36, %v4787_v41 }
 0x1cb   : > { %v1369_v10 = vpop.f32.mrf.mxu0 }
 0x1cc   : > { %v1481_v13 = vadd.f32 %v1445_v6, %v1443_v44  ;;  %v1498_v15 = vpack.c.bf16 %v1480_v8, %v1478_v14  ;;  %v1370_v54 = vadd.f32 %v1369_v10, %v4783_v62  ;;  %v1446_v30 = vmax.f32 %v1368_v23, 0.0  ;;  %v3933_v23 = vld [vmem:[%s5418_s4 + $0x40] ss:$8 sps:$4 sm:$0xff]  }
 0x1cd   : > { %v1371_v9 = vpop.f32.mrf.mxu0 }
 0x1ce   : > { %v1499_v26 = vpack.c.bf16 %v1481_v13, %v1479_v11  ;;  %v1372_v40 = vadd.f32 %v1371_v9, %v4787_v41  ;;  %v1447_v33 = vmax.f32 %v1370_v54, 0.0  ;;  %v3932_v54 = vld [vmem:[%s5418_s4 + $0x54] ss:$8 sps:$4 sm:$0xff]  }
 0x1cf   : > { %v1373_v5 = vpop.f32.mrf.mxu0 }
 0x1d0   : > { %3309 = vmatprep.mubr.msk.bf16.mxu1 %vm1588_vm4, %v1499_v26  ;;  %v1374_v18 = vadd.f32 %v1373_v5, %v4783_v62  ;;  %v1448_v29 = vmax.f32 %v1372_v40, 0.0  ;;  %v3918_v5 = vld [vmem:[%s5418_s4 + $0x160] ss:$8 sps:$4 sm:$0xff]  }
 0x1d1   : > { %v1377_v24 = vpop.f32.mrf.mxu0  ;;  %1679 = vmatmul.mubr.bf16.gmra.mxu1 %v1498_v15  ;;  %v3920_v15 = vld [vmem:[%s5418_s4 + $0x164] ss:$8 sps:$4 sm:$0xff]   ;;  %v3924_v40 = vld [vmem:[%s5418_s4 + $0x60] ss:$8 sps:$4 sm:$0xff]  }
 0x1d2   : > { %v1378_v42 = vadd.f32 %v1377_v24, %v4787_v41  ;;  %v1449_v27 = vmax.f32 %v1374_v18, 0.0  ;;  %v1482_v45 = vadd.f32 %v1448_v29, %v1446_v30  ;;  %v3923_v24 = vld [vmem:[%s5418_s4 + $0x74] ss:$8 sps:$4 sm:$0xff]   ;;  %v3926_v18 = vld [vmem:[%s5418_s4 + $0x64] ss:$8 sps:$4 sm:$0xff]  }
 0x1d3   : > { %v1379_v17 = vpop.f32.mrf.mxu0  ;;  %2252 = vmatprep.subr.bf16.mxu1 %v3923_v24  ;;  %v3944_v29 = vld [vmem:[%s5418_s4 + $0x24] ss:$8 sps:$4 sm:$0xff]   ;;  %v3957_v30 = vld [vmem:[%s5418_s4 + $0x120] ss:$8 sps:$4 sm:$0xff]  }
 0x1d4   : > { %v1380_v20 = vadd.f32 %v1379_v17, %v4783_v62  ;;  %v1450_v31 = vmax.f32 %v1378_v42, 0.0  ;;  %v1483_v58 = vadd.f32 %v1449_v27, %v1447_v33  ;;  %v3921_v17 = vld [vmem:[%s5418_s4 + $0x70] ss:$8 sps:$4 sm:$0xff]   ;;  %v3938_v27 = vld [vmem:[%s5418_s4 + $0x144] ss:$8 sps:$4 sm:$0xff]  }
 0x1d5   : > { %v1381_v51 = vpop.f32.mrf.mxu0  ;;  %2253 = vmatpush1.bf16.msra.mxu1 %v3921_v17  ;;  %v3927_v42 = vld [vmem:[%s5418_s4 + $0x150] ss:$8 sps:$4 sm:$0xff]   ;;  %v3959_v33 = vld [vmem:[%s5418_s4 + $0x124] ss:$8 sps:$4 sm:$0xff]   ;;  %v3992_v17 = vld [vmem:[%s5418_s4 + $0x180] ss:$8 sps:$4 sm:$0xff]  }
 0x1d6   : > { %v1382_v21 = vadd.f32 %v1381_v51, %v4787_v41  ;;  %v1451_v46 = vmax.f32 %v1380_v20, 0.0  ;;  %2254 = vmatprep.subr.bf16.mxu1 %v3926_v18  ;;  %v3929_v51 = vld [vmem:[%s5418_s4 + $0x154] ss:$8 sps:$4 sm:$0xff]   ;;  %v3930_v20 = vld [vmem:[%s5418_s4 + $0x50] ss:$8 sps:$4 sm:$0xff]  }
 0x1d7   : > { %v1383_v25 = vpop.f32.mrf.mxu0  ;;  %v3994_v24 = vld [vmem:[%s5418_s4 + $0x184] ss:$8 sps:$4 sm:$0xff]  }
 0x1d8   : > { %v1452_v56 = vmax.f32 %v1382_v21, 0.0  ;;  %v1384_v52 = vadd.f32 %v1383_v25, %v4783_v62  ;;  %v3935_v21 = vld [vmem:[%s5418_s4 + $0x44] ss:$8 sps:$4 sm:$0xff]   ;;  %v3936_v25 = vld [vmem:[%s5418_s4 + $0x140] ss:$8 sps:$4 sm:$0xff]  }
 0x1d9   : > { %v1387_v49 = vpop.f32.mrf.mxu0  ;;  %2255 = vmatpush1.bf16.msra.mxu1 %v3924_v40 }
 0x1da   : > { %v1453_v38 = vmax.f32 %v1384_v52, 0.0  ;;  %v1484_v28 = vadd.f32 %v1452_v56, %v1450_v31  ;;  %v1388_v34 = vadd.f32 %v1387_v49, %v4787_v41  ;;  %2256 = vmatprep.subr.bf16.mxu1 %v3932_v54  ;;  %v3941_v56 = vld [vmem:[%s5418_s4 + $0x34] ss:$8 sps:$4 sm:$0xff]   ;;  %v3939_v52 = vld [vmem:[%s5418_s4 + $0x30] ss:$8 sps:$4 sm:$0xff]  }
 0x1db   : > { %v1389_v43 = vpop.f32.mrf.mxu0  ;;  %v3948_v31 = vld [vmem:[%s5418_s4 + $0x130] ss:$8 sps:$4 sm:$0xff]   ;;  %v3950_v49 = vld [vmem:[%s5418_s4 + $0x134] ss:$8 sps:$4 sm:$0xff]  }
 0x1dc   : > { %v1485_v59 = vadd.f32 %v1453_v38, %v1451_v46  ;;  %v1500_v53 = vpack.c.bf16 %v1484_v28, %v1482_v45  ;;  %v1390_v2 = vadd.f32 %v1389_v43, %v4783_v62  ;;  %v1454_v8 = vmax.f32 %v1388_v34, 0.0  ;;  %v3942_v46 = vld [vmem:[%s5418_s4 + $0x20] ss:$8 sps:$4 sm:$0xff]   ;;  %v3947_v38 = vld [vmem:[%s5418_s4 + $0x14] ss:$8 sps:$4 sm:$0xff]  }
 0x1dd   : > { %v1391_v35 = vpop.f32.mrf.mxu0  ;;  %2257 = vmatpush1.bf16.msra.mxu1 %v3930_v20  ;;  %v3945_v28 = vld [vmem:[%s5418_s4 + $0x10] ss:$8 sps:$4 sm:$0xff]   ;;  %v3953_v43 = vld [vmem:[%s5418_s4 + $0x4] ss:$8 sps:$4 sm:$0xff]  }
 0x1de   : > { %v1501_v48 = vpack.c.bf16 %v1485_v59, %v1483_v58  ;;  %v1392_v1 = vadd.f32 %v1391_v35, %v4787_v41  ;;  %v1455_v44 = vmax.f32 %v1390_v2, 0.0  ;;  %2258 = vmatprep.subr.bf16.mxu1 %v3935_v21  ;;  %v3951_v58 = vld [vmem:[%s5418_s4] ss:$8 sps:$4 sm:$0xff]   ;;  %v3956_v59 = vld [vmem:[%s5418_s4 + $0xf4] ss:$8 sps:$4 sm:$0xff]  }
 0x1df   : > { %v1393_v50 = vpop.f32.mrf.mxu0  ;;  %v3954_v45 = vld [vmem:[%s5418_s4 + $0xf0] ss:$8 sps:$4 sm:$0xff]   ;;  %v3962_v35 = vld [vmem:[%s5418_s4 + $0xe4] ss:$8 sps:$4 sm:$0xff]  }
 0x1e0   : > { %3310 = vmatprep.mubr.msk.bf16.mxu1 %vm1588_vm4, %v1501_v48  ;;  %v1394_v61 = vadd.f32 %v1393_v50, %v4783_v62  ;;  %v1456_v36 = vmax.f32 %v1392_v1, 0.0  ;;  %v3960_v48 = vld [vmem:[%s5418_s4 + $0xe0] ss:$8 sps:$4 sm:$0xff]   ;;  %v3965_v50 = vld [vmem:[%s5418_s4 + $0xd4] ss:$8 sps:$4 sm:$0xff]  }
 0x1e1   : > { %v1397_v55 = vpop.f32.mrf.mxu0  ;;  %1687 = vmatmul.mubr.bf16.gmra.mxu1 %v1500_v53  ;;  %v3969_v2 = vld [vmem:[%s5418_s4 + $0x110] ss:$8 sps:$4 sm:$0xff]  }
 0x1e2   : > { %v1398_v60 = vadd.f32 %v1397_v55, %v4787_v41  ;;  %v1457_v19 = vmax.f32 %v1394_v61, 0.0  ;;  %v1486_v14 = vadd.f32 %v1456_v36, %v1454_v8  ;;  %2259 = vmatpush1.bf16.msra.mxu1 %v3933_v23  ;;  %v3963_v55 = vld [vmem:[%s5418_s4 + $0xd0] ss:$8 sps:$4 sm:$0xff]   ;;  %v1951_v36 = vld [vmem:[%s5418_s4 + $0x1a0] sm:$0x33] }
 0x1e3   : > { %v1399_v57 = vpop.f32.mrf.mxu0  ;;  %2260 = vmatprep.subr.bf16.mxu1 %v3941_v56  ;;  %v3972_v34 = vld [vmem:[%s5418_s4 + $0xb0] ss:$8 sps:$4 sm:$0xff]  }
 0x1e4   : > { %v1400_v3 = vadd.f32 %v1399_v57, %v4783_v62  ;;  %v1458_v47 = vmax.f32 %v1398_v60, 0.0  ;;  %v1487_v11 = vadd.f32 %v1457_v19, %v1455_v44  ;;  %v3968_v60 = vld [vmem:[%s5418_s4 + $0xc4] ss:$8 sps:$4 sm:$0xff]   ;;  %v3984_v44 = vld [vmem:[%s5418_s4 + $0x94] ss:$8 sps:$4 sm:$0xff]  }
 0x1e5   : > { %v1401_v63 = vpop.f32.mrf.mxu0  ;;  %v3977_v19 = vld [vmem:[%s5418_s4 + $0x104] ss:$8 sps:$4 sm:$0xff]  }
 0x1e6   : > { %v1402_v22 = vadd.f32 %v1401_v63, %v4787_v41  ;;  %v1459_v6 = vmax.f32 %v1400_v3, 0.0  ;;  %v3915_v41 = vld [vmem:[%s5418_s4 + $0x170] ss:$8 sps:$4 sm:$0xff]   ;;  %2261 = vmatpush1.bf16.msra.mxu1 %v3939_v52  ;;  %v3966_v63 = vld [vmem:[%s5418_s4 + $0xc0] ss:$8 sps:$4 sm:$0xff]  }
 0x1e7   : > { %v1403_v32 = vpop.f32.mrf.mxu0  ;;  %2262 = vmatprep.subr.bf16.mxu1 %v3944_v29  ;;  %v3971_v3 = vld [vmem:[%s5418_s4 + $0x114] ss:$8 sps:$4 sm:$0xff]  }
 0x1e8   : > { %v1460_v4 = vmax.f32 %v1402_v22, 0.0  ;;  %v1404_v37 = vadd.f32 %v1403_v32, %v4783_v62  ;;  %v3917_v62 = vld [vmem:[%s5418_s4 + $0x174] ss:$8 sps:$4 sm:$0xff]   ;;  %v3975_v32 = vld [vmem:[%s5418_s4 + $0x100] ss:$8 sps:$4 sm:$0xff]  }
 0x1e9   : > { %2335 = vmatprep.subr.bf16.mxu0 %v3917_v62  ;;  %v3974_v22 = vld [vmem:[%s5418_s4 + $0xb4] ss:$8 sps:$4 sm:$0xff]   ;;  %v3986_v62 = vld [vmem:[%s5418_s4 + $0x190] ss:$8 sps:$4 sm:$0xff]  }
 0x1ea   : > { %v1461_v7 = vmax.f32 %v1404_v37, 0.0  ;;  %v1488_v10 = vadd.f32 %v1460_v4, %v1458_v47  ;;  %2336 = vmatpush1.bf16.msra.mxu0 %v3915_v41  ;;  %2263 = vmatpush1.bf16.msra.mxu1 %v3942_v46  ;;  %v3978_v4 = vld [vmem:[%s5418_s4 + $0xa0] ss:$8 sps:$4 sm:$0xff]   ;;  %v3980_v37 = vld [vmem:[%s5418_s4 + $0xa4] ss:$8 sps:$4 sm:$0xff]   ;;  %v3365_v47 = vcombine.high %v1951_v36, %v1951_v36 }
 0x1eb   : > { %2337 = vmatprep.subr.bf16.mxu0 %v3920_v15  ;;  %2264 = vmatprep.subr.bf16.mxu1 %v3947_v38  ;;  %v3991_v15 = vld [vmem:[%s5418_s4 + $0x84] ss:$8 sps:$4 sm:$0xff]  }
 0x1ec   : > { %v1489_v13 = vadd.f32 %v1461_v7, %v1459_v6  ;;  %v1502_v26 = vpack.c.bf16 %v1488_v10, %v1486_v14  ;;  %v3364_v6 = vcombine.low %v1951_v36, %v1951_v36  ;;  %v3982_v10 = vld [vmem:[%s5418_s4 + $0x90] ss:$8 sps:$4 sm:$0xff]  }
 0x1ee   : > { %v1503_v9 = vpack.c.bf16 %v1489_v13, %v1487_v11  ;;  %2338 = vmatpush1.bf16.msra.mxu0 %v3918_v5  ;;  %2265 = vmatpush1.bf16.msra.mxu1 %v3945_v28  ;;  %v2247_v11 = vsel %vm2245_vm5, %v3364_v6, 0  ;;  %v3989_v5 = vld [vmem:[%s5418_s4 + $0x80] ss:$8 sps:$4 sm:$0xff]  }
 0x1ef   : > { %2339 = vmatprep.subr.bf16.mxu0 %v3929_v51  ;;  %2266 = vmatprep.subr.bf16.mxu1 %v3953_v43 }
 0x1f0   : > { %3311 = vmatprep.mubr.msk.bf16.mxu1 %vm1588_vm4, %v1503_v9 }
 0x1f1   : > { %1695 = vmatmul.mubr.bf16.gmra.mxu1 %v1502_v26  ;;  %v3988_v26 = vld [vmem:[%s5418_s4 + $0x194] ss:$8 sps:$4 sm:$0xff]  }
 0x1f2   : > { %2340 = vmatpush1.bf16.msra.mxu0 %v3927_v42  ;;  %2267 = vmatpush1.bf16.msra.mxu1 %v3951_v58 }
 0x1f3   : > { %2341 = vmatprep.subr.bf16.mxu0 %v3938_v27  ;;  %2268 = vmatprep.subr.bf16.mxu1 %v3956_v59 }
 0x1f6   : > { %2342 = vmatpush1.bf16.msra.mxu0 %v3936_v25  ;;  %2269 = vmatpush2.bf16.msra.mxu1 %v3954_v45 }
 0x1f7   : > { %2343 = vmatprep.subr.bf16.mxu0 %v3950_v49  ;;  %2270 = vmatprep.subr.bf16.mxu1 %v3962_v35 }
 0x1fa   : > { %2344 = vmatpush1.bf16.msra.mxu0 %v3948_v31  ;;  %2271 = vmatpush2.bf16.msra.mxu1 %v3960_v48 }
 0x1fb   : > { %2345 = vmatprep.subr.bf16.mxu0 %v3959_v33  ;;  %2272 = vmatprep.subr.bf16.mxu1 %v3965_v50 }
 0x1fe   : > { %2346 = vmatpush1.bf16.msra.mxu0 %v3957_v30  ;;  %2273 = vmatpush2.bf16.msra.mxu1 %v3963_v55 }
 0x1ff   : > { %2274 = vmatprep.subr.bf16.mxu1 %v3968_v60  ;;  %2347 = vmatprep.subr.bf16.mxu0 %v3971_v3 }
 0x202   : > { %2275 = vmatpush2.bf16.msra.mxu1 %v3966_v63  ;;  %2348 = vmatpush1.bf16.msra.mxu0 %v3969_v2 }
 0x203   : > { %2276 = vmatprep.subr.bf16.mxu1 %v3974_v22  ;;  %2349 = vmatprep.subr.bf16.mxu0 %v3977_v19 }
 0x206   : > { %2277 = vmatpush2.bf16.msra.mxu1 %v3972_v34  ;;  %2350 = vmatpush1.bf16.msra.mxu0 %v3975_v32 }
 0x207   : > { %2278 = vmatprep.subr.bf16.mxu1 %v3980_v37  ;;  %3366 = vmatprep.subr.msk.bf16.mxu0 %vm2245_vm5, %v3365_v47 }
 0x20a   : > { %2279 = vmatpush2.bf16.msra.mxu1 %v3978_v4  ;;  %2362 = vmatpush2.bf16.msra.mxu0 %v2247_v11 }
 0x20b   : > { %2280 = vmatprep.subr.bf16.mxu1 %v3984_v44  ;;  %2363 = vmatprep.subr.bf16.mxu0 %v3988_v26 }
 0x20e   : > { %2281 = vmatpush2.bf16.msra.mxu1 %v3982_v10  ;;  %2364 = vmatpush2.bf16.msra.mxu0 %v3986_v62 }
 0x20f   : > { %2282 = vmatprep.subr.bf16.mxu1 %v3991_v15  ;;  %2365 = vmatprep.subr.bf16.mxu0 %v3994_v24 }
 0x212   : > { %2283 = vmatpush2.bf16.msra.mxu1 %v3989_v5  ;;  %2366 = vmatpush2.bf16.msra.mxu0 %v3992_v17 }
 0x213   : > { %2543 = vmatprep.subr.bf16.mxu1 %v4111_v0  ;;  %2875 = vmatprep.subr.bf16.mxu0 %v4111_v0 }
 0x251   : > { %v4951_v53 = vpop.f32.mrf.mxu1 }
 0x253   : > { %v1650_v57 = vpop.f32.mrf.mxu1 }
 0x255   : > { %v4956_v61 = vpop.f32.mrf.mxu1 }
 0x257   : > { %v1653_v1 = vpop.f32.mrf.mxu1 }
 0x261   : > { %v4994_v7 = vpop.f32.mrf.mxu1 }
 0x262   : > { %v3774_v8 = vpack.i.bf16 %v4994_v7, %v4956_v61 }
 0x263   : > { %v1658_v13 = vpop.f32.mrf.mxu1 }
 0x264   : > { %3775 = vrot.lane.b32.xlu0 %v3774_v8, %s4112_s23  ;;  %v3995_v13 = vld [vmem:[%s5420_s6 + $0x38] sm:$0xff]  }
 0x265   : > { %v5002_v14 = vpop.f32.mrf.mxu1 }
 0x266   : > { %v3779_v9 = vpack.i.bf16 %v5002_v14, %v4994_v7 }
 0x267   : > { %v1661_v41 = vpop.f32.mrf.mxu1 }
 0x268   : > { %3780 = vrot.lane.b32.xlu1 %v3779_v9, %s4113_s30 }
 0x271   : > { %v5027_v18 = vpop.f32.mrf.mxu1 }
 0x272   : > { %v3784_v40 = vpack.i.bf16 %v5027_v18, %v5002_v14 }
 0x273   : > { %v1666_v42 = vpop.f32.mrf.mxu1 }
 0x274   : > { %3785 = vrot.lane.b32.xlu0 %v3784_v40, %s4114_s17 }
 0x275   : > { %v5032_v51 = vpop.f32.mrf.mxu1 }
 0x276   : > { %v3794_v54 = vpack.i.bf16 %v5032_v51, %v5027_v18 }
 0x277   : > { %v1669_v20 = vpop.f32.mrf.mxu1 }
 0x278   : > { %3790 = vrot.lane.b32.xlu0 %v3784_v40, %s4112_s23  ;;  %3795 = vrot.lane.b32.xlu1 %v3794_v54, %s5437_s24 }
 0x27c   : > { %3800 = vrot.lane.b32.xlu1 %v3794_v54, %s4113_s30 }
 0x281   : > { %v5039_v21 = vpop.f32.mrf.mxu1 }
 0x282   : > { %v3804_v23 = vpack.i.bf16 %v5039_v21, %v5032_v51 }
 0x283   : > { %v1674_v25 = vpop.f32.mrf.mxu1 }
 0x284   : > { %3805 = vrot.lane.b32.xlu0 %v3804_v23, %s4114_s17 }
 0x285   : > { %v5044_v27 = vpop.f32.mrf.mxu1 }
 0x286   : > { %v3814_v56 = vpack.i.bf16 %v5044_v27, %v5039_v21 }
 0x287   : > { %v1677_v52 = vpop.f32.mrf.mxu1 }
 0x288   : > { %3810 = vrot.lane.b32.xlu0 %v3804_v23, %s4112_s23  ;;  %3815 = vrot.lane.b32.xlu1 %v3814_v56, %s5437_s24 }
 0x28c   : > { %3820 = vrot.lane.b32.xlu1 %v3814_v56, %s4113_s30 }
 0x291   : > { %v5051_v29 = vpop.f32.mrf.mxu1 }
 0x292   : > { %v3824_v31 = vpack.i.bf16 %v5051_v29, %v5044_v27 }
 0x293   : > { %v1682_v49 = vpop.f32.mrf.mxu1 }
 0x294   : > { %3825 = vrot.lane.b32.xlu0 %v3824_v31, %s4114_s17 }
 0x295   : > { %v5056_v33 = vpop.f32.mrf.mxu1 }
 0x296   : > { %v3834_v46 = vpack.i.bf16 %v5056_v33, %v5051_v29 }
 0x297   : > { %v1685_v38 = vpop.f32.mrf.mxu1 }
 0x298   : > { %3830 = vrot.lane.b32.xlu0 %v3824_v31, %s4112_s23  ;;  %3835 = vrot.lane.b32.xlu1 %v3834_v46, %s5437_s24 }
 0x29c   : > { %3840 = vrot.lane.b32.xlu1 %v3834_v46, %s4113_s30 }
 0x2a1   : > { %v1688_v30 = vpop.f32.mrf.mxu1 }
 0x2a2   : > { %v3844_v28 = vpack.i.bf16 %v1688_v30, %v5056_v33 }
 0x2a3   : > { %v1690_v43 = vpop.f32.mrf.mxu1 }
 0x2a4   : > { %3845 = vrot.lane.b32.xlu0 %v3844_v28, %s4114_s17 }
 0x2a5   : > { %v1691_v58 = vpop.f32.mrf.mxu1 }
 0x2a6   : > { %v3849_v59 = vpack.i.bf16 %v1691_v58, %v1688_v30 }
 0x2a7   : > { %v1693_v45 = vpop.f32.mrf.mxu1 }
 0x2a8   : > { %3855 = vrot.lane.b32.xlu0 %v3844_v28, %s4112_s23  ;;  %3850 = vrot.lane.b32.xlu1 %v3849_v59, %s5437_s24 }
 0x2ac   : > { %3860 = vrot.lane.b32.xlu1 %v3849_v59, %s4113_s30 }
 0x2b1   : > { %v1696_v35 = vpop.f32.mrf.mxu1 }
 0x2b2   : > { %v3864_v48 = vpack.i.bf16 %v1696_v35, %v1691_v58 }
 0x2b3   : > { %v1698_v50 = vpop.f32.mrf.mxu1 }
 0x2b4   : > { %3865 = vrot.lane.b32.xlu0 %v3864_v48, %s4114_s17  ;;  %s5448_s17 = smov 80  }
 0x2b5   : > { %v1699_v55 = vpop.f32.mrf.mxu1 }
 0x2b6   : > { %v3869_v57 = vpack.i.bf16 %v1699_v55, %v1696_v35 }
 0x2b7   : > { %v1701_v1 = vpop.f32.mrf.mxu1 }
 0x2b8   : > { %3870 = vrot.lane.b32.xlu1 %v3869_v57, %s5437_s24 }
 0x2d6   : > { %v3776_v60 = vpop.permute.xlu0 %3775 }
 0x2d7   : > { %v3778_v2 = vunpack.i.h.bf16 %v3776_v60  ;;  %v3777_v3 = vunpack.i.l.bf16 %v3776_v60 }
 0x2d9   : > { %v1739_v37 = vsel %vm1719_vm6, %v4956_v61, %v3778_v2  ;;  %v1720_v36 = vsel %vm1719_vm6, %v4951_v53, %v3777_v3 }
 0x2da   : > { %v3781_v63 = vpop.permute.xlu1 %3780  ;;  %v1879_v9 = vpack.c.bf16 %v1739_v37, %v1720_v36 }
 0x2db   : > { %v3783_v22 = vunpack.i.h.bf16 %v3781_v63  ;;  %v3782_v34 = vunpack.i.l.bf16 %v3781_v63 }
 0x2dd   : > { %v1740_v47 = vsel %vm1588_vm4, %v3778_v2, %v3783_v22  ;;  %v1721_v44 = vsel %vm1588_vm4, %v3777_v3, %v3782_v34 }
 0x2e6   : > { %v3786_v32 = vpop.permute.xlu0 %3785 }
 0x2e7   : > { %v3788_v19 = vunpack.i.h.bf16 %v3786_v32  ;;  %v3787_v4 = vunpack.i.l.bf16 %v3786_v32 }
 0x2e9   : > { %v1723_v6 = vsel %vm1722_vm7, %v1721_v44, %v3787_v4  ;;  %v1741_v8 = vsel %vm1722_vm7, %v1740_v47, %v3788_v19 }
 0x2ea   : > { %v3796_v10 = vpop.permute.xlu1 %3795  ;;  %v1880_v11 = vpack.c.bf16 %v1741_v8, %v1723_v6  ;;  %v3791_v15 = vpop.permute.xlu0 %3790 }
 0x2eb   : > { %v3798_v61 = vunpack.i.h.bf16 %v3796_v10  ;;  %v3797_v26 = vunpack.i.l.bf16 %v3796_v10  ;;  %v3793_v17 = vunpack.i.h.bf16 %v3791_v15  ;;  %v3792_v40 = vunpack.i.l.bf16 %v3791_v15 }
 0x2ec   : > { %2284 = vmatprep.mubr.bf16.mxu1 %v1880_v11 }
 0x2ed   : > { %v1742_v53 = vsel %vm1724_vm8, %v3788_v19, %v3798_v61  ;;  %v1725_v41 = vsel %vm1724_vm8, %v3787_v4, %v3797_v26  ;;  %v1882_v62 = vpack.c.bf16 %v3798_v61, %v3797_v26  ;;  %2285 = vmatmul.mubr.bf16.vlgmr.msra.gmra.mxu1 %v1879_v9  ;;  %v1756_v31 = vsel %vm1719_vm6, %v4994_v7, %v3792_v40 }
 0x2ee   : > { %v1881_v5 = vpack.c.bf16 %v1742_v53, %v1725_v41  ;;  %2544 = vmatpush1.bf16.msra.mxu1 %v3995_v13  ;;  %v3801_v24 = vpop.permute.xlu1 %3800  ;;  %v1773_v49 = vsel %vm1719_vm6, %v5002_v14, %v3793_v17 }
 0x2ef   : > { %3367 = vmatprep.mubr.msk.bf16.mxu0 %vm2229_vm9, %v1882_v62  ;;  %2545 = vmatprep.subr.bf16.mxu1 %v4111_v0  ;;  %v3803_v42 = vunpack.i.h.bf16 %v3801_v24  ;;  %v3802_v54 = vunpack.i.l.bf16 %v3801_v24  ;;  %v1883_v59 = vpack.c.bf16 %v1773_v49, %v1756_v31 }
 0x2f0   : > { %2368 = vmatmul.mubr.bf16.vlgmr.msra.gmra.mxu0 %v1881_v5 }
 0x2f1   : > { %v1774_v56 = vsel %vm1588_vm4, %v3793_v17, %v3803_v42  ;;  %v1757_v52 = vsel %vm1588_vm4, %v3792_v40, %v3802_v54 }
 0x2f6   : > { %v3806_v20 = vpop.permute.xlu0 %3805 }
 0x2f7   : > { %v3808_v23 = vunpack.i.h.bf16 %v3806_v20  ;;  %v3807_v25 = vunpack.i.l.bf16 %v3806_v20 }
 0x2f9   : > { %v1758_v46 = vsel %vm1722_vm7, %v1757_v52, %v3807_v25  ;;  %v1775_v38 = vsel %vm1722_vm7, %v1774_v56, %v3808_v23 }
 0x2fa   : > { %v3816_v30 = vpop.permute.xlu1 %3815  ;;  %v1884_v28 = vpack.c.bf16 %v1775_v38, %v1758_v46  ;;  %v3811_v14 = vpop.permute.xlu0 %3810 }
 0x2fb   : > { %v3818_v43 = vunpack.i.h.bf16 %v3816_v30  ;;  %v3817_v58 = vunpack.i.l.bf16 %v3816_v30  ;;  %v3813_v55 = vunpack.i.h.bf16 %v3811_v14  ;;  %v3812_v57 = vunpack.i.l.bf16 %v3811_v14 }
 0x2fc   : > { %2294 = vmatprep.mubr.bf16.mxu1 %v1884_v28 }
 0x2fd   : > { %v1886_v45 = vpack.c.bf16 %v3818_v43, %v3817_v58  ;;  %2295 = vmatmul.mubr.bf16.gmra.mxu1 %v1883_v59  ;;  %v1759_v35 = vsel %vm1724_vm8, %v3807_v25, %v3817_v58  ;;  %v1776_v48 = vsel %vm1724_vm8, %v3808_v23, %v3818_v43  ;;  %v1790_v32 = vsel %vm1719_vm6, %v5027_v18, %v3812_v57 }
 0x2fe   : > { %v1885_v7 = vpack.c.bf16 %v1776_v48, %v1759_v35  ;;  %v3821_v50 = vpop.permute.xlu1 %3820  ;;  %v1807_v19 = vsel %vm1719_vm6, %v5032_v51, %v3813_v55 }
 0x2ff   : > { %3368 = vmatprep.mubr.msk.bf16.mxu0 %vm2229_vm9, %v1886_v45  ;;  %v3823_v1 = vunpack.i.h.bf16 %v3821_v50  ;;  %v3822_v60 = vunpack.i.l.bf16 %v3821_v50  ;;  %v1887_v8 = vpack.c.bf16 %v1807_v19, %v1790_v32 }
 0x300   : > { %2378 = vmatmul.mubr.bf16.gmra.mxu0 %v1885_v7 }
 0x301   : > { %v1808_v22 = vsel %vm1588_vm4, %v3813_v55, %v3823_v1  ;;  %v1791_v34 = vsel %vm1588_vm4, %v3812_v57, %v3822_v60 }
 0x306   : > { %v3826_v63 = vpop.permute.xlu0 %3825 }
 0x307   : > { %v3828_v2 = vunpack.i.h.bf16 %v3826_v63  ;;  %v3827_v3 = vunpack.i.l.bf16 %v3826_v63 }
 0x309   : > { %v1792_v4 = vsel %vm1722_vm7, %v1791_v34, %v3827_v3  ;;  %v1809_v37 = vsel %vm1722_vm7, %v1808_v22, %v3828_v2  ;;  %v3996_v34 = vld [vmem:[%s5420_s6 + $0x30] sm:$0xff]  }
 0x30a   : > { %v3836_v36 = vpop.permute.xlu1 %3835  ;;  %v1888_v47 = vpack.c.bf16 %v1809_v37, %v1792_v4  ;;  %v3831_v51 = vpop.permute.xlu0 %3830  ;;  %2546 = vmatpush1.bf16.msra.mxu1 %v3996_v34  ;;  %v3997_v4 = vld [vmem:[%s5420_s6 + $0x28] sm:$0xff]   ;;  %v3998_v37 = vld [vmem:[%s5420_s6 + $0x20] sm:$0xff]  }
 0x30b   : > { %v3838_v44 = vunpack.i.h.bf16 %v3836_v36  ;;  %v3837_v6 = vunpack.i.l.bf16 %v3836_v36  ;;  %v3833_v61 = vunpack.i.h.bf16 %v3831_v51  ;;  %v3832_v26 = vunpack.i.l.bf16 %v3831_v51  ;;  %2547 = vmatprep.subr.bf16.mxu1 %v4111_v0  ;;  %v3999_v36 = vld [vmem:[%s5420_s6 + $0x18] sm:$0xff]  }
 0x30c   : > { %2304 = vmatprep.mubr.bf16.mxu1 %v1888_v47  ;;  %v4000_v47 = vld [vmem:[%s5420_s6 + $0x10] sm:$0xff]  }
 0x30d   : > { %v1890_v10 = vpack.c.bf16 %v3838_v44, %v3837_v6  ;;  %2305 = vmatmul.mubr.bf16.gmra.mxu1 %v1887_v8  ;;  %v1793_v11 = vsel %vm1724_vm8, %v3827_v3, %v3837_v6  ;;  %v1810_v13 = vsel %vm1724_vm8, %v3828_v2, %v3838_v44  ;;  %v1824_v40 = vsel %vm1719_vm6, %v5039_v21, %v3832_v26  ;;  %v4001_v44 = vld [vmem:[%s5420_s6 + $0x8] sm:$0xff]   ;;  %v4002_v6 = vld [vmem:[%s5420_s6] sm:$0xff]  }
 0x30e   : > { %v1889_v18 = vpack.c.bf16 %v1810_v13, %v1793_v11  ;;  %v3841_v9 = vpop.permute.xlu1 %3840  ;;  %v1841_v42 = vsel %vm1719_vm6, %v5044_v27, %v3833_v61  ;;  %2548 = vmatpush1.bf16.msra.mxu1 %v3997_v4  ;;  %v4003_v8 = vld [vmem:[%s5420_s6 + $0x48] sm:$0xff]  }
 0x30f   : > { %3369 = vmatprep.mubr.msk.bf16.mxu0 %vm2229_vm9, %v1890_v10  ;;  %v3843_v53 = vunpack.i.h.bf16 %v3841_v9  ;;  %v3842_v41 = vunpack.i.l.bf16 %v3841_v9  ;;  %v1891_v31 = vpack.c.bf16 %v1841_v42, %v1824_v40  ;;  %2549 = vmatprep.subr.bf16.mxu1 %v4111_v0  ;;  %v4004_v10 = vld [vmem:[%s5420_s6 + $0x40] sm:$0xff]  }
 0x310   : > { %2388 = vmatmul.mubr.bf16.gmra.mxu0 %v1889_v18 }
 0x311   : > { %v1842_v24 = vsel %vm1588_vm4, %v3833_v61, %v3843_v53  ;;  %v1825_v17 = vsel %vm1588_vm4, %v3832_v26, %v3842_v41  ;;  %v1952_v26 = vld [vmem:[%s5419_s5] sm:$0x3] }
 0x312   : > { %2550 = vmatpush1.bf16.msra.mxu1 %v3998_v37  ;;  %v5169_v41 = vrot.slane %v1952_v26, %v1087_v16 }
 0x313   : > { %2551 = vmatprep.subr.bf16.mxu1 %v4111_v0 }
 0x316   : > { %v3846_v62 = vpop.permute.xlu0 %3845  ;;  %2552 = vmatpush1.bf16.msra.mxu1 %v3999_v36 }
 0x317   : > { %v3848_v5 = vunpack.i.h.bf16 %v3846_v62  ;;  %v3847_v15 = vunpack.i.l.bf16 %v3846_v62  ;;  %2553 = vmatprep.subr.bf16.mxu1 %v4111_v0 }
 0x319   : > { %v1826_v54 = vsel %vm1722_vm7, %v1825_v17, %v3847_v15  ;;  %v1843_v20 = vsel %vm1722_vm7, %v1842_v24, %v3848_v5 }
 0x31a   : > { %v3851_v23 = vpop.permute.xlu1 %3850  ;;  %v1892_v25 = vpack.c.bf16 %v1843_v20, %v1826_v54  ;;  %v3856_v27 = vpop.permute.xlu0 %3855  ;;  %2554 = vmatpush1.bf16.msra.mxu1 %v4000_v47 }
 0x31b   : > { %v3853_v56 = vunpack.i.h.bf16 %v3851_v23  ;;  %v3852_v52 = vunpack.i.l.bf16 %v3851_v23  ;;  %v3858_v28 = vunpack.i.h.bf16 %v3856_v27  ;;  %v3857_v43 = vunpack.i.l.bf16 %v3856_v27  ;;  %2555 = vmatprep.subr.bf16.mxu1 %v4111_v0 }
 0x31c   : > { %2314 = vmatprep.mubr.bf16.mxu1 %v1892_v25 }
 0x31d   : > { %v1894_v49 = vpack.c.bf16 %v3853_v56, %v3852_v52  ;;  %2315 = vmatmul.mubr.bf16.gmra.mxu1 %v1891_v31  ;;  %v1827_v46 = vsel %vm1724_vm8, %v3847_v15, %v3852_v52  ;;  %v1844_v38 = vsel %vm1724_vm8, %v3848_v5, %v3853_v56  ;;  %v1858_v50 = vsel %vm1719_vm6, %v5051_v29, %v3857_v43 }
 0x31e   : > { %v1893_v21 = vpack.c.bf16 %v1844_v38, %v1827_v46  ;;  %v3861_v30 = vpop.permute.xlu1 %3860  ;;  %v1875_v55 = vsel %vm1719_vm6, %v5056_v33, %v3858_v28  ;;  %2556 = vmatpush1.bf16.msra.mxu1 %v4001_v44  ;;  %v5173_v5 = vrot.slane %v1952_v26, %v1083_v12 }
 0x31f   : > { %3370 = vmatprep.mubr.msk.bf16.mxu0 %vm2229_vm9, %v1894_v49  ;;  %v3863_v58 = vunpack.i.h.bf16 %v3861_v30  ;;  %v3862_v59 = vunpack.i.l.bf16 %v3861_v30  ;;  %v1895_v22 = vpack.c.bf16 %v1875_v55, %v1858_v50  ;;  %2557 = vmatprep.subr.bf16.mxu1 %v4111_v0 }
 0x320   : > { %2398 = vmatmul.mubr.bf16.gmra.mxu0 %v1893_v21 }
 0x321   : > { %v1876_v7 = vsel %vm1588_vm4, %v3858_v28, %v3863_v58  ;;  %v1859_v14 = vsel %vm1588_vm4, %v3857_v43, %v3862_v59 }
 0x322   : > { %2558 = vmatpush1.bf16.msra.mxu1 %v4002_v6 }
 0x323   : > { %2571 = vmatprep.subr.bf16.mxu1 %v4111_v0 }
 0x326   : > { %v3866_v45 = vpop.permute.xlu0 %3865  ;;  %2572 = vmatpush2.bf16.msra.mxu1 %v4003_v8 }
 0x327   : > { %v3868_v35 = vunpack.i.h.bf16 %v3866_v45  ;;  %v3867_v48 = vunpack.i.l.bf16 %v3866_v45  ;;  %2573 = vmatprep.subr.bf16.mxu1 %v4111_v0 }
 0x329   : > { %v1860_v57 = vsel %vm1722_vm7, %v1859_v14, %v3867_v48  ;;  %v1877_v1 = vsel %vm1722_vm7, %v1876_v7, %v3868_v35 }
 0x32a   : > { %v3871_v60 = vpop.permute.xlu1 %3870  ;;  %v1896_v63 = vpack.c.bf16 %v1877_v1, %v1860_v57  ;;  %2574 = vmatpush2.bf16.msra.mxu1 %v4004_v10 }
 0x32b   : > { %v3873_v2 = vunpack.i.h.bf16 %v3871_v60  ;;  %v3872_v3 = vunpack.i.l.bf16 %v3871_v60 }
 0x32c   : > { %2324 = vmatprep.mubr.bf16.mxu1 %v1896_v63 }
 0x32d   : > { %v1898_v32 = vpack.c.bf16 %v3873_v2, %v3872_v3  ;;  %2325 = vmatmul.mubr.bf16.gmra.mxu1 %v1895_v22  ;;  %v1861_v29 = vsel %vm1724_vm8, %v3867_v48, %v3872_v3  ;;  %v1878_v33 = vsel %vm1724_vm8, %v3868_v35, %v3873_v2 }
 0x32e   : > { %v1897_v19 = vpack.c.bf16 %v1878_v33, %v1861_v29 }
 0x32f   : > { %3371 = vmatprep.mubr.msk.bf16.mxu0 %vm2229_vm9, %v1898_v32 }
 0x330   : > { %2408 = vmatmul.mubr.bf16.gmra.mxu0 %v1897_v19 }
 0x3ad   : > { %v2286_v11 = vpop.f32.mrf.mxu1 }
 0x3ae   : > { %v2287_v25 = vadd.f32 %v2286_v11, %v5173_v5 }
 0x3af   : > { %v2288_v18 = vpop.f32.mrf.mxu1 }
 0x3b0   : > { %v2369_v13 = vpop.f32.mrf.mxu0  ;;  %v2289_v20 = vadd.f32 %v2288_v18, %v5169_v41 }
 0x3b1   : > { %v2290_v9 = vpop.f32.mrf.mxu1  ;;  %v2370_v28 = vadd.f32 %v2369_v13, %v2287_v25 }
 0x3b2   : > { %v2371_v51 = vpop.f32.mrf.mxu0  ;;  %v2291_v40 = vadd.f32 %v2290_v9, %v5173_v5 }
 0x3b3   : > { %v2292_v53 = vpop.f32.mrf.mxu1  ;;  %v2372_v21 = vadd.f32 %v2371_v51, %v2289_v20  ;;  %v2418_v55 = vmax.f32 %v2370_v28, 0.0 }
 0x3b4   : > { %v2373_v61 = vpop.f32.mrf.mxu0  ;;  %v2293_v24 = vadd.f32 %v2292_v53, %v5169_v41 }
 0x3b5   : > { %v2374_v31 = vadd.f32 %v2373_v61, %v2291_v40  ;;  %v2419_v7 = vmax.f32 %v2372_v21, 0.0 }
 0x3b6   : > { %v2375_v15 = vpop.f32.mrf.mxu0 }
 0x3b7   : > { %v2376_v56 = vadd.f32 %v2375_v15, %v2293_v24  ;;  %v2420_v35 = vmax.f32 %v2374_v31, 0.0 }
 0x3b9   : > { %v2421_v58 = vmax.f32 %v2376_v56, 0.0  ;;  %v2438_v63 = vadd.f32 %v2420_v35, %v2418_v55 }
 0x3bb   : > { %v2439_v1 = vadd.f32 %v2421_v58, %v2419_v7 }
 0x3bd   : > { %v2296_v62 = vpop.f32.mrf.mxu1 }
 0x3be   : > { %v2297_v42 = vadd.f32 %v2296_v62, %v5173_v5 }
 0x3bf   : > { %v2298_v17 = vpop.f32.mrf.mxu1 }
 0x3c0   : > { %v2379_v54 = vpop.f32.mrf.mxu0  ;;  %v2299_v23 = vadd.f32 %v2298_v17, %v5169_v41 }
 0x3c1   : > { %v2300_v16 = vpop.f32.mrf.mxu1  ;;  %v2380_v49 = vadd.f32 %v2379_v54, %v2297_v42 }
 0x3c2   : > { %v2301_v39 = vadd.f32 %v2300_v16, %v5173_v5  ;;  %v2381_v12 = vpop.f32.mrf.mxu0 }
 0x3c3   : > { %v2302_v52 = vpop.f32.mrf.mxu1  ;;  %v2382_v27 = vadd.f32 %v2381_v12, %v2299_v23  ;;  %v2422_v48 = vmax.f32 %v2380_v49, 0.0 }
 0x3c4   : > { %v2303_v46 = vadd.f32 %v2302_v52, %v5169_v41  ;;  %v2383_v38 = vpop.f32.mrf.mxu0 }
 0x3c5   : > { %v2384_v30 = vadd.f32 %v2383_v38, %v2301_v39  ;;  %v2423_v14 = vmax.f32 %v2382_v27, 0.0 }
 0x3c6   : > { %v2385_v43 = vpop.f32.mrf.mxu0 }
 0x3c7   : > { %v2424_v59 = vmax.f32 %v2384_v30, 0.0  ;;  %v2386_v45 = vadd.f32 %v2385_v43, %v2303_v46 }
 0x3c9   : > { %v2425_v50 = vmax.f32 %v2386_v45, 0.0  ;;  %v2440_v57 = vadd.f32 %v2424_v59, %v2422_v48 }
 0x3cb   : > { %v2441_v60 = vadd.f32 %v2425_v50, %v2423_v14  ;;  %v2448_v3 = vpack.c.bf16 %v2440_v57, %v2438_v63 }
 0x3cd   : > { %v2449_v2 = vpack.c.bf16 %v2441_v60, %v2439_v1  ;;  %v2306_v22 = vpop.f32.mrf.mxu1 }
 0x3ce   : > { %v2307_v51 = vadd.f32 %v2306_v22, %v5173_v5 }
 0x3cf   : > { %3382 = vmatprep.mubr.msk.bf16.mxu1 %vm674_vm0, %v2449_v2  ;;  %v2308_v32 = vpop.f32.mrf.mxu1 }
 0x3d0   : > { %2576 = vmatmul.mubr.bf16.vlgmr.msra.gmra.mxu1 %v2448_v3  ;;  %v2389_v34 = vpop.f32.mrf.mxu0  ;;  %v2309_v11 = vadd.f32 %v2308_v32, %v5169_v41 }
 0x3d1   : > { %v2310_v33 = vpop.f32.mrf.mxu1  ;;  %v2390_v20 = vadd.f32 %v2389_v34, %v2307_v51  ;;  %v4013_v51 = vld [vmem:[%s5421_s7 + $0x60] sm:$0xff]  }
 0x3d2   : > { %v2391_v29 = vpop.f32.mrf.mxu0  ;;  %v2311_v6 = vadd.f32 %v2310_v33, %v5173_v5 }
 0x3d3   : > { %v2312_v4 = vpop.f32.mrf.mxu1  ;;  %v2392_v40 = vadd.f32 %v2391_v29, %v2309_v11  ;;  %v2426_v46 = vmax.f32 %v2390_v20, 0.0  ;;  %v4014_v11 = vld [vmem:[%s5421_s7 + $0xa8] sm:$0xff]  }
 0x3d4   : > { %v2393_v19 = vpop.f32.mrf.mxu0  ;;  %v2313_v47 = vadd.f32 %v2312_v4, %v5169_v41  ;;  %v4023_v20 = vld [vmem:[%s5421_s7 + $0x8] sm:$0xff]  }
 0x3d5   : > { %v2394_v62 = vadd.f32 %v2393_v19, %v2311_v6  ;;  %v2427_v52 = vmax.f32 %v2392_v40, 0.0  ;;  %v4011_v6 = vld [vmem:[%s5421_s7 + $0xb0] sm:$0xff]  }
 0x3d6   : > { %v2395_v36 = vpop.f32.mrf.mxu0  ;;  %v4019_v40 = vld [vmem:[%s5421_s7 + $0x50] sm:$0xff]  }
 0x3d7   : > { %v2396_v26 = vadd.f32 %v2395_v36, %v2313_v47  ;;  %v2428_v12 = vmax.f32 %v2394_v62, 0.0  ;;  %v4007_v47 = vld [vmem:[%s5421_s7 + $0xb8] sm:$0xff]  }
 0x3d8   : > { %2876 = vmatpush1.bf16.msra.mxu0 %v4007_v47  ;;  %v4016_v62 = vld [vmem:[%s5421_s7 + $0x58] sm:$0xff]  }
 0x3d9   : > { %v2429_v16 = vmax.f32 %v2396_v26, 0.0  ;;  %v2442_v30 = vadd.f32 %v2428_v12, %v2426_v46  ;;  %2877 = vmatprep.subr.bf16.mxu0 %v4111_v0  ;;  %v4028_v12 = vld [vmem:[%s5421_s7 + $0x80] sm:$0xff]  }
 0x3db   : > { %v2443_v21 = vadd.f32 %v2429_v16, %v2427_v52  ;;  %v4025_v16 = vld [vmem:[%s5421_s7 + $0x40] sm:$0xff]  }
 0x3dc   : > { %2878 = vmatpush1.bf16.msra.mxu0 %v4011_v6 }
 0x3dd   : > { %v2316_v37 = vpop.f32.mrf.mxu1  ;;  %2879 = vmatprep.subr.bf16.mxu0 %v4111_v0 }
 0x3de   : > { %v2317_v8 = vadd.f32 %v2316_v37, %v5173_v5 }
 0x3df   : > { %v2318_v44 = vpop.f32.mrf.mxu1 }
 0x3e0   : > { %v2399_v10 = vpop.f32.mrf.mxu0  ;;  %v2319_v13 = vadd.f32 %v2318_v44, %v5169_v41  ;;  %v4008_v44 = vld [vmem:[%s5421_s7 + $0x70] sm:$0xff]   ;;  %2880 = vmatpush1.bf16.msra.mxu0 %v4014_v11 }
 0x3e1   : > { %v2320_v18 = vpop.f32.mrf.mxu1  ;;  %v2400_v15 = vadd.f32 %v2399_v10, %v2317_v8  ;;  %v4009_v8 = vld [vmem:[%s5421_s7 + $0x30] sm:$0xff]   ;;  %v4010_v10 = vld [vmem:[%s5421_s7 + $0x68] sm:$0xff]   ;;  %2881 = vmatprep.subr.bf16.mxu0 %v4111_v0 }
 0x3e2   : > { %v2321_v9 = vadd.f32 %v2320_v18, %v5173_v5  ;;  %v2401_v61 = vpop.f32.mrf.mxu0  ;;  %v4012_v18 = vld [vmem:[%s5421_s7 + $0x28] sm:$0xff]  }
 0x3e3   : > { %v2322_v53 = vpop.f32.mrf.mxu1  ;;  %v2402_v42 = vadd.f32 %v2401_v61, %v2319_v13  ;;  %v2430_v56 = vmax.f32 %v2400_v15, 0.0  ;;  %v4018_v61 = vld [vmem:[%s5421_s7 + $0xa0] sm:$0xff]  }
 0x3e4   : > { %v2323_v24 = vadd.f32 %v2322_v53, %v5169_v41  ;;  %v2403_v17 = vpop.f32.mrf.mxu0  ;;  %v4015_v53 = vld [vmem:[%s5421_s7 + $0x20] sm:$0xff]   ;;  %2882 = vmatpush1.bf16.msra.mxu0 %v4018_v61 }
 0x3e5   : > { %v2404_v54 = vadd.f32 %v2403_v17, %v2321_v9  ;;  %v2431_v31 = vmax.f32 %v2402_v42, 0.0  ;;  %v4017_v17 = vld [vmem:[%s5421_s7 + $0x18] sm:$0xff]   ;;  %2883 = vmatprep.subr.bf16.mxu0 %v4111_v0  ;;  %v4020_v42 = vld [vmem:[%s5421_s7 + $0x10] sm:$0xff]  }
 0x3e6   : > { %v2405_v23 = vpop.f32.mrf.mxu0 }
 0x3e7   : > { %v2432_v25 = vmax.f32 %v2404_v54, 0.0  ;;  %v2406_v39 = vadd.f32 %v2405_v23, %v2323_v24  ;;  %v4021_v24 = vld [vmem:[%s5421_s7 + $0x98] sm:$0xff]   ;;  %v4022_v54 = vld [vmem:[%s5421_s7 + $0x48] sm:$0xff]   ;;  %v4024_v23 = vld [vmem:[%s5421_s7 + $0x90] sm:$0xff]  }
 0x3e8   : > { %2884 = vmatpush1.bf16.msra.mxu0 %v4021_v24 }
 0x3e9   : > { %v2433_v49 = vmax.f32 %v2406_v39, 0.0  ;;  %v2444_v38 = vadd.f32 %v2432_v25, %v2430_v56  ;;  %2885 = vmatprep.subr.bf16.mxu0 %v4111_v0  ;;  %v4026_v25 = vld [vmem:[%s5421_s7] sm:$0xff]   ;;  %v4027_v39 = vld [vmem:[%s5421_s7 + $0x88] sm:$0xff]  }
 0x3ea   : > { %v4029_v56 = vld [vmem:[%s5421_s7 + $0xc0] sm:$0xff]  }
 0x3eb   : > { %v2445_v27 = vadd.f32 %v2433_v49, %v2431_v31  ;;  %v2450_v58 = vpack.c.bf16 %v2444_v38, %v2442_v30  ;;  %v4117_v38 = vmov 0.0  }
 0x3ec   : > { %2886 = vmatpush1.bf16.msra.mxu0 %v4024_v23 }
 0x3ed   : > { %v2451_v28 = vpack.c.bf16 %v2445_v27, %v2443_v21  ;;  %v2326_v43 = vpop.f32.mrf.mxu1  ;;  %2887 = vmatprep.subr.bf16.mxu0 %v4111_v0 }
 0x3ee   : > { %v2327_v45 = vadd.f32 %v2326_v43, %v5173_v5 }
 0x3ef   : > { %v2328_v59 = vpop.f32.mrf.mxu1  ;;  %3383 = vmatprep.mubr.msk.bf16.mxu1 %vm674_vm0, %v2451_v28 }
 0x3f0   : > { %v2409_v35 = vpop.f32.mrf.mxu0  ;;  %2584 = vmatmul.mubr.bf16.gmra.mxu1 %v2450_v58  ;;  %v2329_v48 = vadd.f32 %v2328_v59, %v5169_v41  ;;  %2888 = vmatpush1.bf16.msra.mxu0 %v4027_v39 }
 0x3f1   : > { %v2330_v7 = vpop.f32.mrf.mxu1  ;;  %v2410_v57 = vadd.f32 %v2409_v35, %v2327_v45  ;;  %2889 = vmatprep.subr.bf16.mxu0 %v4111_v0 }
 0x3f2   : > { %v2331_v14 = vadd.f32 %v2330_v7, %v5173_v5  ;;  %v2411_v50 = vpop.f32.mrf.mxu0  ;;  %v4006_v5 = vld [vmem:[%s5421_s7 + $0x38] sm:$0xff]  }
 0x3f3   : > { %v2332_v55 = vpop.f32.mrf.mxu1  ;;  %v2412_v63 = vadd.f32 %v2411_v50, %v2329_v48  ;;  %v2434_v32 = vmax.f32 %v2410_v57, 0.0  ;;  %v4030_v7 = vld [vmem:[%s5423_s9 + $0x38] sm:$0xff]   ;;  %v4031_v50 = vld [vmem:[%s5423_s9 + $0x30] sm:$0xff]  }
 0x3f4   : > { %v2333_v1 = vadd.f32 %v2332_v55, %v5169_v41  ;;  %v2413_v60 = vpop.f32.mrf.mxu0  ;;  %v4005_v41 = vld [vmem:[%s5421_s7 + $0x78] sm:$0xff]   ;;  %2890 = vmatpush1.bf16.msra.mxu0 %v4028_v12  ;;  %v4032_v55 = vld [vmem:[%s5423_s9 + $0x28] sm:$0xff]  }
 0x3f5   : > { %v2414_v2 = vadd.f32 %v2413_v60, %v2331_v14  ;;  %v2435_v29 = vmax.f32 %v2412_v63, 0.0  ;;  %3434 = vmatprep.subr.bf16.mxu1 %v4005_v41  ;;  %2905 = vmatprep.subr.bf16.mxu0 %v4111_v0 }
 0x3f6   : > { %v2415_v3 = vpop.f32.mrf.mxu0  ;;  %3435 = vmatpush3.bf16.msra.mxu1 %v4006_v5 }
 0x3f7   : > { %v2436_v22 = vmax.f32 %v2414_v2, 0.0  ;;  %v2416_v34 = vadd.f32 %v2415_v3, %v2333_v1  ;;  %3436 = vmatprep.subr.bf16.mxu1 %v4008_v44  ;;  %v4033_v2 = vld [vmem:[%s5423_s9 + $0x20] sm:$0xff]   ;;  %v4034_v3 = vld [vmem:[%s5423_s9 + $0x18] sm:$0xff]  }
 0x3f8   : > { %2906 = vmatpush2.bf16.msra.mxu0 %v4029_v56 }
 0x3f9   : > { %v2437_v33 = vmax.f32 %v2416_v34, 0.0  ;;  %v2446_v19 = vadd.f32 %v2436_v22, %v2434_v32  ;;  %3494 = vmatprep.subr.bf16.mxu0 %v4117_v38  ;;  %v4035_v22 = vld [vmem:[%s5423_s9 + $0x10] sm:$0xff]   ;;  %v4036_v34 = vld [vmem:[%s5423_s9 + $0x8] sm:$0xff]   ;;  %v4037_v32 = vld [vmem:[%s5423_s9] sm:$0xff]  }
 0x3fa   : > { %3437 = vmatpush3.bf16.msra.mxu1 %v4009_v8  ;;  %v3385_v8 = vld [vmem:[%s5422_s8] ss:$0 sm:$0xff] }
 0x3fb   : > { %v2447_v4 = vadd.f32 %v2437_v33, %v2435_v29  ;;  %v2452_v36 = vpack.c.bf16 %v2446_v19, %v2446_v19  ;;  %3438 = vmatprep.subr.bf16.mxu1 %v4010_v10  ;;  %v4038_v29 = vld [vmem:[%s5425_s11 + $0x38] sm:$0xff]   ;;  %v4039_v33 = vld [vmem:[%s5425_s11 + $0x30] sm:$0xff]   ;;  %v4040_v19 = vld [vmem:[%s5425_s11 + $0x28] sm:$0xff]  }
 0x3fd   : > { %v2453_v37 = vpack.c.bf16 %v2447_v4, %v2447_v4  ;;  %v4041_v4 = vld [vmem:[%s5425_s11 + $0x20] sm:$0xff]  }
 0x3fe   : > { %3439 = vmatpush3.bf16.msra.mxu1 %v4012_v18 }
 0x3ff   : > { %3384 = vmatprep.mubr.msk.bf16.mxu1 %vm674_vm0, %v2453_v37  ;;  %3440 = vmatprep.subr.bf16.mxu1 %v4013_v51  ;;  %v4042_v37 = vld [vmem:[%s5425_s11 + $0x18] sm:$0xff]  }
 0x400   : > { %2592 = vmatmul.mubr.bf16.gmra.mxu1 %v2452_v36  ;;  %v4043_v36 = vld [vmem:[%s5425_s11 + $0x10] sm:$0xff]  }
 0x402   : > { %3441 = vmatpush3.bf16.msra.mxu1 %v4015_v53  ;;  %v4044_v53 = vld [vmem:[%s5425_s11 + $0x8] sm:$0xff]  }
 0x403   : > { %3442 = vmatprep.subr.bf16.mxu1 %v4016_v62  ;;  %v4045_v62 = vld [vmem:[%s5425_s11] sm:$0xff]  }
 0x406   : > { %3443 = vmatpush3.bf16.msra.mxu1 %v4017_v17 }
 0x407   : > { %3444 = vmatprep.subr.bf16.mxu1 %v4019_v40 }
 0x40a   : > { %3445 = vmatpush3.bf16.msra.mxu1 %v4020_v42 }
 0x40b   : > { %3446 = vmatprep.subr.bf16.mxu1 %v4022_v54 }
 0x40e   : > { %3447 = vmatpush3.bf16.msra.mxu1 %v4023_v20 }
 0x40f   : > { %3448 = vmatprep.subr.bf16.mxu1 %v4025_v16  ;;  %v3421_v16 = vld [vmem:[%s5426_s12] ss:$0 sm:$0xff] }
 0x412   : > { %3449 = vmatpush3.bf16.msra.mxu1 %v4026_v25 }
 0x413   : > { %3474 = vmatprep.subr.bf16.mxu1 %v4117_v38 }
 0x490   : > { %v5223_v13 = vpop.f32.mrf.mxu1 }
 0x492   : > { %v2579_v9 = vpop.f32.mrf.mxu1 }
 0x494   : > { %v2580_v26 = vpop.f32.mrf.mxu1 }
 0x495   : > { %2600 = vrot.lane.b32.xlu0 %v2580_v26, %s5448_s17  ;;  %s3431_s17 = sshll.u32 %s5449_s27, 7 }
 0x496   : > { %v2582_v15 = vpop.f32.mrf.mxu1  ;;  %s5371_s30 = scalar_lea.hbm %s5427_s13, %s3431_s17 }
 0x497   : > { %v3412_v15 = vld [vmem:[%s5424_s10] ss:$0 sm:$0xff] }
 0x4b0   : > { %v2585_v52 = vpop.f32.mrf.mxu1 }
 0x4b1   : > { %2604 = vrot.lane.b32.xlu1 %v2585_v52, %s5447_s21  ;;  %s3228_s21 = sshll.u32 %s4315_s16, 3 }
 0x4b2   : > { %v2587_v31 = vpop.f32.mrf.mxu1  ;;  %s597_s23 = scalar_lea.vmem [#allocation3], %s3228_s21  ;;  %s4119_s21 = smov [#allocation3]  }
 0x4b3   : > { %s3156_s24 = sshll.u32 %s597_s23, 4  ;;  %s4050_s26 = sshll.u32 %s4119_s21, 4  ;;  %s5373_s24 = int_to_ptr.vmem [resolvable:$true] %s3156_s24  ;;  %s4051_s26 = int_to_ptr.vmem [resolvable:$false] %s4050_s26 }
 0x4b4   : > { %v2588_v49 = vpop.f32.mrf.mxu1  ;;  %p4053_p2 = scmp.lt.s32.totalorder %s5373_s24, %s4051_s26 }
 0x4b5   : > { %2608 = vrot.lane.b32.xlu0 %v2588_v49, %s4116_s29  ;;  %s4046_s29 = scalar_lea.vmem %s5373_s24, 128 }
 0x4b6   : > { %v2590_v46 = vpop.f32.mrf.mxu1  ;;  %p4047_p13 = scmp.ne.s32.totalorder %s5373_s24, %s4046_s29 }
 0x4b8   : > { %p4048_p0 = pnand %p4047_p13, %p4228_p6 }
 0x4ba   : > { %p4049_p1 = pneg %p4048_p0 }
 0x4c0   : > { %v2593_v21 = vpop.f32.mrf.mxu1 }
 0x4c1   : > { %2612 = vrot.lane.b32.xlu1 %v2593_v21, %s5445_s22  ;;  %s4052_s22 = scalar_lea.vmem %s4051_s26, 256 }
 0x4c2   : > { %v2595_v27 = vpop.f32.mrf.mxu1  ;;  %p4054_p3 = scmp.lt.s32.totalorder %s4052_s22, %s4046_s29 }
 0x4c4   : > { %v2596_v30 = vpop.f32.mrf.mxu1  ;;  %p4055_p4 = por %p4054_p3, %p4053_p2 }
 0x4c6   : > { %v2597_v28 = vpop.f32.mrf.mxu1  ;;  %p4056_p5 = pnand %p4055_p4, %p4049_p1 }
 0x507   : > { %v2601_v0 = vpop.permute.xlu0 %2600 }
 0x508   : > { %v2615_v58 = vsel %vm1724_vm8, %v5223_v13, %v2601_v0 }
 0x509   : > { %v2620_v14 = vpack.c.bf16 %v2615_v58, %v2615_v58 }
 0x523   : > { %v2605_v43 = vpop.permute.xlu1 %2604 }
 0x524   : > { %v2616_v59 = vsel %vm674_vm0, %v2601_v0, %v2605_v43 }
 0x527   : > { %v2609_v45 = vpop.permute.xlu0 %2608 }
 0x528   : > { %v2618_v35 = vsel %vm2617_vm10, %v2616_v59, %v2609_v45 }
 0x529   : > { %v2621_v48 = vpack.c.bf16 %v2618_v35, %v2618_v35 }
 0x52b   : > { %2867 = vmatprep.mubr.bf16.mxu1 %v2621_v48 }
 0x52c   : > { %2868 = vmatmul.mubr.bf16.vlgmr.msra.gmra.mxu1 %v2620_v14 }
 0x52d   : > { %3475 = vmatpush3.bf16.msra.mxu1 %v4030_v7  ;;  %3490 = vmatprep.mubr.msk.bf16.mxu1 %vm4118_vm12, %v4117_v38 }
 0x52e   : > { %3476 = vmatprep.subr.bf16.mxu1 %v4117_v38 }
 0x531   : > { %3477 = vmatpush3.bf16.msra.mxu1 %v4031_v50 }
 0x532   : > { %3478 = vmatprep.subr.bf16.mxu1 %v4117_v38 }
 0x533   : > { %v2613_v57 = vpop.permute.xlu1 %2612 }
 0x534   : > { %v2619_v1 = vsel %vm676_vm1, %v2609_v45, %v2613_v57  ;;  %v2623_v60 = vpack.c.bf16 %v2613_v57, %v2613_v57 }
 0x535   : > { %v2622_v63 = vpack.c.bf16 %v2619_v1, %v2619_v1  ;;  %3479 = vmatpush3.bf16.msra.mxu1 %v4032_v55 }
 0x536   : > { %3411 = vmatprep.mubr.msk.bf16.mxu0 %vm2831_vm11, %v2623_v60  ;;  %3480 = vmatprep.subr.bf16.mxu1 %v4117_v38 }
 0x537   : > { %2908 = vmatmul.mubr.bf16.vlgmr.msra.gmra.mxu0 %v2622_v63 }
 0x538   : > { %3510 = vmatprep.mubr.msk.bf16.mxu0 %vm4118_vm12, %v4117_v38  ;;  %3495 = vmatpush3.bf16.msra.mxu0 %v4038_v29 }
 0x539   : > { %3481 = vmatpush3.bf16.msra.mxu1 %v4033_v2  ;;  %3496 = vmatprep.subr.bf16.mxu0 %v4117_v38 }
 0x53a   : > { %3482 = vmatprep.subr.bf16.mxu1 %v4117_v38 }
 0x53c   : > { %3497 = vmatpush3.bf16.msra.mxu0 %v4039_v33 }
 0x53d   : > { %3483 = vmatpush3.bf16.msra.mxu1 %v4034_v3  ;;  %3498 = vmatprep.subr.bf16.mxu0 %v4117_v38 }
 0x53e   : > { %3484 = vmatprep.subr.bf16.mxu1 %v4117_v38 }
 0x540   : > { %3499 = vmatpush3.bf16.msra.mxu0 %v4040_v19 }
 0x541   : > { %3485 = vmatpush3.bf16.msra.mxu1 %v4035_v22  ;;  %3500 = vmatprep.subr.bf16.mxu0 %v4117_v38 }
 0x542   : > { %3486 = vmatprep.subr.bf16.mxu1 %v4117_v38 }
 0x544   : > { %3501 = vmatpush3.bf16.msra.mxu0 %v4041_v4 }
 0x545   : > { %3487 = vmatpush3.bf16.msra.mxu1 %v4036_v34  ;;  %3502 = vmatprep.subr.bf16.mxu0 %v4117_v38 }
 0x546   : > { %3488 = vmatprep.subr.bf16.mxu1 %v4117_v38 }
 0x548   : > { %3503 = vmatpush3.bf16.msra.mxu0 %v4042_v37 }
 0x549   : > { %3489 = vmatpush3.bf16.msra.mxu1 %v4037_v32  ;;  %3504 = vmatprep.subr.bf16.mxu0 %v4117_v38 }
 0x54c   : > { %3505 = vmatpush3.bf16.msra.mxu0 %v4043_v36 }
 0x54d   : > { %3506 = vmatprep.subr.bf16.mxu0 %v4117_v38 }
 0x550   : > { %3507 = vmatpush3.bf16.msra.mxu0 %v4044_v53 }
 0x551   : > { %3508 = vmatprep.subr.bf16.mxu0 %v4117_v38 }
 0x554   : > { %3509 = vmatpush3.bf16.msra.mxu0 %v4045_v62 }
 0x5ec   : > { %v3450_v41 = vpop.f32.mrf.mxu1 }
 0x5ee   : > { %v3451_v5 = vpop.f32.mrf.mxu1 }
 0x5ef   : > { %v3452_v44 = vadd.f32 %v3451_v5, %v3450_v41 }
 0x5f0   : > { %v3453_v47 = vpop.f32.mrf.mxu1 }
 0x5f1   : > { %v2870_v10 = vadd.f32 %v3452_v44, %v3385_v8 }
 0x5f2   : > { %v3454_v6 = vpop.f32.mrf.mxu1 }
 0x5f7   : > { %v2909_v11 = vpop.f32.mrf.mxu0 }
 0x5f8   : > { %v2910_v13 = vadd.f32 %v2909_v11, %v2870_v10 }
 0x5f9   : > { %v2911_v18 = vpop.f32.mrf.mxu0 }
 0x5fa   : > { %v2915_v51 = vmax.f32 %v2910_v13, 0.0 }
 0x5fb   : > { %v2912_v9 = vpop.f32.mrf.mxu0 }
 0x5fc   : > { %v2916_v61 = vpack.c.bf16 %v2915_v51, %v2915_v51 }
 0x5fd   : > { %v2913_v26 = vpop.f32.mrf.mxu0 }
 0x5fe   : > { %3491 = vmatmul.mubr.bf16.vlgmr.msra.gmra.mxu1 %v2916_v61 }
 0x6be   : > { %v3022_v24 = vpop.f32.mrf.mxu1 }
 0x6bf   : > { %v3023_v17 = vadd.f32 %v3412_v15, %v3022_v24 }
 0x6c0   : > { %v3492_v40 = vpop.f32.mrf.mxu1 }
 0x6c1   : > { %v3028_v42 = vmax.f32 %v3023_v17, 0.0 }
 0x6c2   : > { %v3025_v54 = vpop.f32.mrf.mxu1 }
 0x6c3   : > { %v3029_v20 = vpack.c.bf16 %v3028_v42, %v3028_v42 }
 0x6c4   : > { %v3493_v23 = vpop.f32.mrf.mxu1 }
 0x6c5   : > { %3511 = vmatmul.mubr.bf16.vlgmr.msra.gmra.mxu0 %v3029_v20 }
 0x785   : > { %v3135_v25 = vpop.f32.mrf.mxu0 }
 0x786   : > { %v3136_v39 = vadd.f32 %v3421_v16, %v3135_v25 }
 0x787   : > { %v3512_v12 = vpop.f32.mrf.mxu0 }
 0x788   : > { %3141 = vst [vmem:[%s597_s23] sm:$0xff] %v3136_v39 }
 0x789   : > { %v3138_v56 = vpop.f32.mrf.mxu0 }
 0x78a   : > { %4059 = shalt.err (!%p4056_p5)
}
 0x78b   : > { %s4060_s27 = scalar_lea.hbm %s5371_s30, 128  ;;  %s4064_s23 = scalar_lea.hbm %s5427_s13, 256 }
 0x78c   : > { %p4061_p7 = scmp.ne.s32.totalorder %s5371_s30, %s4060_s27  ;;  %p4065_p12 = scmp.lt.s32.totalorder %s5371_s30, %s5427_s13 }
 0x78d   : > { %p4066_p13 = scmp.lt.s32.totalorder %s4064_s23, %s4060_s27 }
 0x78e   : > { %p4062_p10 = pnand %p4061_p7, %p4228_p6 }
 0x78f   : > { %p4067_p0 = por %p4066_p13, %p4065_p12 }
 0x790   : > { %p4063_p11 = pneg %p4062_p10 }
 0x792   : > { %p4068_p1 = pnand %p4067_p0, %p4063_p11 }
 0x794   : > { %4071 = shalt.err (!%p4068_p1)
}
 0x795   : > { %3514 = dma.vmem_to_hbm [thread:$0]  (%p4228_p6), %s5373_s24, 128, %s5371_s30, %s3143_s0   ;;  %v3513_v52 = vpop.f32.mrf.mxu0 }
 0x796 PF: > { %s3168_s29 = sand.u32 1, %s4094_s25   ;;  %p3517_p2 = pnand %p3223_p9, %p4232_p8 }
 0x797   : > { %s3169_s21 = scalar_lea.sflag [#allocation4], %s3168_s29 }
 0x798   : > { %p3518_p3 = pneg %p3517_p2 }
 0x79a   : > { %4089 = dma.done.wait (%p3518_p3), %s3169_s21, 128  }
 0x79b   : > { %4091 = vsyncadd (%p3518_p3), %s3169_s21, 4294967168  ;;  %s5450_s25 = sld [smem:[#allocation6_spill]]  ;;  %p23_p4 = scmp.ge.s32.totalorder %s4213_s14, 4  }
 0x79c   : > { %s5451_s26 = sld [smem:[#allocation7_spill]]  ;;  %s5453_s28 = smov %s4213_s14 }
 0x79d   : > { %s5452_s27 = sld [smem:[#allocation8_spill]]  ;;  %25 = sbr.rel (!%p23_p4) target bundleno = 5 (0x5), region = 181 }
 0x7a2   :  { %3174 = vsyncpa [#allocation4], 1 }
 0x7a3   :  { %3176 = vsyncpa [#allocation4 + $0x1], 1 }

</bundles_post_ra>
